<compile_context>
chip_gen: v7x
topology: tpu7x:2x2x1
jax: 0.10.0
libtpu: 0.0.40
codegen_flags: <defaults>
</compile_context>

<pallas_src>
import math

import jax
import jax.numpy as jnp
from jax.experimental import pallas as pl
from jax.experimental.pallas import tpu as pltpu

# ----- small, self-consistent hyper-parameters (original: H=2640, heads=16) -----
BATCH = 2
SEQ_IN = 7            # sequence length fed to forward() (before CLS prepend)
SEQ = SEQ_IN + 1      # sequence length inside BERT
HIDDEN = 128          # BertConfig.hidden_size
NUM_HEADS = 4         # BertConfig.num_attention_heads
HEAD_DIM = HIDDEN // NUM_HEADS
INTERMEDIATE = 256    # BertConfig.intermediate_size
NUM_LAYERS = 2        # kwargs['transformer_hidden_layers']
MAX_POS = 30          # BertConfig.max_position_embeddings
LN_EPS = 1e-12        # BertConfig.layer_norm_eps
LEAKY_SLOPE = 0.01    # nn.LeakyReLU default negative_slope
DTYPE = jnp.float32

ROWS = BATCH * SEQ                 # batch folded into rows -> (16, 128) activations
BD_ROWS = BATCH * NUM_HEADS * SEQ  # block-diagonal key/value rows -> 64
NEG_INF = -1e30                    # finite additive mask (avoids inf-inf NaNs)


# ----------------------------- in-kernel helpers -----------------------------
def _layernorm(x, gamma, beta):
    mu = jnp.mean(x, axis=-1, keepdims=True)
    var = jnp.mean(jnp.square(x - mu), axis=-1, keepdims=True)
    return (x - mu) * jax.lax.rsqrt(var + LN_EPS) * gamma + beta


def _leaky_relu(x):
    return jnp.where(x >= 0.0, x, LEAKY_SLOPE * x)


def _erf(x):
    # Abramowitz & Stegun 7.1.26 (~1.5e-7 abs err).  Exact division so the GELU
    # tracks PyTorch's erf-based gelu (no approx-reciprocal error).
    a1, a2, a3, a4, a5 = (0.254829592, -0.284496736, 1.421413741,
                          -1.453152027, 1.061405429)
    p = 0.3275911
    sgn = jnp.where(x < 0.0, -1.0, 1.0)
    ax = jnp.abs(x)
    t = 1.0 / (1.0 + p * ax)
    poly = ((((a5 * t + a4) * t + a3) * t + a2) * t + a1) * t
    return sgn * (1.0 - poly * jnp.exp(-ax * ax))


def _gelu(x):
    # erf-based GELU == HF Bert default hidden_act="gelu"
    return 0.5 * x * (1.0 + _erf(x * 0.7071067811865476))


def _replicate_heads(t):
    """(ROWS, H) -> (BD_ROWS, H): row (b, hd, j) := t[b*SEQ + j].

    Built only from tile-aligned 8-row slices + sublane concatenation — no
    sub-vreg lane slicing, no transposes."""
    parts = []
    for b in range(BATCH):
        tb = t[b * SEQ:(b + 1) * SEQ, :]
        parts.extend([tb] * NUM_HEADS)
    return jnp.concatenate(parts, axis=0)


# --------------------------------- fused kernel -------------------------------
def fused_transformer_kernel(
        emb_ref, maskbd_ref, bias_ref, eg_ref, eb_ref,
        wqkv_ref, bqkv_ref, wo_ref, bo_ref, g1_ref, b1_ref,
        wi_ref, bi_ref, wo2_ref, bo2_ref, g2_ref, b2_ref,
        wp_ref, bp_ref, wh_ref, bh_ref,
        h_out_ref, pool_out_ref, pred_out_ref):
    """Embedding-LN + NUM_LAYERS BertLayers + pooler + regression head for the
    whole batch-folded (B*SEQ, H) activation slab in a single program."""
    mask_bd = maskbd_ref[...]     # (BD_ROWS, H) 0/1 head-channel block mask
    bias = bias_ref[...]          # (ROWS, BD_ROWS) 0 / -1e30 cross-batch mask

    # ---- BertEmbeddings LayerNorm (CLS/pos/token adds were done in the wrapper) ----
    h = _layernorm(emb_ref[...], eg_ref[...], eb_ref[...])          # (ROWS, H)

    scale = 1.0 / math.sqrt(HEAD_DIM)
    for l in range(NUM_LAYERS):                                     # static layer loop
        # fused QKV projection: one (ROWS,H)@(H,3H) MXU push per layer
        qkv = (jnp.dot(h, wqkv_ref[l], preferred_element_type=jnp.float32)
               + bqkv_ref[l])                                       # (ROWS, 3H)
        q = qkv[:, 0:HIDDEN]
        k = qkv[:, HIDDEN:2 * HIDDEN]
        v = qkv[:, 2 * HIDDEN:3 * HIDDEN]

        # Block-diagonal (batch, head) attention: all heads and batch elements in
        # a handful of full-contraction matmuls instead of B*NH tiny per-head dots.
        k_bd = _replicate_heads(k) * mask_bd                        # (BD_ROWS, H)
        v_bd = _replicate_heads(v) * mask_bd                        # (BD_ROWS, H)

        s = jax.lax.dot_general(                                    # q @ k_bd^T
            q, k_bd, dimension_numbers=(((1,), (1,)), ((), ())),
            preferred_element_type=jnp.float32) * scale + bias      # (ROWS, BD_ROWS)
        m = jnp.max(s, axis=-1, keepdims=True)                      # valid-only row max
        p = jnp.exp(s - m)                                          # cross-batch cols -> 0
        ctx = jnp.dot(p, v_bd, preferred_element_type=jnp.float32)  # (ROWS, H) unnormalized
        den = jnp.dot(p, mask_bd, preferred_element_type=jnp.float32)  # per-(row, head) sum
        ctx = ctx / jnp.maximum(den, 1e-30)                         # exact softmax normalize
                                                                    # (guard only on underflow)

        # attention output projection + residual + LayerNorm
        attn = (jnp.dot(ctx, wo_ref[l], preferred_element_type=jnp.float32)
                + bo_ref[l])
        h = _layernorm(attn + h, g1_ref[l], b1_ref[l])

        # feed-forward (GELU) + residual + LayerNorm
        inter = _gelu(jnp.dot(h, wi_ref[l], preferred_element_type=jnp.float32)
                      + bi_ref[l])
        mlp = (jnp.dot(inter, wo2_ref[l], preferred_element_type=jnp.float32)
               + bo2_ref[l])
        h = _layernorm(mlp + h, g2_ref[l], b2_ref[l])

    # ---- BertPooler + regression head, applied to every row (free at 8-row MXU
    #      granularity); the wrapper slices out the CLS rows. ----
    pooled = jnp.tanh(jnp.dot(h, wp_ref[...], preferred_element_type=jnp.float32)
                      + bp_ref[...])                                # (ROWS, H)
    pred = _leaky_relu(jnp.dot(pooled, wh_ref[...],
                               preferred_element_type=jnp.float32)
                       + bh_ref[...])                               # (ROWS, 1)

    h_out_ref[...] = h              # full aligned slab (unmasked store)
    pool_out_ref[...] = pooled
    pred_out_ref[...] = pred


# ------------------------------ pallas wrapper --------------------------------
def _attention_constants():
    # head-channel block mask: row (b, hd, j) is nonzero only on head hd's channels
    r = jnp.arange(BD_ROWS)
    hd_of_row = (r // SEQ) % NUM_HEADS
    head_of_col = jnp.arange(HIDDEN) // HEAD_DIM
    mask_bd = (hd_of_row[:, None] == head_of_col[None, :]).astype(DTYPE)
    # additive batch mask: query rows of batch b only attend to key columns of batch b
    b_of_qrow = jnp.arange(ROWS) // SEQ
    b_of_kcol = jnp.arange(BD_ROWS) // (NUM_HEADS * SEQ)
    attn_bias = jnp.where(b_of_qrow[:, None] == b_of_kcol[None, :],
                          0.0, NEG_INF).astype(DTYPE)
    return mask_bd, attn_bias


@jax.jit
def transformer_block_forward(params, x):
    B, S_in, H = x.shape
    S = S_in + 1
    assert (B, S, H) == (BATCH, SEQ, HIDDEN)

    # cls_embedding is input-independent (cls_id buffer == 0.5) -> hoisted here
    cls_lin = jnp.full((1, H), 0.5, DTYPE) @ params['w_cls'] + params['b_cls']
    cls_tok = jnp.where(cls_lin >= 0.0, cls_lin, LEAKY_SLOPE * cls_lin)   # (1, H)

    # BertEmbeddings additive terms pre-summed (position_ids=arange, token_type=0)
    pos_tok = params['pos_emb'][:S] + params['tok_type']                  # (S, H)

    emb = jnp.concatenate(
        [jnp.broadcast_to(cls_tok[None, :, :], (B, 1, H)), x], axis=1)    # (B, S, H)
    emb = (emb + pos_tok[None, :, :]).reshape(B * S, H)                   # fold batch

    mask_bd, attn_bias = _attention_constants()

    args = (emb, mask_bd, attn_bias,
            params['emb_ln_g'], params['emb_ln_b'],
            params['wqkv'], params['bqkv'], params['wo'], params['bo'],
            params['ln1_g'], params['ln1_b'], params['wi'], params['bi'],
            params['wo2'], params['bo2'], params['ln2_g'], params['ln2_b'],
            params['w_pool'], params['b_pool'], params['w_head'], params['b_head'])

    vmem_spec = pl.BlockSpec(memory_space=pltpu.MemorySpace.VMEM)   # whole array, VMEM

    h_out, pooled, pred = pl.pallas_call(
        fused_transformer_kernel,
        out_shape=(
            jax.ShapeDtypeStruct((B * S, H), DTYPE),
            jax.ShapeDtypeStruct((B * S, H), DTYPE),
            jax.ShapeDtypeStruct((B * S, 1), DTYPE),
        ),
        # single program, no grid: whole problem is (16, 128); all weights
        # (~1 MB f32) stay VMEM-resident and single-buffered.
        in_specs=[vmem_spec] * len(args),
        out_specs=(vmem_spec, vmem_spec, vmem_spec),
    )(*args)

    h_out = h_out.reshape(B, S, H)
    return {
        'sequence': h_out[:, 1:, :],                    # outputs[0][:, 1:, :]
        'cls': pooled.reshape(B, S, H)[:, 0, :],        # pooled CLS token
        'regression': pred.reshape(B, S, 1)[:, 0, :],   # LeakyReLU(Linear(CLS))
    }


# ------------------------------- parameters -----------------------------------
def init_params(key):
    def dense(k, fan_in, fan_out):
        return jax.random.normal(k, (fan_in, fan_out), DTYPE) * 0.02

    keys = iter(jax.random.split(key, 8 + 8 * NUM_LAYERS))
    params = {
        'w_cls': dense(next(keys), HIDDEN, HIDDEN),
        'b_cls': jnp.zeros((1, HIDDEN), DTYPE),
        'tok_type': jax.random.normal(next(keys), (1, HIDDEN), DTYPE) * 0.02,
        'pos_emb': jax.random.normal(next(keys), (MAX_POS, HIDDEN), DTYPE) * 0.02,
        'emb_ln_g': jnp.ones((1, HIDDEN), DTYPE),
        'emb_ln_b': jnp.zeros((1, HIDDEN), DTYPE),
        'w_pool': dense(next(keys), HIDDEN, HIDDEN),
        'b_pool': jnp.zeros((1, HIDDEN), DTYPE),
        'w_head': dense(next(keys), HIDDEN, 1),
        'b_head': jnp.zeros((1, 1), DTYPE),
    }
    wqkv, bqkv, wo, bo, g1, b1 = [], [], [], [], [], []
    wi, bi, wo2, bo2, g2, b2 = [], [], [], [], [], []
    for _ in range(NUM_LAYERS):
        wq = dense(next(keys), HIDDEN, HIDDEN)
        wk = dense(next(keys), HIDDEN, HIDDEN)
        wv = dense(next(keys), HIDDEN, HIDDEN)
        wqkv.append(jnp.concatenate([wq, wk, wv], axis=1))     # fused (H, 3H)
        bqkv.append(jnp.zeros((1, 3 * HIDDEN), DTYPE))
        wo.append(dense(next(keys), HIDDEN, HIDDEN))
        bo.append(jnp.zeros((1, HIDDEN), DTYPE))
        g1.append(jnp.ones((1, HIDDEN), DTYPE))
        b1.append(jnp.zeros((1, HIDDEN), DTYPE))
        wi.append(dense(next(keys), HIDDEN, INTERMEDIATE))
        bi.append(jnp.zeros((1, INTERMEDIATE), DTYPE))
        wo2.append(dense(next(keys), INTERMEDIATE, HIDDEN))
        bo2.append(jnp.zeros((1, HIDDEN), DTYPE))
        g2.append(jnp.ones((1, HIDDEN), DTYPE))
        b2.append(jnp.zeros((1, HIDDEN), DTYPE))

    stack = lambda xs: jnp.stack(xs, axis=0)
    params.update(wqkv=stack(wqkv), bqkv=stack(bqkv), wo=stack(wo), bo=stack(bo),
                  ln1_g=stack(g1), ln1_b=stack(b1), wi=stack(wi), bi=stack(bi),
                  wo2=stack(wo2), bo2=stack(bo2), ln2_g=stack(g2), ln2_b=stack(b2))
    return params


# ----------------------------------- main --------------------------------------
if __name__ == "__main__":
    key = jax.random.PRNGKey(0)
    pkey, xkey = jax.random.split(key)
    params = init_params(pkey)
    x = jax.random.normal(xkey, (BATCH, SEQ_IN, HIDDEN), DTYPE)

    out = transformer_block_forward(params, x)
    jax.block_until_ready(out)

    assert out['sequence'].shape == (BATCH, SEQ_IN, HIDDEN)
    assert out['cls'].shape == (BATCH, HIDDEN)
    assert out['regression'].shape == (BATCH, 1)
    for v in out.values():
        assert bool(jnp.all(jnp.isfinite(v)))
    print("KERNEL_OK")
</pallas_src>

<mosaic_0001>
module attributes {stable_mosaic.version = 11 : i64} {
  func.func @fused_transformer_kernel(%arg0: memref<16x128xf32, #tpu.memory_space<vmem>>, %arg1: memref<64x128xf32, #tpu.memory_space<vmem>>, %arg2: memref<16x64xf32, #tpu.memory_space<vmem>>, %arg3: memref<1x128xf32, #tpu.memory_space<vmem>>, %arg4: memref<1x128xf32, #tpu.memory_space<vmem>>, %arg5: memref<2x128x384xf32, #tpu.memory_space<vmem>>, %arg6: memref<2x1x384xf32, #tpu.memory_space<vmem>>, %arg7: memref<2x128x128xf32, #tpu.memory_space<vmem>>, %arg8: memref<2x1x128xf32, #tpu.memory_space<vmem>>, %arg9: memref<2x1x128xf32, #tpu.memory_space<vmem>>, %arg10: memref<2x1x128xf32, #tpu.memory_space<vmem>>, %arg11: memref<2x128x256xf32, #tpu.memory_space<vmem>>, %arg12: memref<2x1x256xf32, #tpu.memory_space<vmem>>, %arg13: memref<2x256x128xf32, #tpu.memory_space<vmem>>, %arg14: memref<2x1x128xf32, #tpu.memory_space<vmem>>, %arg15: memref<2x1x128xf32, #tpu.memory_space<vmem>>, %arg16: memref<2x1x128xf32, #tpu.memory_space<vmem>>, %arg17: memref<128x128xf32, #tpu.memory_space<vmem>>, %arg18: memref<1x128xf32, #tpu.memory_space<vmem>>, %arg19: memref<128x1xf32, #tpu.memory_space<vmem>>, %arg20: memref<1x1xf32, #tpu.memory_space<vmem>>, %arg21: memref<16x128xf32, #tpu.memory_space<vmem>>, %arg22: memref<16x128xf32, #tpu.memory_space<vmem>>, %arg23: memref<16x1xf32, #tpu.memory_space<vmem>>) attributes {dimension_semantics = [], scalar_prefetch = 0 : i64, scratch_operands = 0 : i64, tpu.core_type = #tpu.core_type<tc>} {
    %c0 = arith.constant 0 : index
    %c0_0 = arith.constant 0 : index
    %0 = vector.load %arg1[%c0, %c0_0] : memref<64x128xf32, #tpu.memory_space<vmem>>, vector<64x128xf32>
    %c0_1 = arith.constant 0 : index
    %c0_2 = arith.constant 0 : index
    %1 = vector.load %arg2[%c0_1, %c0_2] : memref<16x64xf32, #tpu.memory_space<vmem>>, vector<16x64xf32>
    %c0_3 = arith.constant 0 : index
    %c0_4 = arith.constant 0 : index
    %2 = vector.load %arg0[%c0_3, %c0_4] : memref<16x128xf32, #tpu.memory_space<vmem>>, vector<16x128xf32>
    %c0_5 = arith.constant 0 : index
    %c0_6 = arith.constant 0 : index
    %3 = vector.load %arg3[%c0_5, %c0_6] : memref<1x128xf32, #tpu.memory_space<vmem>>, vector<1x128xf32>
    %c0_7 = arith.constant 0 : index
    %c0_8 = arith.constant 0 : index
    %4 = vector.load %arg4[%c0_7, %c0_8] : memref<1x128xf32, #tpu.memory_space<vmem>>, vector<1x128xf32>
    %cst = arith.constant dense<0.000000e+00> : vector<16xf32>
    %5 = vector.multi_reduction <add>, %2, %cst [1] : vector<16x128xf32> to vector<16xf32>
    %6 = vector.shape_cast %5 : vector<16xf32> to vector<16x1xf32>
    %cst_9 = arith.constant 1.280000e+02 : f32
    %7 = vector.broadcast %cst_9 : f32 to vector<16x1xf32>
    %8 = arith.divf %6, %7 : vector<16x1xf32>
    %9 = vector.broadcast %8 : vector<16x1xf32> to vector<16x128xf32>
    %10 = arith.subf %2, %9 : vector<16x128xf32>
    %11 = arith.mulf %10, %10 : vector<16x128xf32>
    %cst_10 = arith.constant dense<0.000000e+00> : vector<16xf32>
    %12 = vector.multi_reduction <add>, %11, %cst_10 [1] : vector<16x128xf32> to vector<16xf32>
    %13 = vector.shape_cast %12 : vector<16xf32> to vector<16x1xf32>
    %cst_11 = arith.constant 1.280000e+02 : f32
    %14 = vector.broadcast %cst_11 : f32 to vector<16x1xf32>
    %15 = arith.divf %13, %14 : vector<16x1xf32>
    %16 = vector.broadcast %8 : vector<16x1xf32> to vector<16x128xf32>
    %17 = arith.subf %2, %16 : vector<16x128xf32>
    %cst_12 = arith.constant 9.99999996E-13 : f32
    %18 = vector.broadcast %cst_12 : f32 to vector<16x1xf32>
    %19 = arith.addf %15, %18 : vector<16x1xf32>
    %20 = math.rsqrt %19 : vector<16x1xf32>
    %21 = vector.broadcast %20 : vector<16x1xf32> to vector<16x128xf32>
    %22 = arith.mulf %17, %21 : vector<16x128xf32>
    %23 = vector.broadcast %3 : vector<1x128xf32> to vector<16x128xf32>
    %24 = arith.mulf %22, %23 : vector<16x128xf32>
    %25 = vector.broadcast %4 : vector<1x128xf32> to vector<16x128xf32>
    %26 = arith.addf %24, %25 : vector<16x128xf32>
    %c0_13 = arith.constant 0 : index
    %c0_14 = arith.constant 0 : index
    %c0_15 = arith.constant 0 : index
    %27 = vector.load %arg5[%c0_13, %c0_14, %c0_15] : memref<2x128x384xf32, #tpu.memory_space<vmem>>, vector<1x128x384xf32>
    %28 = vector.shape_cast %27 : vector<1x128x384xf32> to vector<128x384xf32>
    %cst_16 = arith.constant dense<0.000000e+00> : vector<16x384xf32>
    %29 = tpu.matmul %26, %28, %cst_16 {dimension_numbers = #tpu.dot_dimension_numbers<[1], [0], [0], [1], [0, 0, 1, 1], [], []>} : vector<16x128xf32>, vector<128x384xf32>, vector<16x384xf32> -> vector<16x384xf32>
    %c0_17 = arith.constant 0 : index
    %c0_18 = arith.constant 0 : index
    %c0_19 = arith.constant 0 : index
    %30 = vector.load %arg6[%c0_17, %c0_18, %c0_19] : memref<2x1x384xf32, #tpu.memory_space<vmem>>, vector<1x1x384xf32>
    %31 = vector.shape_cast %30 : vector<1x1x384xf32> to vector<1x384xf32>
    %32 = vector.broadcast %31 : vector<1x384xf32> to vector<16x384xf32>
    %33 = arith.addf %29, %32 : vector<16x384xf32>
    %34 = vector.extract_strided_slice %33 {offsets = [0, 0], sizes = [16, 128], strides = [1, 1]} : vector<16x384xf32> to vector<16x128xf32>
    %35 = vector.extract_strided_slice %33 {offsets = [0, 128], sizes = [16, 128], strides = [1, 1]} : vector<16x384xf32> to vector<16x128xf32>
    %36 = vector.extract_strided_slice %33 {offsets = [0, 256], sizes = [16, 128], strides = [1, 1]} : vector<16x384xf32> to vector<16x128xf32>
    %37 = vector.extract_strided_slice %35 {offsets = [0, 0], sizes = [8, 128], strides = [1, 1]} : vector<16x128xf32> to vector<8x128xf32>
    %38 = vector.extract_strided_slice %35 {offsets = [8, 0], sizes = [8, 128], strides = [1, 1]} : vector<16x128xf32> to vector<8x128xf32>
    %39 = tpu.concatenate %37, %37, %37, %37, %38, %38, %38, %38 in 0 : vector<8x128xf32>, vector<8x128xf32>, vector<8x128xf32>, vector<8x128xf32>, vector<8x128xf32>, vector<8x128xf32>, vector<8x128xf32>, vector<8x128xf32> -> vector<64x128xf32>
    %40 = arith.mulf %39, %0 : vector<64x128xf32>
    %41 = vector.extract_strided_slice %36 {offsets = [0, 0], sizes = [8, 128], strides = [1, 1]} : vector<16x128xf32> to vector<8x128xf32>
    %42 = vector.extract_strided_slice %36 {offsets = [8, 0], sizes = [8, 128], strides = [1, 1]} : vector<16x128xf32> to vector<8x128xf32>
    %43 = tpu.concatenate %41, %41, %41, %41, %42, %42, %42, %42 in 0 : vector<8x128xf32>, vector<8x128xf32>, vector<8x128xf32>, vector<8x128xf32>, vector<8x128xf32>, vector<8x128xf32>, vector<8x128xf32>, vector<8x128xf32> -> vector<64x128xf32>
    %44 = arith.mulf %43, %0 : vector<64x128xf32>
    %cst_20 = arith.constant dense<0.000000e+00> : vector<16x64xf32>
    %45 = tpu.matmul %34, %40, %cst_20 {dimension_numbers = #tpu.dot_dimension_numbers<[1], [1], [0], [0], [0, 0, 1, 0], [], []>} : vector<16x128xf32>, vector<64x128xf32>, vector<16x64xf32> -> vector<16x64xf32>
    %cst_21 = arith.constant 0.176776692 : f32
    %46 = vector.broadcast %cst_21 : f32 to vector<16x64xf32>
    %47 = arith.mulf %45, %46 : vector<16x64xf32>
    %48 = arith.addf %47, %1 : vector<16x64xf32>
    %cst_22 = arith.constant dense<0xFF800000> : vector<16xf32>
    %49 = vector.multi_reduction <maximumf>, %48, %cst_22 [1] : vector<16x64xf32> to vector<16xf32>
    %50 = vector.shape_cast %49 : vector<16xf32> to vector<16x1xf32>
    %51 = vector.broadcast %50 : vector<16x1xf32> to vector<16x64xf32>
    %52 = arith.subf %48, %51 : vector<16x64xf32>
    %53 = math.exp %52 : vector<16x64xf32>
    %cst_23 = arith.constant dense<0.000000e+00> : vector<16x128xf32>
    %54 = tpu.matmul %53, %44, %cst_23 {dimension_numbers = #tpu.dot_dimension_numbers<[1], [0], [0], [1], [0, 0, 1, 1], [], []>} : vector<16x64xf32>, vector<64x128xf32>, vector<16x128xf32> -> vector<16x128xf32>
    %cst_24 = arith.constant dense<0.000000e+00> : vector<16x128xf32>
    %55 = tpu.matmul %53, %0, %cst_24 {dimension_numbers = #tpu.dot_dimension_numbers<[1], [0], [0], [1], [0, 0, 1, 1], [], []>} : vector<16x64xf32>, vector<64x128xf32>, vector<16x128xf32> -> vector<16x128xf32>
    %cst_25 = arith.constant 1.000000e-30 : f32
    %56 = vector.broadcast %cst_25 : f32 to vector<16x128xf32>
    %57 = arith.maximumf %55, %56 : vector<16x128xf32>
    %58 = arith.divf %54, %57 : vector<16x128xf32>
    %c0_26 = arith.constant 0 : index
    %c0_27 = arith.constant 0 : index
    %c0_28 = arith.constant 0 : index
    %59 = vector.load %arg7[%c0_26, %c0_27, %c0_28] : memref<2x128x128xf32, #tpu.memory_space<vmem>>, vector<1x128x128xf32>
    %60 = vector.shape_cast %59 : vector<1x128x128xf32> to vector<128x128xf32>
    %cst_29 = arith.constant dense<0.000000e+00> : vector<16x128xf32>
    %61 = tpu.matmul %58, %60, %cst_29 {dimension_numbers = #tpu.dot_dimension_numbers<[1], [0], [0], [1], [0, 0, 1, 1], [], []>} : vector<16x128xf32>, vector<128x128xf32>, vector<16x128xf32> -> vector<16x128xf32>
    %c0_30 = arith.constant 0 : index
    %c0_31 = arith.constant 0 : index
    %c0_32 = arith.constant 0 : index
    %62 = vector.load %arg8[%c0_30, %c0_31, %c0_32] : memref<2x1x128xf32, #tpu.memory_space<vmem>>, vector<1x1x128xf32>
    %63 = vector.shape_cast %62 : vector<1x1x128xf32> to vector<1x128xf32>
    %64 = vector.broadcast %63 : vector<1x128xf32> to vector<16x128xf32>
    %65 = arith.addf %61, %64 : vector<16x128xf32>
    %66 = arith.addf %65, %26 : vector<16x128xf32>
    %c0_33 = arith.constant 0 : index
    %c0_34 = arith.constant 0 : index
    %c0_35 = arith.constant 0 : index
    %67 = vector.load %arg9[%c0_33, %c0_34, %c0_35] : memref<2x1x128xf32, #tpu.memory_space<vmem>>, vector<1x1x128xf32>
    %68 = vector.shape_cast %67 : vector<1x1x128xf32> to vector<1x128xf32>
    %c0_36 = arith.constant 0 : index
    %c0_37 = arith.constant 0 : index
    %c0_38 = arith.constant 0 : index
    %69 = vector.load %arg10[%c0_36, %c0_37, %c0_38] : memref<2x1x128xf32, #tpu.memory_space<vmem>>, vector<1x1x128xf32>
    %70 = vector.shape_cast %69 : vector<1x1x128xf32> to vector<1x128xf32>
    %cst_39 = arith.constant dense<0.000000e+00> : vector<16xf32>
    %71 = vector.multi_reduction <add>, %66, %cst_39 [1] : vector<16x128xf32> to vector<16xf32>
    %72 = vector.shape_cast %71 : vector<16xf32> to vector<16x1xf32>
    %cst_40 = arith.constant 1.280000e+02 : f32
    %73 = vector.broadcast %cst_40 : f32 to vector<16x1xf32>
    %74 = arith.divf %72, %73 : vector<16x1xf32>
    %75 = vector.broadcast %74 : vector<16x1xf32> to vector<16x128xf32>
    %76 = arith.subf %66, %75 : vector<16x128xf32>
    %77 = arith.mulf %76, %76 : vector<16x128xf32>
    %cst_41 = arith.constant dense<0.000000e+00> : vector<16xf32>
    %78 = vector.multi_reduction <add>, %77, %cst_41 [1] : vector<16x128xf32> to vector<16xf32>
    %79 = vector.shape_cast %78 : vector<16xf32> to vector<16x1xf32>
    %cst_42 = arith.constant 1.280000e+02 : f32
    %80 = vector.broadcast %cst_42 : f32 to vector<16x1xf32>
    %81 = arith.divf %79, %80 : vector<16x1xf32>
    %82 = vector.broadcast %74 : vector<16x1xf32> to vector<16x128xf32>
    %83 = arith.subf %66, %82 : vector<16x128xf32>
    %cst_43 = arith.constant 9.99999996E-13 : f32
    %84 = vector.broadcast %cst_43 : f32 to vector<16x1xf32>
    %85 = arith.addf %81, %84 : vector<16x1xf32>
    %86 = math.rsqrt %85 : vector<16x1xf32>
    %87 = vector.broadcast %86 : vector<16x1xf32> to vector<16x128xf32>
    %88 = arith.mulf %83, %87 : vector<16x128xf32>
    %89 = vector.broadcast %68 : vector<1x128xf32> to vector<16x128xf32>
    %90 = arith.mulf %88, %89 : vector<16x128xf32>
    %91 = vector.broadcast %70 : vector<1x128xf32> to vector<16x128xf32>
    %92 = arith.addf %90, %91 : vector<16x128xf32>
    %c0_44 = arith.constant 0 : index
    %c0_45 = arith.constant 0 : index
    %c0_46 = arith.constant 0 : index
    %93 = vector.load %arg11[%c0_44, %c0_45, %c0_46] : memref<2x128x256xf32, #tpu.memory_space<vmem>>, vector<1x128x256xf32>
    %94 = vector.shape_cast %93 : vector<1x128x256xf32> to vector<128x256xf32>
    %cst_47 = arith.constant dense<0.000000e+00> : vector<16x256xf32>
    %95 = tpu.matmul %92, %94, %cst_47 {dimension_numbers = #tpu.dot_dimension_numbers<[1], [0], [0], [1], [0, 0, 1, 1], [], []>} : vector<16x128xf32>, vector<128x256xf32>, vector<16x256xf32> -> vector<16x256xf32>
    %c0_48 = arith.constant 0 : index
    %c0_49 = arith.constant 0 : index
    %c0_50 = arith.constant 0 : index
    %96 = vector.load %arg12[%c0_48, %c0_49, %c0_50] : memref<2x1x256xf32, #tpu.memory_space<vmem>>, vector<1x1x256xf32>
    %97 = vector.shape_cast %96 : vector<1x1x256xf32> to vector<1x256xf32>
    %98 = vector.broadcast %97 : vector<1x256xf32> to vector<16x256xf32>
    %99 = arith.addf %95, %98 : vector<16x256xf32>
    %cst_51 = arith.constant 5.000000e-01 : f32
    %100 = vector.broadcast %cst_51 : f32 to vector<16x256xf32>
    %101 = arith.mulf %100, %99 : vector<16x256xf32>
    %cst_52 = arith.constant 0.707106769 : f32
    %102 = vector.broadcast %cst_52 : f32 to vector<16x256xf32>
    %103 = arith.mulf %99, %102 : vector<16x256xf32>
    %cst_53 = arith.constant 0.000000e+00 : f32
    %104 = vector.broadcast %cst_53 : f32 to vector<16x256xf32>
    %105 = arith.cmpf olt, %103, %104 : vector<16x256xf32>
    %cst_54 = arith.constant -1.000000e+00 : f32
    %cst_55 = arith.constant 1.000000e+00 : f32
    %106 = vector.broadcast %cst_54 : f32 to vector<16x256xf32>
    %107 = vector.broadcast %cst_55 : f32 to vector<16x256xf32>
    %108 = arith.select %105, %106, %107 : vector<16x256xi1>, vector<16x256xf32>
    %109 = math.absf %103 : vector<16x256xf32>
    %cst_56 = arith.constant 0.327591091 : f32
    %110 = vector.broadcast %cst_56 : f32 to vector<16x256xf32>
    %111 = arith.mulf %110, %109 : vector<16x256xf32>
    %cst_57 = arith.constant 1.000000e+00 : f32
    %112 = vector.broadcast %cst_57 : f32 to vector<16x256xf32>
    %113 = arith.addf %112, %111 : vector<16x256xf32>
    %cst_58 = arith.constant 1.000000e+00 : f32
    %114 = vector.broadcast %cst_58 : f32 to vector<16x256xf32>
    %115 = arith.divf %114, %113 : vector<16x256xf32>
    %cst_59 = arith.constant 1.06140542 : f32
    %116 = vector.broadcast %cst_59 : f32 to vector<16x256xf32>
    %117 = arith.mulf %116, %115 : vector<16x256xf32>
    %cst_60 = arith.constant -1.45315206 : f32
    %118 = vector.broadcast %cst_60 : f32 to vector<16x256xf32>
    %119 = arith.addf %117, %118 : vector<16x256xf32>
    %120 = arith.mulf %119, %115 : vector<16x256xf32>
    %cst_61 = arith.constant 1.42141378 : f32
    %121 = vector.broadcast %cst_61 : f32 to vector<16x256xf32>
    %122 = arith.addf %120, %121 : vector<16x256xf32>
    %123 = arith.mulf %122, %115 : vector<16x256xf32>
    %cst_62 = arith.constant -0.284496725 : f32
    %124 = vector.broadcast %cst_62 : f32 to vector<16x256xf32>
    %125 = arith.addf %123, %124 : vector<16x256xf32>
    %126 = arith.mulf %125, %115 : vector<16x256xf32>
    %cst_63 = arith.constant 0.254829586 : f32
    %127 = vector.broadcast %cst_63 : f32 to vector<16x256xf32>
    %128 = arith.addf %126, %127 : vector<16x256xf32>
    %129 = arith.mulf %128, %115 : vector<16x256xf32>
    %cst_64 = arith.constant 0.000000e+00 : f32
    %130 = vector.broadcast %cst_64 : f32 to vector<16x256xf32>
    %131 = arith.subf %130, %109 : vector<16x256xf32>
    %132 = arith.mulf %131, %109 : vector<16x256xf32>
    %133 = math.exp %132 : vector<16x256xf32>
    %134 = arith.mulf %129, %133 : vector<16x256xf32>
    %cst_65 = arith.constant 1.000000e+00 : f32
    %135 = vector.broadcast %cst_65 : f32 to vector<16x256xf32>
    %136 = arith.subf %135, %134 : vector<16x256xf32>
    %137 = arith.mulf %108, %136 : vector<16x256xf32>
    %cst_66 = arith.constant 1.000000e+00 : f32
    %138 = vector.broadcast %cst_66 : f32 to vector<16x256xf32>
    %139 = arith.addf %138, %137 : vector<16x256xf32>
    %140 = arith.mulf %101, %139 : vector<16x256xf32>
    %c0_67 = arith.constant 0 : index
    %c0_68 = arith.constant 0 : index
    %c0_69 = arith.constant 0 : index
    %141 = vector.load %arg13[%c0_67, %c0_68, %c0_69] : memref<2x256x128xf32, #tpu.memory_space<vmem>>, vector<1x256x128xf32>
    %142 = vector.shape_cast %141 : vector<1x256x128xf32> to vector<256x128xf32>
    %cst_70 = arith.constant dense<0.000000e+00> : vector<16x128xf32>
    %143 = tpu.matmul %140, %142, %cst_70 {dimension_numbers = #tpu.dot_dimension_numbers<[1], [0], [0], [1], [0, 0, 1, 1], [], []>} : vector<16x256xf32>, vector<256x128xf32>, vector<16x128xf32> -> vector<16x128xf32>
    %c0_71 = arith.constant 0 : index
    %c0_72 = arith.constant 0 : index
    %c0_73 = arith.constant 0 : index
    %144 = vector.load %arg14[%c0_71, %c0_72, %c0_73] : memref<2x1x128xf32, #tpu.memory_space<vmem>>, vector<1x1x128xf32>
    %145 = vector.shape_cast %144 : vector<1x1x128xf32> to vector<1x128xf32>
    %146 = vector.broadcast %145 : vector<1x128xf32> to vector<16x128xf32>
    %147 = arith.addf %143, %146 : vector<16x128xf32>
    %148 = arith.addf %147, %92 : vector<16x128xf32>
    %c0_74 = arith.constant 0 : index
    %c0_75 = arith.constant 0 : index
    %c0_76 = arith.constant 0 : index
    %149 = vector.load %arg15[%c0_74, %c0_75, %c0_76] : memref<2x1x128xf32, #tpu.memory_space<vmem>>, vector<1x1x128xf32>
    %150 = vector.shape_cast %149 : vector<1x1x128xf32> to vector<1x128xf32>
    %c0_77 = arith.constant 0 : index
    %c0_78 = arith.constant 0 : index
    %c0_79 = arith.constant 0 : index
    %151 = vector.load %arg16[%c0_77, %c0_78, %c0_79] : memref<2x1x128xf32, #tpu.memory_space<vmem>>, vector<1x1x128xf32>
    %152 = vector.shape_cast %151 : vector<1x1x128xf32> to vector<1x128xf32>
    %cst_80 = arith.constant dense<0.000000e+00> : vector<16xf32>
    %153 = vector.multi_reduction <add>, %148, %cst_80 [1] : vector<16x128xf32> to vector<16xf32>
    %154 = vector.shape_cast %153 : vector<16xf32> to vector<16x1xf32>
    %cst_81 = arith.constant 1.280000e+02 : f32
    %155 = vector.broadcast %cst_81 : f32 to vector<16x1xf32>
    %156 = arith.divf %154, %155 : vector<16x1xf32>
    %157 = vector.broadcast %156 : vector<16x1xf32> to vector<16x128xf32>
    %158 = arith.subf %148, %157 : vector<16x128xf32>
    %159 = arith.mulf %158, %158 : vector<16x128xf32>
    %cst_82 = arith.constant dense<0.000000e+00> : vector<16xf32>
    %160 = vector.multi_reduction <add>, %159, %cst_82 [1] : vector<16x128xf32> to vector<16xf32>
    %161 = vector.shape_cast %160 : vector<16xf32> to vector<16x1xf32>
    %cst_83 = arith.constant 1.280000e+02 : f32
    %162 = vector.broadcast %cst_83 : f32 to vector<16x1xf32>
    %163 = arith.divf %161, %162 : vector<16x1xf32>
    %164 = vector.broadcast %156 : vector<16x1xf32> to vector<16x128xf32>
    %165 = arith.subf %148, %164 : vector<16x128xf32>
    %cst_84 = arith.constant 9.99999996E-13 : f32
    %166 = vector.broadcast %cst_84 : f32 to vector<16x1xf32>
    %167 = arith.addf %163, %166 : vector<16x1xf32>
    %168 = math.rsqrt %167 : vector<16x1xf32>
    %169 = vector.broadcast %168 : vector<16x1xf32> to vector<16x128xf32>
    %170 = arith.mulf %165, %169 : vector<16x128xf32>
    %171 = vector.broadcast %150 : vector<1x128xf32> to vector<16x128xf32>
    %172 = arith.mulf %170, %171 : vector<16x128xf32>
    %173 = vector.broadcast %152 : vector<1x128xf32> to vector<16x128xf32>
    %174 = arith.addf %172, %173 : vector<16x128xf32>
    %c1 = arith.constant 1 : index
    %c0_85 = arith.constant 0 : index
    %c0_86 = arith.constant 0 : index
    %175 = vector.load %arg5[%c1, %c0_85, %c0_86] : memref<2x128x384xf32, #tpu.memory_space<vmem>>, vector<1x128x384xf32>
    %176 = vector.shape_cast %175 : vector<1x128x384xf32> to vector<128x384xf32>
    %cst_87 = arith.constant dense<0.000000e+00> : vector<16x384xf32>
    %177 = tpu.matmul %174, %176, %cst_87 {dimension_numbers = #tpu.dot_dimension_numbers<[1], [0], [0], [1], [0, 0, 1, 1], [], []>} : vector<16x128xf32>, vector<128x384xf32>, vector<16x384xf32> -> vector<16x384xf32>
    %c1_88 = arith.constant 1 : index
    %c0_89 = arith.constant 0 : index
    %c0_90 = arith.constant 0 : index
    %178 = vector.load %arg6[%c1_88, %c0_89, %c0_90] : memref<2x1x384xf32, #tpu.memory_space<vmem>>, vector<1x1x384xf32>
    %179 = vector.shape_cast %178 : vector<1x1x384xf32> to vector<1x384xf32>
    %180 = vector.broadcast %179 : vector<1x384xf32> to vector<16x384xf32>
    %181 = arith.addf %177, %180 : vector<16x384xf32>
    %182 = vector.extract_strided_slice %181 {offsets = [0, 0], sizes = [16, 128], strides = [1, 1]} : vector<16x384xf32> to vector<16x128xf32>
    %183 = vector.extract_strided_slice %181 {offsets = [0, 128], sizes = [16, 128], strides = [1, 1]} : vector<16x384xf32> to vector<16x128xf32>
    %184 = vector.extract_strided_slice %181 {offsets = [0, 256], sizes = [16, 128], strides = [1, 1]} : vector<16x384xf32> to vector<16x128xf32>
    %185 = vector.extract_strided_slice %183 {offsets = [0, 0], sizes = [8, 128], strides = [1, 1]} : vector<16x128xf32> to vector<8x128xf32>
    %186 = vector.extract_strided_slice %183 {offsets = [8, 0], sizes = [8, 128], strides = [1, 1]} : vector<16x128xf32> to vector<8x128xf32>
    %187 = tpu.concatenate %185, %185, %185, %185, %186, %186, %186, %186 in 0 : vector<8x128xf32>, vector<8x128xf32>, vector<8x128xf32>, vector<8x128xf32>, vector<8x128xf32>, vector<8x128xf32>, vector<8x128xf32>, vector<8x128xf32> -> vector<64x128xf32>
    %188 = arith.mulf %187, %0 : vector<64x128xf32>
    %189 = vector.extract_strided_slice %184 {offsets = [0, 0], sizes = [8, 128], strides = [1, 1]} : vector<16x128xf32> to vector<8x128xf32>
    %190 = vector.extract_strided_slice %184 {offsets = [8, 0], sizes = [8, 128], strides = [1, 1]} : vector<16x128xf32> to vector<8x128xf32>
    %191 = tpu.concatenate %189, %189, %189, %189, %190, %190, %190, %190 in 0 : vector<8x128xf32>, vector<8x128xf32>, vector<8x128xf32>, vector<8x128xf32>, vector<8x128xf32>, vector<8x128xf32>, vector<8x128xf32>, vector<8x128xf32> -> vector<64x128xf32>
    %192 = arith.mulf %191, %0 : vector<64x128xf32>
    %cst_91 = arith.constant dense<0.000000e+00> : vector<16x64xf32>
    %193 = tpu.matmul %182, %188, %cst_91 {dimension_numbers = #tpu.dot_dimension_numbers<[1], [1], [0], [0], [0, 0, 1, 0], [], []>} : vector<16x128xf32>, vector<64x128xf32>, vector<16x64xf32> -> vector<16x64xf32>
    %cst_92 = arith.constant 0.176776692 : f32
    %194 = vector.broadcast %cst_92 : f32 to vector<16x64xf32>
    %195 = arith.mulf %193, %194 : vector<16x64xf32>
    %196 = arith.addf %195, %1 : vector<16x64xf32>
    %cst_93 = arith.constant dense<0xFF800000> : vector<16xf32>
    %197 = vector.multi_reduction <maximumf>, %196, %cst_93 [1] : vector<16x64xf32> to vector<16xf32>
    %198 = vector.shape_cast %197 : vector<16xf32> to vector<16x1xf32>
    %199 = vector.broadcast %198 : vector<16x1xf32> to vector<16x64xf32>
    %200 = arith.subf %196, %199 : vector<16x64xf32>
    %201 = math.exp %200 : vector<16x64xf32>
    %cst_94 = arith.constant dense<0.000000e+00> : vector<16x128xf32>
    %202 = tpu.matmul %201, %192, %cst_94 {dimension_numbers = #tpu.dot_dimension_numbers<[1], [0], [0], [1], [0, 0, 1, 1], [], []>} : vector<16x64xf32>, vector<64x128xf32>, vector<16x128xf32> -> vector<16x128xf32>
    %cst_95 = arith.constant dense<0.000000e+00> : vector<16x128xf32>
    %203 = tpu.matmul %201, %0, %cst_95 {dimension_numbers = #tpu.dot_dimension_numbers<[1], [0], [0], [1], [0, 0, 1, 1], [], []>} : vector<16x64xf32>, vector<64x128xf32>, vector<16x128xf32> -> vector<16x128xf32>
    %cst_96 = arith.constant 1.000000e-30 : f32
    %204 = vector.broadcast %cst_96 : f32 to vector<16x128xf32>
    %205 = arith.maximumf %203, %204 : vector<16x128xf32>
    %206 = arith.divf %202, %205 : vector<16x128xf32>
    %c1_97 = arith.constant 1 : index
    %c0_98 = arith.constant 0 : index
    %c0_99 = arith.constant 0 : index
    %207 = vector.load %arg7[%c1_97, %c0_98, %c0_99] : memref<2x128x128xf32, #tpu.memory_space<vmem>>, vector<1x128x128xf32>
    %208 = vector.shape_cast %207 : vector<1x128x128xf32> to vector<128x128xf32>
    %cst_100 = arith.constant dense<0.000000e+00> : vector<16x128xf32>
    %209 = tpu.matmul %206, %208, %cst_100 {dimension_numbers = #tpu.dot_dimension_numbers<[1], [0], [0], [1], [0, 0, 1, 1], [], []>} : vector<16x128xf32>, vector<128x128xf32>, vector<16x128xf32> -> vector<16x128xf32>
    %c1_101 = arith.constant 1 : index
    %c0_102 = arith.constant 0 : index
    %c0_103 = arith.constant 0 : index
    %210 = vector.load %arg8[%c1_101, %c0_102, %c0_103] : memref<2x1x128xf32, #tpu.memory_space<vmem>>, vector<1x1x128xf32>
    %211 = vector.shape_cast %210 : vector<1x1x128xf32> to vector<1x128xf32>
    %212 = vector.broadcast %211 : vector<1x128xf32> to vector<16x128xf32>
    %213 = arith.addf %209, %212 : vector<16x128xf32>
    %214 = arith.addf %213, %174 : vector<16x128xf32>
    %c1_104 = arith.constant 1 : index
    %c0_105 = arith.constant 0 : index
    %c0_106 = arith.constant 0 : index
    %215 = vector.load %arg9[%c1_104, %c0_105, %c0_106] : memref<2x1x128xf32, #tpu.memory_space<vmem>>, vector<1x1x128xf32>
    %216 = vector.shape_cast %215 : vector<1x1x128xf32> to vector<1x128xf32>
    %c1_107 = arith.constant 1 : index
    %c0_108 = arith.constant 0 : index
    %c0_109 = arith.constant 0 : index
    %217 = vector.load %arg10[%c1_107, %c0_108, %c0_109] : memref<2x1x128xf32, #tpu.memory_space<vmem>>, vector<1x1x128xf32>
    %218 = vector.shape_cast %217 : vector<1x1x128xf32> to vector<1x128xf32>
    %cst_110 = arith.constant dense<0.000000e+00> : vector<16xf32>
    %219 = vector.multi_reduction <add>, %214, %cst_110 [1] : vector<16x128xf32> to vector<16xf32>
    %220 = vector.shape_cast %219 : vector<16xf32> to vector<16x1xf32>
    %cst_111 = arith.constant 1.280000e+02 : f32
    %221 = vector.broadcast %cst_111 : f32 to vector<16x1xf32>
    %222 = arith.divf %220, %221 : vector<16x1xf32>
    %223 = vector.broadcast %222 : vector<16x1xf32> to vector<16x128xf32>
    %224 = arith.subf %214, %223 : vector<16x128xf32>
    %225 = arith.mulf %224, %224 : vector<16x128xf32>
    %cst_112 = arith.constant dense<0.000000e+00> : vector<16xf32>
    %226 = vector.multi_reduction <add>, %225, %cst_112 [1] : vector<16x128xf32> to vector<16xf32>
    %227 = vector.shape_cast %226 : vector<16xf32> to vector<16x1xf32>
    %cst_113 = arith.constant 1.280000e+02 : f32
    %228 = vector.broadcast %cst_113 : f32 to vector<16x1xf32>
    %229 = arith.divf %227, %228 : vector<16x1xf32>
    %230 = vector.broadcast %222 : vector<16x1xf32> to vector<16x128xf32>
    %231 = arith.subf %214, %230 : vector<16x128xf32>
    %cst_114 = arith.constant 9.99999996E-13 : f32
    %232 = vector.broadcast %cst_114 : f32 to vector<16x1xf32>
    %233 = arith.addf %229, %232 : vector<16x1xf32>
    %234 = math.rsqrt %233 : vector<16x1xf32>
    %235 = vector.broadcast %234 : vector<16x1xf32> to vector<16x128xf32>
    %236 = arith.mulf %231, %235 : vector<16x128xf32>
    %237 = vector.broadcast %216 : vector<1x128xf32> to vector<16x128xf32>
    %238 = arith.mulf %236, %237 : vector<16x128xf32>
    %239 = vector.broadcast %218 : vector<1x128xf32> to vector<16x128xf32>
    %240 = arith.addf %238, %239 : vector<16x128xf32>
    %c1_115 = arith.constant 1 : index
    %c0_116 = arith.constant 0 : index
    %c0_117 = arith.constant 0 : index
    %241 = vector.load %arg11[%c1_115, %c0_116, %c0_117] : memref<2x128x256xf32, #tpu.memory_space<vmem>>, vector<1x128x256xf32>
    %242 = vector.shape_cast %241 : vector<1x128x256xf32> to vector<128x256xf32>
    %cst_118 = arith.constant dense<0.000000e+00> : vector<16x256xf32>
    %243 = tpu.matmul %240, %242, %cst_118 {dimension_numbers = #tpu.dot_dimension_numbers<[1], [0], [0], [1], [0, 0, 1, 1], [], []>} : vector<16x128xf32>, vector<128x256xf32>, vector<16x256xf32> -> vector<16x256xf32>
    %c1_119 = arith.constant 1 : index
    %c0_120 = arith.constant 0 : index
    %c0_121 = arith.constant 0 : index
    %244 = vector.load %arg12[%c1_119, %c0_120, %c0_121] : memref<2x1x256xf32, #tpu.memory_space<vmem>>, vector<1x1x256xf32>
    %245 = vector.shape_cast %244 : vector<1x1x256xf32> to vector<1x256xf32>
    %246 = vector.broadcast %245 : vector<1x256xf32> to vector<16x256xf32>
    %247 = arith.addf %243, %246 : vector<16x256xf32>
    %cst_122 = arith.constant 5.000000e-01 : f32
    %248 = vector.broadcast %cst_122 : f32 to vector<16x256xf32>
    %249 = arith.mulf %248, %247 : vector<16x256xf32>
    %cst_123 = arith.constant 0.707106769 : f32
    %250 = vector.broadcast %cst_123 : f32 to vector<16x256xf32>
    %251 = arith.mulf %247, %250 : vector<16x256xf32>
    %cst_124 = arith.constant 0.000000e+00 : f32
    %252 = vector.broadcast %cst_124 : f32 to vector<16x256xf32>
    %253 = arith.cmpf olt, %251, %252 : vector<16x256xf32>
    %cst_125 = arith.constant -1.000000e+00 : f32
    %cst_126 = arith.constant 1.000000e+00 : f32
    %254 = vector.broadcast %cst_125 : f32 to vector<16x256xf32>
    %255 = vector.broadcast %cst_126 : f32 to vector<16x256xf32>
    %256 = arith.select %253, %254, %255 : vector<16x256xi1>, vector<16x256xf32>
    %257 = math.absf %251 : vector<16x256xf32>
    %cst_127 = arith.constant 0.327591091 : f32
    %258 = vector.broadcast %cst_127 : f32 to vector<16x256xf32>
    %259 = arith.mulf %258, %257 : vector<16x256xf32>
    %cst_128 = arith.constant 1.000000e+00 : f32
    %260 = vector.broadcast %cst_128 : f32 to vector<16x256xf32>
    %261 = arith.addf %260, %259 : vector<16x256xf32>
    %cst_129 = arith.constant 1.000000e+00 : f32
    %262 = vector.broadcast %cst_129 : f32 to vector<16x256xf32>
    %263 = arith.divf %262, %261 : vector<16x256xf32>
    %cst_130 = arith.constant 1.06140542 : f32
    %264 = vector.broadcast %cst_130 : f32 to vector<16x256xf32>
    %265 = arith.mulf %264, %263 : vector<16x256xf32>
    %cst_131 = arith.constant -1.45315206 : f32
    %266 = vector.broadcast %cst_131 : f32 to vector<16x256xf32>
    %267 = arith.addf %265, %266 : vector<16x256xf32>
    %268 = arith.mulf %267, %263 : vector<16x256xf32>
    %cst_132 = arith.constant 1.42141378 : f32
    %269 = vector.broadcast %cst_132 : f32 to vector<16x256xf32>
    %270 = arith.addf %268, %269 : vector<16x256xf32>
    %271 = arith.mulf %270, %263 : vector<16x256xf32>
    %cst_133 = arith.constant -0.284496725 : f32
    %272 = vector.broadcast %cst_133 : f32 to vector<16x256xf32>
    %273 = arith.addf %271, %272 : vector<16x256xf32>
    %274 = arith.mulf %273, %263 : vector<16x256xf32>
    %cst_134 = arith.constant 0.254829586 : f32
    %275 = vector.broadcast %cst_134 : f32 to vector<16x256xf32>
    %276 = arith.addf %274, %275 : vector<16x256xf32>
    %277 = arith.mulf %276, %263 : vector<16x256xf32>
    %cst_135 = arith.constant 0.000000e+00 : f32
    %278 = vector.broadcast %cst_135 : f32 to vector<16x256xf32>
    %279 = arith.subf %278, %257 : vector<16x256xf32>
    %280 = arith.mulf %279, %257 : vector<16x256xf32>
    %281 = math.exp %280 : vector<16x256xf32>
    %282 = arith.mulf %277, %281 : vector<16x256xf32>
    %cst_136 = arith.constant 1.000000e+00 : f32
    %283 = vector.broadcast %cst_136 : f32 to vector<16x256xf32>
    %284 = arith.subf %283, %282 : vector<16x256xf32>
    %285 = arith.mulf %256, %284 : vector<16x256xf32>
    %cst_137 = arith.constant 1.000000e+00 : f32
    %286 = vector.broadcast %cst_137 : f32 to vector<16x256xf32>
    %287 = arith.addf %286, %285 : vector<16x256xf32>
    %288 = arith.mulf %249, %287 : vector<16x256xf32>
    %c1_138 = arith.constant 1 : index
    %c0_139 = arith.constant 0 : index
    %c0_140 = arith.constant 0 : index
    %289 = vector.load %arg13[%c1_138, %c0_139, %c0_140] : memref<2x256x128xf32, #tpu.memory_space<vmem>>, vector<1x256x128xf32>
    %290 = vector.shape_cast %289 : vector<1x256x128xf32> to vector<256x128xf32>
    %cst_141 = arith.constant dense<0.000000e+00> : vector<16x128xf32>
    %291 = tpu.matmul %288, %290, %cst_141 {dimension_numbers = #tpu.dot_dimension_numbers<[1], [0], [0], [1], [0, 0, 1, 1], [], []>} : vector<16x256xf32>, vector<256x128xf32>, vector<16x128xf32> -> vector<16x128xf32>
    %c1_142 = arith.constant 1 : index
    %c0_143 = arith.constant 0 : index
    %c0_144 = arith.constant 0 : index
    %292 = vector.load %arg14[%c1_142, %c0_143, %c0_144] : memref<2x1x128xf32, #tpu.memory_space<vmem>>, vector<1x1x128xf32>
    %293 = vector.shape_cast %292 : vector<1x1x128xf32> to vector<1x128xf32>
    %294 = vector.broadcast %293 : vector<1x128xf32> to vector<16x128xf32>
    %295 = arith.addf %291, %294 : vector<16x128xf32>
    %296 = arith.addf %295, %240 : vector<16x128xf32>
    %c1_145 = arith.constant 1 : index
    %c0_146 = arith.constant 0 : index
    %c0_147 = arith.constant 0 : index
    %297 = vector.load %arg15[%c1_145, %c0_146, %c0_147] : memref<2x1x128xf32, #tpu.memory_space<vmem>>, vector<1x1x128xf32>
    %298 = vector.shape_cast %297 : vector<1x1x128xf32> to vector<1x128xf32>
    %c1_148 = arith.constant 1 : index
    %c0_149 = arith.constant 0 : index
    %c0_150 = arith.constant 0 : index
    %299 = vector.load %arg16[%c1_148, %c0_149, %c0_150] : memref<2x1x128xf32, #tpu.memory_space<vmem>>, vector<1x1x128xf32>
    %300 = vector.shape_cast %299 : vector<1x1x128xf32> to vector<1x128xf32>
    %cst_151 = arith.constant dense<0.000000e+00> : vector<16xf32>
    %301 = vector.multi_reduction <add>, %296, %cst_151 [1] : vector<16x128xf32> to vector<16xf32>
    %302 = vector.shape_cast %301 : vector<16xf32> to vector<16x1xf32>
    %cst_152 = arith.constant 1.280000e+02 : f32
    %303 = vector.broadcast %cst_152 : f32 to vector<16x1xf32>
    %304 = arith.divf %302, %303 : vector<16x1xf32>
    %305 = vector.broadcast %304 : vector<16x1xf32> to vector<16x128xf32>
    %306 = arith.subf %296, %305 : vector<16x128xf32>
    %307 = arith.mulf %306, %306 : vector<16x128xf32>
    %cst_153 = arith.constant dense<0.000000e+00> : vector<16xf32>
    %308 = vector.multi_reduction <add>, %307, %cst_153 [1] : vector<16x128xf32> to vector<16xf32>
    %309 = vector.shape_cast %308 : vector<16xf32> to vector<16x1xf32>
    %cst_154 = arith.constant 1.280000e+02 : f32
    %310 = vector.broadcast %cst_154 : f32 to vector<16x1xf32>
    %311 = arith.divf %309, %310 : vector<16x1xf32>
    %312 = vector.broadcast %304 : vector<16x1xf32> to vector<16x128xf32>
    %313 = arith.subf %296, %312 : vector<16x128xf32>
    %cst_155 = arith.constant 9.99999996E-13 : f32
    %314 = vector.broadcast %cst_155 : f32 to vector<16x1xf32>
    %315 = arith.addf %311, %314 : vector<16x1xf32>
    %316 = math.rsqrt %315 : vector<16x1xf32>
    %317 = vector.broadcast %316 : vector<16x1xf32> to vector<16x128xf32>
    %318 = arith.mulf %313, %317 : vector<16x128xf32>
    %319 = vector.broadcast %298 : vector<1x128xf32> to vector<16x128xf32>
    %320 = arith.mulf %318, %319 : vector<16x128xf32>
    %321 = vector.broadcast %300 : vector<1x128xf32> to vector<16x128xf32>
    %322 = arith.addf %320, %321 : vector<16x128xf32>
    %c0_156 = arith.constant 0 : index
    %c0_157 = arith.constant 0 : index
    %323 = vector.load %arg17[%c0_156, %c0_157] : memref<128x128xf32, #tpu.memory_space<vmem>>, vector<128x128xf32>
    %cst_158 = arith.constant dense<0.000000e+00> : vector<16x128xf32>
    %324 = tpu.matmul %322, %323, %cst_158 {dimension_numbers = #tpu.dot_dimension_numbers<[1], [0], [0], [1], [0, 0, 1, 1], [], []>} : vector<16x128xf32>, vector<128x128xf32>, vector<16x128xf32> -> vector<16x128xf32>
    %c0_159 = arith.constant 0 : index
    %c0_160 = arith.constant 0 : index
    %325 = vector.load %arg18[%c0_159, %c0_160] : memref<1x128xf32, #tpu.memory_space<vmem>>, vector<1x128xf32>
    %326 = vector.broadcast %325 : vector<1x128xf32> to vector<16x128xf32>
    %327 = arith.addf %324, %326 : vector<16x128xf32>
    %328 = math.tanh %327 : vector<16x128xf32>
    %c0_161 = arith.constant 0 : index
    %c0_162 = arith.constant 0 : index
    %329 = vector.load %arg19[%c0_161, %c0_162] : memref<128x1xf32, #tpu.memory_space<vmem>>, vector<128x1xf32>
    %cst_163 = arith.constant dense<0.000000e+00> : vector<16x1xf32>
    %330 = tpu.matmul %328, %329, %cst_163 {dimension_numbers = #tpu.dot_dimension_numbers<[1], [0], [0], [1], [0, 0, 1, 1], [], []>} : vector<16x128xf32>, vector<128x1xf32>, vector<16x1xf32> -> vector<16x1xf32>
    %c0_164 = arith.constant 0 : index
    %c0_165 = arith.constant 0 : index
    %331 = vector.load %arg20[%c0_164, %c0_165] : memref<1x1xf32, #tpu.memory_space<vmem>>, vector<1x1xf32>
    %332 = vector.broadcast %331 : vector<1x1xf32> to vector<16x1xf32>
    %333 = arith.addf %330, %332 : vector<16x1xf32>
    %cst_166 = arith.constant 0.000000e+00 : f32
    %334 = vector.broadcast %cst_166 : f32 to vector<16x1xf32>
    %335 = arith.cmpf oge, %333, %334 : vector<16x1xf32>
    %cst_167 = arith.constant 0.00999999977 : f32
    %336 = vector.broadcast %cst_167 : f32 to vector<16x1xf32>
    %337 = arith.mulf %336, %333 : vector<16x1xf32>
    %338 = arith.select %335, %333, %337 : vector<16x1xi1>, vector<16x1xf32>
    %c0_168 = arith.constant 0 : index
    %c0_169 = arith.constant 0 : index
    %339 = vector.load %arg21[%c0_168, %c0_169] : memref<16x128xf32, #tpu.memory_space<vmem>>, vector<16x128xf32>
    tpu.vector_store %arg21[%c0_168, %c0_169], %322 {strides = array<i32>} : memref<16x128xf32, #tpu.memory_space<vmem>>, vector<16x128xf32>,
    %c0_170 = arith.constant 0 : index
    %c0_171 = arith.constant 0 : index
    %340 = vector.load %arg22[%c0_170, %c0_171] : memref<16x128xf32, #tpu.memory_space<vmem>>, vector<16x128xf32>
    tpu.vector_store %arg22[%c0_170, %c0_171], %328 {strides = array<i32>} : memref<16x128xf32, #tpu.memory_space<vmem>>, vector<16x128xf32>,
    %c0_172 = arith.constant 0 : index
    %c0_173 = arith.constant 0 : index
    %341 = vector.load %arg23[%c0_172, %c0_173] : memref<16x1xf32, #tpu.memory_space<vmem>>, vector<16x1xf32>
    tpu.vector_store %arg23[%c0_172, %c0_173], %338 {strides = array<i32>} : memref<16x1xf32, #tpu.memory_space<vmem>>, vector<16x1xf32>,
    return
  }
}

</mosaic_0001>

<bundles_post_ra>
// kernel: transformer_block_forward.1
= control target key start
LH: loop header
LB: loop body
LE: loop exit
PB: predicated region body
PF: predicated region fallthrough
CT: control target
= control target key end

     0   :  { %s5008_s0 = inlined_call_operand.vmem [shape: f32[16,128], index: 0, kind: input, shape index: {}]   ;;  %s5009_s1 = inlined_call_operand.vmem [shape: f32[64,128], index: 1, kind: input, shape index: {}]   ;;  %s5010_s2 = inlined_call_operand.vmem [shape: f32[16,64], index: 2, kind: input, shape index: {}]   ;;  %s5011_s3 = inlined_call_operand.vmem [shape: f32[1,128], index: 3, kind: input, shape index: {}]   ;;  %s5012_s4 = inlined_call_operand.hbm [shape: f32[1,128], index: 4, kind: input, shape index: {}]   ;;  %s5013_s5 = inlined_call_operand.hbm [shape: f32[2,128,384], index: 5, kind: input, shape index: {}]   ;;  %s5014_s6 = inlined_call_operand.hbm [shape: f32[2,1,384], index: 6, kind: input, shape index: {}]   ;;  %s5015_s7 = inlined_call_operand.hbm [shape: f32[2,128,128], index: 7, kind: input, shape index: {}]   ;;  %s5016_s8 = inlined_call_operand.vmem [shape: f32[2,1,128], index: 8, kind: input, shape index: {}]   ;;  %s5017_s9 = inlined_call_operand.hbm [shape: f32[2,1,128], index: 9, kind: input, shape index: {}]   ;;  %s5018_s10 = inlined_call_operand.hbm [shape: f32[2,1,128], index: 10, kind: input, shape index: {}]   ;;  %s5019_s11 = inlined_call_operand.vmem [shape: f32[2,128,256], index: 11, kind: input, shape index: {}]   ;;  %s5020_s12 = inlined_call_operand.hbm [shape: f32[2,1,256], index: 12, kind: input, shape index: {}]   ;;  %s5021_s13 = inlined_call_operand.hbm [shape: f32[2,256,128], index: 13, kind: input, shape index: {}]   ;;  %s5022_s14 = inlined_call_operand.hbm [shape: f32[2,1,128], index: 14, kind: input, shape index: {}]   ;;  %s5023_s15 = inlined_call_operand.hbm [shape: f32[2,1,128], index: 15, kind: input, shape index: {}]   ;;  %s5024_s16 = inlined_call_operand.hbm [shape: f32[2,1,128], index: 16, kind: input, shape index: {}]   ;;  %s5025_s17 = inlined_call_operand.hbm [shape: f32[128,128], index: 17, kind: input, shape index: {}]   ;;  %s5026_s18 = inlined_call_operand.hbm [shape: f32[1,128], index: 18, kind: input, shape index: {}]   ;;  %s5027_s19 = inlined_call_operand.vmem [shape: f32[128,1], index: 19, kind: input, shape index: {}]   ;;  %s5028_s20 = inlined_call_operand.<no memory space> [shape: f32[1,1], index: 20, kind: input, shape index: {}]   ;;  %s5029_s21 = inlined_call_operand.vmem [shape: f32[16,128], index: 21, kind: output, shape index: {0}]   ;;  %s5030_s22 = inlined_call_operand.vmem [shape: f32[16,128], index: 22, kind: output, shape index: {1}]   ;;  %s5031_s23 = inlined_call_operand.vmem [shape: f32[16,1], index: 23, kind: output, shape index: {2}]  }
   0x1   :  { %5040 = sst [smem:[#allocation30_spill]] %s5008_s0  ;;  %v29_v0 = vstv %s5028_s20 }
   0x2   :  { %5041 = sst [smem:[#allocation31_spill]] %s5009_s1  ;;  %30 = vst [vmem:[#allocation2] sm:$0x1] %v29_v0 }
   0x3   :  { %5042 = sst [smem:[#allocation32_spill]] %s5010_s2 }
   0x4   :  { %5043 = sst [smem:[#allocation33_spill]] %s5011_s3 }
   0x5   :  { %5044 = sst [smem:[#allocation34_spill]] %s5012_s4 }
   0x6   :  { %5045 = sst [smem:[#allocation35_spill]] %s5013_s5 }
   0x7   :  { %5046 = sst [smem:[#allocation36_spill]] %s5014_s6 }
   0x8   :  { %5047 = sst [smem:[#allocation37_spill]] %s5015_s7 }
   0x9   :  { %5048 = sst [smem:[#allocation38_spill]] %s5031_s23 }
   0xa   :  { %31 = vsyncpa [#allocation4], 0 }
   0xb   :  { %32 = vsyncpa [#allocation6], 0 }
   0xc   :  { %33 = vsyncpa [#allocation9], 0 }
   0xd   :  { %34 = vsyncpa [#allocation12], 0 }
   0xe   :  { %35 = vsyncpa [#allocation15], 0 }
   0xf   :  { %36 = vsyncpa [#allocation18], 0 }
  0x10   :  { %37 = vsyncpa [#allocation21], 0  ;;  %s4075_s24 = smov [#allocation5]   ;;  %s5049_s26 = sld [smem:[#allocation35_spill]] }
  0x11   :  { %s61_s25 = sshll.u32 %s4075_s24, 4  ;;  %s62_s25 = int_to_ptr.vmem [resolvable:$true] %s61_s25 }
  0x16   :  { %s3775_s2 = scalar_lea.hbm %s5049_s26, 12288 }
  0x17   :  { %p3776_p0 = scmp.ne.s32.totalorder %s5049_s26, %s3775_s2  ;;  %p3779_p1 = scmp.lt.u32.totalorder %s3775_s2, %s5049_s26 }
  0x19   :  { %p3781_p2 = pnand %p3779_p1, %p3776_p0 }
  0x1b   :  { %3784 = shalt.err (!%p3781_p2)
}
  0x1c   :  { %s3785_s28 = scalar_lea.vmem %s62_s25, 12288  ;;  %p3790_p4 = scmp.lt.s32.totalorder %s62_s25, %s62_s25 }
  0x1d   :  { %p3786_p3 = scmp.ne.s32.totalorder %s62_s25, %s3785_s28  ;;  %p3791_p5 = scmp.lt.s32.totalorder %s3785_s28, %s3785_s28 }
  0x1f   :  { %p3792_p6 = por %p3791_p5, %p3790_p4 }
  0x21   :  { %p3793_p7 = pnand %p3792_p6, %p3786_p3 }
  0x23   :  { %3796 = shalt.err (!%p3793_p7)
}
  0x24   :  { %s4076_s29 = smov 384   ;;  %s4077_s3 = smov 24  }
  0x25   :  { %67 = dma.hbm_to_vmem [thread:$0]  %s5049_s26, 12288, %s62_s25, [#allocation6], %s4076_s29, %s4076_s29, %s4077_s3  }
  0x26   :  { %s4078_s30 = smov [#allocation8]   ;;  %s5050_s2 = sld [smem:[#allocation37_spill]] }
  0x27   :  { %s85_s24 = sshll.u32 %s4078_s30, 4  ;;  %s86_s24 = int_to_ptr.vmem [resolvable:$true] %s85_s24 }
  0x2c   :  { %s3797_s6 = scalar_lea.hbm %s5050_s2, 4096 }
  0x2d   :  { %p3798_p8 = scmp.ne.s32.totalorder %s5050_s2, %s3797_s6  ;;  %p3801_p9 = scmp.lt.u32.totalorder %s3797_s6, %s5050_s2 }
  0x2f   :  { %p3803_p10 = pnand %p3801_p9, %p3798_p8 }
  0x31   :  { %3806 = shalt.err (!%p3803_p10)
}
  0x32   :  { %s3807_s23 = scalar_lea.vmem %s86_s24, 4096  ;;  %p3812_p12 = scmp.lt.s32.totalorder %s86_s24, %s86_s24 }
  0x33   :  { %p3808_p11 = scmp.ne.s32.totalorder %s86_s24, %s3807_s23  ;;  %p3813_p13 = scmp.lt.s32.totalorder %s3807_s23, %s3807_s23 }
  0x35   :  { %p3814_p0 = por %p3813_p13, %p3812_p12 }
  0x37   :  { %p3815_p1 = pnand %p3814_p0, %p3808_p11 }
  0x39   :  { %3818 = shalt.err (!%p3815_p1)
}
  0x3a   :  { %s4079_s25 = smov 128   ;;  %s4080_s26 = smov 8  }
  0x3b   :  { %91 = dma.hbm_to_vmem [thread:$0]  %s5050_s2, 4096, %s86_s24, [#allocation9], %s4079_s25, %s4079_s25, %s4080_s26  }
  0x3c   :  { %s4081_s0 = smov [#allocation11]   ;;  %s4082_s30 = smov [#allocation14]  }
  0x3d   :  { %s111_s4 = sshll.u32 %s4081_s0, 4  ;;  %s137_s5 = sshll.u32 %s4082_s30, 4  ;;  %s112_s4 = int_to_ptr.vmem [resolvable:$true] %s111_s4  ;;  %s4250_s5 = int_to_ptr.vmem [resolvable:$true] %s137_s5 }
  0x3e   :  { %s3819_s6 = scalar_lea.hbm %s5018_s10, 32 }
  0x3f   :  { %p3820_p2 = scmp.ne.s32.totalorder %s5018_s10, %s3819_s6  ;;  %p3823_p3 = scmp.lt.u32.totalorder %s3819_s6, %s5018_s10 }
  0x41   :  { %p3825_p4 = pnand %p3823_p3, %p3820_p2 }
  0x43   :  { %3828 = shalt.err (!%p3825_p4)
}
  0x44   :  { %s3829_s24 = scalar_lea.vmem %s112_s4, 32  ;;  %p3834_p6 = scmp.lt.s32.totalorder %s112_s4, %s112_s4 }
  0x45   :  { %p3830_p5 = scmp.ne.s32.totalorder %s112_s4, %s3829_s24  ;;  %p3835_p7 = scmp.lt.s32.totalorder %s3829_s24, %s3829_s24 }
  0x47   :  { %p3836_p8 = por %p3835_p7, %p3834_p6 }
  0x49   :  { %p3837_p9 = pnand %p3836_p8, %p3830_p5 }
  0x4b   :  { %3840 = shalt.err (!%p3837_p9)
}
  0x4c   :  { %s4083_s2 = smov 16   ;;  %s4084_s29 = smov 1  }
  0x4d   :  { %117 = dma.hbm_to_vmem [thread:$0]  %s5018_s10, 32, %s112_s4, [#allocation12], %s4083_s2, %s4083_s2, %s4084_s29  }
  0x4e   :  { %s3841_s1 = scalar_lea.hbm %s5021_s13, 8192 }
  0x4f   :  { %p3842_p10 = scmp.ne.s32.totalorder %s5021_s13, %s3841_s1  ;;  %p3845_p11 = scmp.lt.u32.totalorder %s3841_s1, %s5021_s13 }
  0x51   :  { %p3847_p12 = pnand %p3845_p11, %p3842_p10 }
  0x53   :  { %3850 = shalt.err (!%p3847_p12)
}
  0x54   :  { %s3851_s28 = scalar_lea.vmem %s4250_s5, 8192  ;;  %p3856_p0 = scmp.lt.s32.totalorder %s4250_s5, %s4250_s5 }
  0x55   :  { %p3852_p13 = scmp.ne.s32.totalorder %s4250_s5, %s3851_s28  ;;  %p3857_p1 = scmp.lt.s32.totalorder %s3851_s28, %s3851_s28 }
  0x57   :  { %p3858_p2 = por %p3857_p1, %p3856_p0 }
  0x59   :  { %p3859_p3 = pnand %p3858_p2, %p3852_p13 }
  0x5b   :  { %3862 = shalt.err (!%p3859_p3)
}
  0x5c   :  { %143 = dma.hbm_to_vmem [thread:$0]  %s5021_s13, 8192, %s4250_s5, [#allocation15], %s4079_s25, %s4079_s25, %s4080_s26  }
  0x5d   :  { %s4085_s24 = smov [#allocation17]   ;;  %s4086_s0 = smov [#allocation20]  }
  0x5e   :  { %s161_s3 = sshll.u32 %s4085_s24, 4  ;;  %s185_s30 = sshll.u32 %s4086_s0, 4  ;;  %s162_s3 = int_to_ptr.vmem [resolvable:$true] %s161_s3  ;;  %s4287_s30 = int_to_ptr.vmem [resolvable:$true] %s185_s30 }
  0x5f   :  { %s3863_s6 = scalar_lea.hbm %s5023_s15, 32 }
  0x60   :  { %p3864_p4 = scmp.ne.s32.totalorder %s5023_s15, %s3863_s6  ;;  %p3867_p5 = scmp.lt.u32.totalorder %s3863_s6, %s5023_s15 }
  0x62   :  { %p3869_p6 = pnand %p3867_p5, %p3864_p4 }
  0x64   :  { %3872 = shalt.err (!%p3869_p6)
}
  0x65   :  { %s3873_s13 = scalar_lea.vmem %s162_s3, 32  ;;  %p3878_p8 = scmp.lt.s32.totalorder %s162_s3, %s162_s3 }
  0x66   :  { %p3874_p7 = scmp.ne.s32.totalorder %s162_s3, %s3873_s13  ;;  %p3879_p9 = scmp.lt.s32.totalorder %s3873_s13, %s3873_s13 }
  0x68   :  { %p3880_p10 = por %p3879_p9, %p3878_p8 }
  0x6a   :  { %p3881_p11 = pnand %p3880_p10, %p3874_p7 }
  0x6c   :  { %3884 = shalt.err (!%p3881_p11)
}
  0x6d   :  { %167 = dma.hbm_to_vmem [thread:$0]  %s5023_s15, 32, %s162_s3, [#allocation18], %s4083_s2, %s4083_s2, %s4084_s29  }
  0x6e   :  { %s3885_s0 = scalar_lea.hbm %s5025_s17, 2048 }
  0x6f   :  { %p3886_p12 = scmp.ne.s32.totalorder %s5025_s17, %s3885_s0  ;;  %p3889_p13 = scmp.lt.u32.totalorder %s3885_s0, %s5025_s17 }
  0x71   :  { %p3891_p0 = pnand %p3889_p13, %p3886_p12 }
  0x73   :  { %3894 = shalt.err (!%p3891_p0)
}
  0x74   :  { %s3895_s20 = scalar_lea.vmem %s4287_s30, 2048  ;;  %p3900_p2 = scmp.lt.s32.totalorder %s4287_s30, %s4287_s30 }
  0x75   :  { %p3896_p1 = scmp.ne.s32.totalorder %s4287_s30, %s3895_s20  ;;  %p3901_p3 = scmp.lt.s32.totalorder %s3895_s20, %s3895_s20 }
  0x77   :  { %p3902_p4 = por %p3901_p3, %p3900_p2 }
  0x79   :  { %p3903_p5 = pnand %p3902_p4, %p3896_p1 }
  0x7b   :  { %3906 = shalt.err (!%p3903_p5)
}
  0x7c   :  { %191 = dma.hbm_to_vmem [thread:$0]  %s5025_s17, 2048, %s4287_s30, [#allocation21], %s4079_s25, %s4079_s25, %s4080_s26  }
  0x7d   :  { %s4087_s7 = smov [#allocation3]   ;;  %s4088_s13 = smov [#allocation7]  }
  0x7e   :  { %s52_s28 = sshll.u32 %s4087_s7, 4  ;;  %s73_s5 = sshll.u32 %s4088_s13, 4  ;;  %s53_s28 = int_to_ptr.vmem [resolvable:$true] %s52_s28  ;;  %s4324_s5 = int_to_ptr.vmem [resolvable:$true] %s73_s5 }
  0x7f   :  { %s5051_s24 = sld [smem:[#allocation34_spill]] }
  0x85   :  { %s3907_s0 = scalar_lea.hbm %s5051_s24, 16 }
  0x86   :  { %p3908_p6 = scmp.ne.s32.totalorder %s5051_s24, %s3907_s0  ;;  %p3911_p7 = scmp.lt.u32.totalorder %s3907_s0, %s5051_s24 }
  0x88   :  { %p3913_p8 = pnand %p3911_p7, %p3908_p6 }
  0x8a   :  { %3916 = shalt.err (!%p3913_p8)
}
  0x8b   :  { %s3917_s17 = scalar_lea.vmem %s53_s28, 16  ;;  %s3921_s25 = scalar_lea.vmem %s53_s28, 32 }
  0x8c   :  { %p3918_p9 = scmp.ne.s32.totalorder %s53_s28, %s3917_s17  ;;  %p3922_p10 = scmp.lt.s32.totalorder %s53_s28, %s53_s28 }
  0x8d   :  { %p3923_p11 = scmp.lt.s32.totalorder %s3921_s25, %s3917_s17 }
  0x8f   :  { %p3924_p12 = por %p3923_p11, %p3922_p10 }
  0x91   :  { %p3925_p13 = pnand %p3924_p12, %p3918_p9 }
  0x93   :  { %3928 = shalt.err (!%p3925_p13)
}
  0x94   :  { %55 = dma.hbm_to_vmem [thread:$0]  %s5051_s24, 16, %s53_s28, [#allocation4]  }
  0x95   :  { %s5052_s3 = sld [smem:[#allocation36_spill]] }
  0x9b   :  { %s3929_s7 = scalar_lea.hbm %s5052_s3, 96 }
  0x9c   :  { %p3930_p0 = scmp.ne.s32.totalorder %s5052_s3, %s3929_s7  ;;  %p3933_p1 = scmp.lt.u32.totalorder %s3929_s7, %s5052_s3 }
  0x9e   :  { %p3935_p2 = pnand %p3933_p1, %p3930_p0 }
  0xa0   :  { %3938 = shalt.err (!%p3935_p2)
}
  0xa1   :  { %s3939_s23 = scalar_lea.vmem %s4324_s5, 96  ;;  %p3944_p4 = scmp.lt.s32.totalorder %s4324_s5, %s4324_s5 }
  0xa2   :  { %p3940_p3 = scmp.ne.s32.totalorder %s4324_s5, %s3939_s23  ;;  %p3945_p5 = scmp.lt.s32.totalorder %s3939_s23, %s3939_s23 }
  0xa4   :  { %p3946_p6 = por %p3945_p5, %p3944_p4 }
  0xa6   :  { %p3947_p7 = pnand %p3946_p6, %p3940_p3 }
  0xa8   :  { %3950 = shalt.err (!%p3947_p7)
}
  0xa9   :  { %s4089_s28 = smov 48   ;;  %s4090_s24 = smov 3  }
  0xaa   :  { %79 = dma.hbm_to_vmem [thread:$0]  %s5052_s3, 96, %s4324_s5, [#allocation6], %s4089_s28, %s4089_s28, %s4090_s24  }
  0xab   :  { %s4091_s27 = smov [#allocation10]   ;;  %s4092_s25 = smov [#allocation13]  }
  0xac   :  { %s99_s17 = sshll.u32 %s4091_s27, 4  ;;  %s125_s26 = sshll.u32 %s4092_s25, 4  ;;  %s100_s17 = int_to_ptr.vmem [resolvable:$true] %s99_s17  ;;  %s4355_s26 = int_to_ptr.vmem [resolvable:$true] %s125_s26 }
  0xad   :  { %s3951_s15 = scalar_lea.hbm %s5017_s9, 32 }
  0xae   :  { %p3952_p8 = scmp.ne.s32.totalorder %s5017_s9, %s3951_s15  ;;  %p3955_p9 = scmp.lt.u32.totalorder %s3951_s15, %s5017_s9 }
  0xb0   :  { %p3957_p10 = pnand %p3955_p9, %p3952_p8 }
  0xb2   :  { %3960 = shalt.err (!%p3957_p10)
}
  0xb3   :  { %s3961_s5 = scalar_lea.vmem %s100_s17, 32  ;;  %p3966_p12 = scmp.lt.s32.totalorder %s100_s17, %s100_s17 }
  0xb4   :  { %p3962_p11 = scmp.ne.s32.totalorder %s100_s17, %s3961_s5  ;;  %p3967_p13 = scmp.lt.s32.totalorder %s3961_s5, %s3961_s5 }
  0xb6   :  { %p3968_p0 = por %p3967_p13, %p3966_p12 }
  0xb8   :  { %p3969_p1 = pnand %p3968_p0, %p3962_p11 }
  0xba   :  { %3972 = shalt.err (!%p3969_p1)
}
  0xbb   :  { %105 = dma.hbm_to_vmem [thread:$0]  %s5017_s9, 32, %s100_s17, [#allocation9], %s4083_s2, %s4083_s2, %s4084_s29  }
  0xbc   :  { %s3973_s24 = scalar_lea.hbm %s5020_s12, 64 }
  0xbd   :  { %p3974_p2 = scmp.ne.s32.totalorder %s5020_s12, %s3973_s24  ;;  %p3977_p3 = scmp.lt.u32.totalorder %s3973_s24, %s5020_s12 }
  0xbf   :  { %p3979_p4 = pnand %p3977_p3, %p3974_p2 }
  0xc1   :  { %3982 = shalt.err (!%p3979_p4)
}
  0xc2   :  { %s3983_s30 = scalar_lea.vmem %s4355_s26, 64  ;;  %p3988_p6 = scmp.lt.s32.totalorder %s4355_s26, %s4355_s26 }
  0xc3   :  { %p3984_p5 = scmp.ne.s32.totalorder %s4355_s26, %s3983_s30  ;;  %p3989_p7 = scmp.lt.s32.totalorder %s3983_s30, %s3983_s30 }
  0xc5   :  { %p3990_p8 = por %p3989_p7, %p3988_p6 }
  0xc7   :  { %p3991_p9 = pnand %p3990_p8, %p3984_p5 }
  0xc9   :  { %3994 = shalt.err (!%p3991_p9)
}
  0xca   :  { %s4093_s9 = smov 32   ;;  %s4094_s17 = smov 2  }
  0xcb   :  { %131 = dma.hbm_to_vmem [thread:$0]  %s5020_s12, 64, %s4355_s26, [#allocation12], %s4093_s9, %s4093_s9, %s4094_s17  }
  0xcc   :  { %s4095_s7 = smov [#allocation16]   ;;  %s4096_s10 = smov [#allocation19]  }
  0xcd   :  { %s149_s13 = sshll.u32 %s4095_s7, 4  ;;  %s173_s4 = sshll.u32 %s4096_s10, 4  ;;  %s150_s13 = int_to_ptr.vmem [resolvable:$true] %s149_s13  ;;  %s4389_s4 = int_to_ptr.vmem [resolvable:$true] %s173_s4 }
  0xce   :  { %s3995_s0 = scalar_lea.hbm %s5022_s14, 32 }
  0xcf   :  { %p3996_p10 = scmp.ne.s32.totalorder %s5022_s14, %s3995_s0  ;;  %p3999_p11 = scmp.lt.u32.totalorder %s3995_s0, %s5022_s14 }
  0xd1   :  { %p4001_p12 = pnand %p3999_p11, %p3996_p10 }
  0xd3   :  { %4004 = shalt.err (!%p4001_p12)
}
  0xd4   :  { %s4005_s12 = scalar_lea.vmem %s150_s13, 32  ;;  %p4010_p0 = scmp.lt.s32.totalorder %s150_s13, %s150_s13 }
  0xd5   :  { %p4006_p13 = scmp.ne.s32.totalorder %s150_s13, %s4005_s12  ;;  %p4011_p1 = scmp.lt.s32.totalorder %s4005_s12, %s4005_s12 }
  0xd7   :  { %p4012_p2 = por %p4011_p1, %p4010_p0 }
  0xd9   :  { %p4013_p3 = pnand %p4012_p2, %p4006_p13 }
  0xdb   :  { %4016 = shalt.err (!%p4013_p3)
}
  0xdc   :  { %155 = dma.hbm_to_vmem [thread:$0]  %s5022_s14, 32, %s150_s13, [#allocation15], %s4083_s2, %s4083_s2, %s4084_s29  }
  0xdd   :  { %s4017_s30 = scalar_lea.hbm %s5024_s16, 32 }
  0xde   :  { %p4018_p4 = scmp.ne.s32.totalorder %s5024_s16, %s4017_s30  ;;  %p4021_p5 = scmp.lt.u32.totalorder %s4017_s30, %s5024_s16 }
  0xe0   :  { %p4023_p6 = pnand %p4021_p5, %p4018_p4 }
  0xe2   :  { %4026 = shalt.err (!%p4023_p6)
}
  0xe3   :  { %s4027_s7 = scalar_lea.vmem %s4389_s4, 32  ;;  %p4032_p8 = scmp.lt.s32.totalorder %s4389_s4, %s4389_s4 }
  0xe4   :  { %p4028_p7 = scmp.ne.s32.totalorder %s4389_s4, %s4027_s7  ;;  %p4033_p9 = scmp.lt.s32.totalorder %s4027_s7, %s4027_s7 }
  0xe6   :  { %p4034_p10 = por %p4033_p9, %p4032_p8 }
  0xe8   :  { %p4035_p11 = pnand %p4034_p10, %p4028_p7 }
  0xea   :  { %4038 = shalt.err (!%p4035_p11)
}
  0xeb   :  { %179 = dma.hbm_to_vmem [thread:$0]  %s5024_s16, 32, %s4389_s4, [#allocation18], %s4083_s2, %s4083_s2, %s4084_s29  }
  0xec   :  { %s4097_s10 = smov [#allocation22]   ;;  %s4039_s23 = scalar_lea.hbm %s5026_s18, 16 }
  0xed   :  { %s198_s5 = sshll.u32 %s4097_s10, 4  ;;  %p4040_p12 = scmp.ne.s32.totalorder %s5026_s18, %s4039_s23  ;;  %s199_s5 = int_to_ptr.vmem [resolvable:$true] %s198_s5 }
  0xee   :  { %p4043_p13 = scmp.lt.u32.totalorder %s4039_s23, %s5026_s18 }
  0xf0   :  { %p4045_p0 = pnand %p4043_p13, %p4040_p12 }
  0xf2   :  { %4048 = shalt.err (!%p4045_p0)
}
  0xf3   :  { %s4049_s26 = scalar_lea.vmem %s199_s5, 16  ;;  %s4053_s16 = scalar_lea.vmem %s199_s5, 32 }
  0xf4   :  { %p4050_p1 = scmp.ne.s32.totalorder %s199_s5, %s4049_s26  ;;  %p4054_p2 = scmp.lt.s32.totalorder %s199_s5, %s199_s5 }
  0xf5   :  { %p4055_p3 = scmp.lt.s32.totalorder %s4053_s16, %s4049_s26 }
  0xf7   :  { %p4056_p4 = por %p4055_p3, %p4054_p2 }
  0xf9   :  { %p4057_p5 = pnand %p4056_p4, %p4050_p1 }
  0xfb   :  { %4060 = shalt.err (!%p4057_p5)
}
  0xfc   :  { %201 = dma.hbm_to_vmem [thread:$0]  %s5026_s18, 16, %s199_s5, [#allocation21]  }
  0xfd   :  { %4061 = dma.done.wait [#allocation4], 16  }
  0xfe   :  { %4062 = vsyncadd [#allocation4], 4294967280 }
  0xff   :  { %4063 = dma.done.wait [#allocation6], 12384  }
 0x100   :  { %4064 = vsyncadd [#allocation6], 4294954912 }
 0x101   :  { %4065 = dma.done.wait [#allocation9], 4128  }
 0x102   :  { %4066 = vsyncadd [#allocation9], 4294963168 }
 0x103   :  { %4067 = dma.done.wait [#allocation12], 96  }
 0x104   :  { %4068 = vsyncadd [#allocation12], 4294967200 }
 0x105   :  { %4069 = dma.done.wait [#allocation15], 8224  }
 0x106   :  { %4070 = vsyncadd [#allocation15], 4294959072 }
 0x107   :  { %4071 = dma.done.wait [#allocation18], 64  }
 0x108   :  { %4072 = vsyncadd [#allocation18], 4294967232 }
 0x109   :  { %4073 = dma.done.wait [#allocation21], 2064  }
 0x10a   :  { %4074 = vsyncadd [#allocation21], 4294965232  ;;  %s5053_s27 = sld [smem:[#allocation30_spill]]  ;;  %v299_v3 = vld [vmem:[#allocation5 + $0x8] sm:$0xff]  ;;  %v302_v4 = vld [vmem:[#allocation5 + $0x20] sm:$0xff]  ;;  %s5054_s17 = sld [smem:[#allocation33_spill]] }
 0x10b   :  { %v298_v5 = vld [vmem:[#allocation5] sm:$0xff]  ;;  %v3188_v6 = vpack.c.bf16 %v302_v4, %v299_v3  ;;  %v301_v7 = vld [vmem:[#allocation5 + $0x18] sm:$0xff]  ;;  %v308_v9 = vld [vmem:[#allocation5 + $0x50] sm:$0xff]  ;;  %s5055_s7 = sld [smem:[#allocation31_spill]]  ;;  %s5056_s6 = sld [smem:[#allocation32_spill]]  ;;  %vm610_vm0 = vcmask 523264  }
 0x10c   :  { %v305_v8 = vld [vmem:[#allocation5 + $0x38] sm:$0xff]  ;;  %v3190_v10 = vpack.c.bf16 %v301_v7, %v298_v5  ;;  %v300_v12 = vld [vmem:[#allocation5 + $0x10] sm:$0xff]  ;;  %v303_v13 = vld [vmem:[#allocation5 + $0x28] sm:$0xff]  ;;  %v4098_v5 = vmov 0.0   ;;  %vm2541_vm10 = vcmask 7168  }
 0x10d   :  { %v3192_v11 = vpack.c.bf16 %v308_v9, %v305_v8  ;;  %v304_v14 = vld [vmem:[#allocation5 + $0x30] sm:$0xff]  ;;  %3189 = vmatprep.subr.bf16.mxu0 %v3188_v6  ;;  %v3220_v15 = vpack.c.bf16 %v303_v13, %v300_v12  ;;  %v307_v16 = vld [vmem:[#allocation5 + $0x48] sm:$0xff]  ;;  %v314_v18 = vld [vmem:[#allocation5 + $0x80] sm:$0xff]  ;;  %427 = vmatprep.mubr.f32.mxu0 %v4098_v5 }
 0x10e   :  { %v311_v17 = vld [vmem:[#allocation5 + $0x68] sm:$0xff]  ;;  %3191 = vmatpush1.bf16.msra.mxu0 %v3190_v10  ;;  %v3194_v19 = vpack.c.bf16 %v307_v16, %v304_v14  ;;  %v306_v20 = vld [vmem:[#allocation5 + $0x40] sm:$0xff]  ;;  %v309_v21 = vld [vmem:[#allocation5 + $0x58] sm:$0xff] }
 0x10f   :  { %3193 = vmatprep.subr.bf16.mxu0 %v3192_v11  ;;  %3221 = vmatprep.subr.bf16.mxu1 %v3220_v15  ;;  %v3196_v22 = vpack.c.bf16 %v314_v18, %v311_v17  ;;  %v3224_v23 = vpack.c.bf16 %v309_v21, %v306_v20  ;;  %v310_v24 = vld [vmem:[#allocation5 + $0x60] sm:$0xff]  ;;  %v313_v25 = vld [vmem:[#allocation5 + $0x78] sm:$0xff]  ;;  %v320_v36 = vld [vmem:[#allocation5 + $0xb0] sm:$0xff] }
 0x110   :  { %v255_v1 = vld [vmem:[%s5053_s27] sm:$0xff]  ;;  %v256_v2 = vld [vmem:[%s5053_s27 + $0x8] sm:$0xff]  ;;  %3223 = vmatpush3.bf16.msra.mxu1 %v3220_v15  ;;  %v3198_v26 = vpack.c.bf16 %v313_v25, %v310_v24  ;;  %v312_v37 = vld [vmem:[#allocation5 + $0x70] sm:$0xff] }
 0x111   :  { %259 = vadd.xlane.f32.xlu0 %v255_v1  ;;  %3225 = vmatprep.subr.bf16.mxu1 %v3224_v23  ;;  %v317_v35 = vld [vmem:[#allocation5 + $0x98] sm:$0xff]  ;;  %v315_v39 = vld [vmem:[#allocation5 + $0x88] sm:$0xff]  ;;  %v316_v40 = vld [vmem:[#allocation5 + $0x90] sm:$0xff] }
 0x112   :  { %3195 = vmatpush1.bf16.msra.mxu0 %v3194_v19  ;;  %v3200_v38 = vpack.c.bf16 %v320_v36, %v317_v35  ;;  %v319_v41 = vld [vmem:[#allocation5 + $0xa8] sm:$0xff]  ;;  %v3228_v42 = vpack.c.bf16 %v315_v39, %v312_v37  ;;  %v326_v45 = vld [vmem:[#allocation5 + $0xe0] sm:$0xff]  ;;  %v321_v48 = vld [vmem:[#allocation5 + $0xb8] sm:$0xff] }
 0x113   :  { %3197 = vmatprep.subr.bf16.mxu0 %v3196_v22  ;;  %v3202_v43 = vpack.c.bf16 %v319_v41, %v316_v40  ;;  %v323_v44 = vld [vmem:[#allocation5 + $0xc8] sm:$0xff]  ;;  %v318_v46 = vld [vmem:[#allocation5 + $0xa0] sm:$0xff]  ;;  %v325_v50 = vld [vmem:[#allocation5 + $0xd8] sm:$0xff] }
 0x114   :  { %3227 = vmatpush3.bf16.msra.mxu1 %v3224_v23  ;;  %v3204_v47 = vpack.c.bf16 %v326_v45, %v323_v44  ;;  %v322_v49 = vld [vmem:[#allocation5 + $0xc0] sm:$0xff]  ;;  %v3232_v51 = vpack.c.bf16 %v321_v48, %v318_v46  ;;  %v329_v53 = vld [vmem:[#allocation5 + $0xf8] sm:$0xff]  ;;  %v332_v54 = vld [vmem:[#allocation5 + $0x110] sm:$0xff] }
 0x115   :  { %261 = vadd.xlane.f32.xlu0 %v256_v2  ;;  %3229 = vmatprep.subr.bf16.mxu1 %v3228_v42  ;;  %v3206_v52 = vpack.c.bf16 %v325_v50, %v322_v49  ;;  %v324_v55 = vld [vmem:[#allocation5 + $0xd0] sm:$0xff]  ;;  %v3208_v56 = vpack.c.bf16 %v332_v54, %v329_v53  ;;  %v327_v57 = vld [vmem:[#allocation5 + $0xe8] sm:$0xff]  ;;  %v338_v63 = vld [vmem:[#allocation5 + $0x140] sm:$0xff] }
 0x116   :  { %3199 = vmatpush1.bf16.msra.mxu0 %v3198_v26  ;;  %v328_v58 = vld [vmem:[#allocation5 + $0xf0] sm:$0xff]  ;;  %v331_v59 = vld [vmem:[#allocation5 + $0x108] sm:$0xff]  ;;  %v3236_v60 = vpack.c.bf16 %v327_v57, %v324_v55  ;;  %v330_v0 = vld [vmem:[#allocation5 + $0x100] sm:$0xff] }
 0x117   :  { %3201 = vmatprep.subr.bf16.mxu0 %v3200_v38  ;;  %v3210_v61 = vpack.c.bf16 %v331_v59, %v328_v58  ;;  %v335_v62 = vld [vmem:[#allocation5 + $0x128] sm:$0xff]  ;;  %v334_v3 = vld [vmem:[#allocation5 + $0x120] sm:$0xff]  ;;  %v337_v4 = vld [vmem:[#allocation5 + $0x138] sm:$0xff] }
 0x118   :  { %3231 = vmatpush3.bf16.msra.mxu1 %v3228_v42  ;;  %v3214_v7 = vpack.c.bf16 %v337_v4, %v334_v3  ;;  %v341_v8 = vld [vmem:[#allocation5 + $0x158] sm:$0xff]  ;;  %v344_v9 = vld [vmem:[#allocation5 + $0x170] sm:$0xff]  ;;  %v339_v12 = vld [vmem:[#allocation5 + $0x148] sm:$0xff] }
 0x119   :  { %3233 = vmatprep.subr.bf16.mxu1 %v3232_v51  ;;  %v336_v10 = vld [vmem:[#allocation5 + $0x130] sm:$0xff]  ;;  %v3216_v11 = vpack.c.bf16 %v344_v9, %v341_v8  ;;  %v343_v14 = vld [vmem:[#allocation5 + $0x168] sm:$0xff]  ;;  %v342_v17 = vld [vmem:[#allocation5 + $0x160] sm:$0xff] }
 0x11a   :  { %3203 = vmatpush1.bf16.msra.mxu0 %v3202_v43  ;;  %v340_v13 = vld [vmem:[#allocation5 + $0x150] sm:$0xff]  ;;  %v3244_v15 = vpack.c.bf16 %v339_v12, %v336_v10  ;;  %v345_v18 = vld [vmem:[#allocation5 + $0x178] sm:$0xff]  ;;  %v4489_v48 = vld [vmem:[%s5055_s7 + $0x8] sm:$0xff] }
 0x11b   :  { %3205 = vmatprep.subr.bf16.mxu0 %v3204_v47  ;;  %v3218_v16 = vpack.c.bf16 %v343_v14, %v340_v13  ;;  %v3248_v19 = vpack.c.bf16 %v345_v18, %v342_v17  ;;  %v4483_v45 = vld [vmem:[%s5055_s7] sm:$0xff]  ;;  %v4494_v49 = vld [vmem:[%s5055_s7 + $0x10] sm:$0xff]  ;;  %v4499_v50 = vld [vmem:[%s5055_s7 + $0x18] sm:$0xff] }
 0x11c   :  { %3235 = vmatpush3.bf16.msra.mxu1 %v3232_v51  ;;  %v4519_v8 = vld [vmem:[%s5055_s7 + $0x28] sm:$0xff] }
 0x11d   :  { %3237 = vmatprep.subr.bf16.mxu1 %v3236_v60 }
 0x11e   :  { %3207 = vmatpush1.bf16.msra.mxu0 %v3206_v52 }
 0x11f   :  { %3209 = vmatprep.subr.bf16.mxu0 %v3208_v56 }
 0x120   :  { %3239 = vmatpush3.bf16.msra.mxu1 %v3236_v60 }
 0x122   :  { %3211 = vmatpush1.bf16.msra.mxu0 %v3210_v61 }
 0x19e   :  { %v260_v27 = vpop.xlane.xlu0 %259 }
 0x19f   :  { %v264_v28 = vmul.f32 0.0078125, %v260_v27  ;;  %v2563_v27 = vld [vmem:[%s5054_s17] ss:$0 sm:$0xff] }
 0x1a1   :  { %v4444_v29 = vsub.f32 %v255_v1, %v264_v28  ;;  %v3212_v1 = vpack.c.bf16 %v338_v63, %v335_v62 }
 0x1a2   :  { %v262_v30 = vpop.xlane.xlu0 %261 }
 0x1a3   :  { %v265_v31 = vmul.f32 0.0078125, %v262_v30  ;;  %v268_v32 = vmul.f32 %v4444_v29, %v4444_v29  ;;  %3213 = vmatprep.subr.bf16.mxu0 %v3212_v1  ;;  %v2564_v30 = vld [vmem:[#allocation3] ss:$0 sm:$0xff] }
 0x1a4   :  { %3215 = vmatpush1.bf16.msra.mxu0 %v3214_v7  ;;  %v4514_v7 = vld [vmem:[%s5055_s7 + $0x20] sm:$0xff] }
 0x1a5   :  { %v4448_v33 = vsub.f32 %v256_v2, %v265_v31  ;;  %270 = vadd.xlane.f32.xlu1 %v268_v32  ;;  %v333_v2 = vld [vmem:[#allocation5 + $0x118] sm:$0xff]  ;;  %3217 = vmatprep.subr.bf16.mxu0 %v3216_v11 }
 0x1a6   :  { %v3240_v6 = vpack.c.bf16 %v333_v2, %v330_v0 }
 0x1a7   :  { %v269_v34 = vmul.f32 %v4448_v33, %v4448_v33 }
 0x1a8   :  { %3241 = vmatprep.subr.bf16.mxu1 %v3240_v6  ;;  %3219 = vmatpush1.bf16.msra.mxu0 %v3218_v16  ;;  %v252_v16 = vld [vmem:[%s5055_s7 + $0x38] sm:$0xff] }
 0x1a9   :  { %272 = vadd.xlane.f32.xlu1 %v269_v34  ;;  %3243 = vmatpush3.bf16.msra.mxu1 %v3240_v6 }
 0x1aa   :  { %3245 = vmatprep.subr.bf16.mxu1 %v3244_v15 }
 0x1ad   :  { %3247 = vmatpush3.bf16.msra.mxu1 %v3244_v15  ;;  %v251_v15 = vld [vmem:[%s5055_s7 + $0x30] sm:$0xff] }
 0x1ae   :  { %3249 = vmatprep.subr.bf16.mxu1 %v3248_v19 }
 0x1b1   :  { %3251 = vmatpush3.bf16.msra.mxu1 %v3248_v19 }
 0x232   :  { %v271_v20 = vpop.xlane.xlu1 %270 }
 0x233   :  { %v274_v21 = vmul.f32 0.0078125, %v271_v20 }
 0x235   :  { %v276_v22 = vadd.f32 1e-12, %v274_v21 }
 0x236   :  { %v273_v23 = vpop.xlane.xlu1 %272 }
 0x237   :  { %3693 = vrsqrt.f32 %v276_v22  ;;  %v275_v24 = vmul.f32 0.0078125, %v273_v23 }
 0x239   :  { %v277_v25 = vadd.f32 1e-12, %v275_v24 }
 0x23b   :  { %3695 = vrsqrt.f32 %v277_v25 }
 0x241   :  { %v3694_v26 = vpop.eup %3693 }
 0x242   :  { %v280_v28 = vmul.f32 %v3694_v26, %v4444_v29  ;;  %v348_v29 = vlaneseq }
 0x244   :  { %v288_v31 = vmul.f32 %v2563_v27, %v280_v28  ;;  %v4467_v38 = vshrl.u32 %v348_v29, 7 }
 0x245   :  { %v3696_v32 = vpop.eup %3695 }
 0x246   :  { %v4457_v34 = vadd.f32 %v2564_v30, %v288_v31  ;;  %v281_v35 = vmul.f32 %v3696_v32, %v4448_v33  ;;  %v4470_v39 = vsub.s32 0, %v4467_v38  ;;  %v346_v33 = vld [vmem:[#allocation7] sm:$0x7]  ;;  %v4473_v40 = vsub.s32 1, %v4467_v38 }
 0x247   :  { %v358_v43 = vsub.s32 2, %v4467_v38  ;;  %v253_v31 = vld [vmem:[%s5056_s6] sm:$0xff] }
 0x248   :  { %428 = vmatmul.mubr.f32.vlgmr.msra.gmra.mrb[0].mxu0 %v4457_v34  ;;  %2896 = vmatprep.mubr.f32.mxu1 %v4457_v34  ;;  %v289_v36 = vmul.f32 %v2563_v27, %v281_v35  ;;  %v4476_v41 = vrot.slane %v346_v33, %v4470_v39  ;;  %v355_v42 = vrot.slane %v346_v33, %v4473_v40  ;;  %v254_v27 = vld [vmem:[%s5056_s6 + $0x8] sm:$0xff] }
 0x249   :  { %433 = vmatprep.mubr.f32.mxu0 %v4098_v5  ;;  %v359_v52 = vrot.slane %v346_v33, %v358_v43 }
 0x24a   :  { %v4463_v37 = vadd.f32 %v2564_v30, %v289_v36 }
 0x24c   :  { %434 = vmatmul.mubr.f32.gmra.mrb[2].mxu0 %v4463_v37  ;;  %2897 = vmatmul.mubr.f32.vlgmr.msra.gmra.mrb[0].mxu1 %v4463_v37 }
 0x31b   :  { %v429_v44 = vpop.f32.mrb[0].mxu0 }
 0x31c   :  { %v430_v46 = vadd.f32 %v429_v44, %v4476_v41  ;;  %v431_v47 = vpop.f32.mrb[1].mxu0 }
 0x31d   :  { %v432_v51 = vadd.f32 %v431_v47, %v355_v42 }
 0x31e   :  { %2915 = vmatprep.mubr.f32.mxu0 %v430_v46 }
 0x31f   :  { %v435_v53 = vpop.f32.mrb[2].mxu0  ;;  %v2898_v54 = vpop.f32.mrb[0].mxu1  ;;  %v515_v55 = vmul.f32 %v432_v51, %v4483_v45  ;;  %v516_v56 = vmul.f32 %v432_v51, %v4489_v48  ;;  %v517_v57 = vmul.f32 %v432_v51, %v4494_v49  ;;  %v518_v58 = vmul.f32 %v432_v51, %v4499_v50 }
 0x320   :  { %v437_v59 = vpop.f32.mrb[3].mxu0  ;;  %v506_v60 = vpop.f32.mrb[1].mxu1  ;;  %v512_v63 = vadd.f32 %v2898_v54, %v359_v52  ;;  %v436_v25 = vadd.f32 %v435_v53, %v4476_v41  ;;  %v4542_v41 = vpack.c.bf16 %v4489_v48, %v4483_v45  ;;  %v4547_v54 = vpack.c.bf16 %v4499_v50, %v4494_v49 }
 0x321   :  { %v507_v61 = vadd.f32 %v506_v60, %v359_v52  ;;  %v3252_v62 = vpack.c.bf16 %v516_v56, %v515_v55  ;;  %v438_v0 = vadd.f32 %v437_v59, %v355_v42  ;;  %v3256_v1 = vpack.c.bf16 %v518_v58, %v517_v57  ;;  %v787_v57 = vld [vmem:[#allocation8 + $0x10] sm:$0xff]  ;;  %v788_v58 = vld [vmem:[#allocation8 + $0x18] sm:$0xff]  ;;  %v789_v60 = vld [vmem:[#allocation8 + $0x20] sm:$0xff] }
 0x322   :  { %v527_v10 = vmul.f32 %v512_v63, %v4514_v7  ;;  %v528_v14 = vmul.f32 %v512_v63, %v4519_v8  ;;  %v529_v19 = vmul.f32 %v512_v63, %v251_v15  ;;  %v530_v20 = vmul.f32 %v512_v63, %v252_v16  ;;  %v791_v63 = vld [vmem:[#allocation8 + $0x30] sm:$0xff] }
 0x323   :  { %3253 = vmatprep.subr.bf16.mxu0 %v3252_v62  ;;  %v523_v2 = vmul.f32 %v507_v61, %v4483_v45  ;;  %v524_v3 = vmul.f32 %v507_v61, %v4489_v48  ;;  %v525_v4 = vmul.f32 %v507_v61, %v4494_v49  ;;  %v526_v6 = vmul.f32 %v507_v61, %v4499_v50  ;;  %v785_v49 = vld [vmem:[#allocation8] sm:$0xff]  ;;  %v786_v50 = vld [vmem:[#allocation8 + $0x8] sm:$0xff] }
 0x324   :  { %3255 = vmatpush3.bf16.xpose.msra.mxu0 %v3252_v62  ;;  %v519_v12 = vmul.f32 %v438_v0, %v4514_v7  ;;  %v520_v13 = vmul.f32 %v438_v0, %v4519_v8  ;;  %v3276_v18 = vpack.c.bf16 %v528_v14, %v527_v10  ;;  %v3280_v21 = vpack.c.bf16 %v530_v20, %v529_v19  ;;  %v790_v61 = vld [vmem:[#allocation8 + $0x28] sm:$0xff] }
 0x325   :  { %3257 = vmatprep.subr.bf16.mxu0 %v3256_v1  ;;  %v3268_v9 = vpack.c.bf16 %v524_v3, %v523_v2  ;;  %v3272_v11 = vpack.c.bf16 %v526_v6, %v525_v4  ;;  %v521_v22 = vmul.f32 %v438_v0, %v251_v15  ;;  %v522_v23 = vmul.f32 %v438_v0, %v252_v16  ;;  %v792_v0 = vld [vmem:[#allocation8 + $0x38] sm:$0xff]  ;;  %v793_v2 = vld [vmem:[#allocation8 + $0x40] sm:$0xff]  ;;  %v794_v3 = vld [vmem:[#allocation8 + $0x48] sm:$0xff] }
 0x326   :  { %v3260_v17 = vpack.c.bf16 %v520_v13, %v519_v12  ;;  %v4556_v45 = vpack.c.bf16 %v4519_v8, %v4514_v7  ;;  %v4560_v48 = vpack.c.bf16 %v252_v16, %v251_v15  ;;  %v3300_v56 = vpack.c.bf16 %v786_v50, %v785_v49  ;;  %v795_v6 = vld [vmem:[#allocation8 + $0x50] sm:$0xff]  ;;  %v796_v7 = vld [vmem:[#allocation8 + $0x58] sm:$0xff]  ;;  %v797_v8 = vld [vmem:[#allocation8 + $0x60] sm:$0xff] }
 0x327   :  { %3269 = vmatprep.subr.bf16.mxu1 %v3268_v9  ;;  %v3264_v24 = vpack.c.bf16 %v522_v23, %v521_v22  ;;  %v3304_v59 = vpack.c.bf16 %v788_v58, %v787_v57  ;;  %v3308_v62 = vpack.c.bf16 %v790_v61, %v789_v60  ;;  %v3316_v4 = vpack.c.bf16 %v794_v3, %v793_v2  ;;  %v798_v10 = vld [vmem:[#allocation8 + $0x68] sm:$0xff]  ;;  %v799_v12 = vld [vmem:[#allocation8 + $0x70] sm:$0xff]  ;;  %v800_v13 = vld [vmem:[#allocation8 + $0x78] sm:$0xff] }
 0x328   :  { %3271 = vmatpush3.bf16.msra.mxu1 %v3268_v9  ;;  %v3320_v9 = vpack.c.bf16 %v796_v7, %v795_v6  ;;  %v3328_v14 = vpack.c.bf16 %v800_v13, %v799_v12  ;;  %v933_v50 = vld [vmem:[%s5019_s11 + $0x40] sm:$0xff]  ;;  %v938_v2 = vld [vmem:[%s5019_s11 + $0x68] sm:$0xff]  ;;  %v940_v3 = vld [vmem:[%s5019_s11 + $0x78] sm:$0xff] }
 0x329   :  { %3273 = vmatprep.subr.bf16.mxu1 %v3272_v11  ;;  %v937_v6 = vld [vmem:[%s5019_s11 + $0x60] sm:$0xff]  ;;  %v939_v7 = vld [vmem:[%s5019_s11 + $0x70] sm:$0xff] }
 0x32a   :  { %v941_v12 = vld [vmem:[%s5019_s11 + $0x80] sm:$0xff]  ;;  %v943_v13 = vld [vmem:[%s5019_s11 + $0x90] sm:$0xff] }
 0x32c   :  { %3259 = vmatpush3.bf16.xpose.msra.mxu0 %v3256_v1  ;;  %3275 = vmatpush3.bf16.msra.mxu1 %v3272_v11  ;;  %v3312_v1 = vpack.c.bf16 %v792_v0, %v791_v63  ;;  %v3324_v11 = vpack.c.bf16 %v798_v10, %v797_v8  ;;  %v3346_v8 = vpack.c.bf16 %v939_v7, %v937_v6  ;;  %v944_v10 = vld [vmem:[%s5019_s11 + $0x98] sm:$0xff] }
 0x32d   :  { %3261 = vmatprep.subr.bf16.mxu0 %v3260_v17  ;;  %3277 = vmatprep.subr.bf16.mxu1 %v3276_v18  ;;  %v1174_v6 = vld [vmem:[#allocation14 + $0xa0] sm:$0xff]  ;;  %v1175_v7 = vld [vmem:[#allocation14 + $0xa8] sm:$0xff] }
 0x330   :  { %3279 = vmatpush3.bf16.msra.mxu1 %v3276_v18 }
 0x331   :  { %3281 = vmatprep.subr.bf16.mxu1 %v3280_v21 }
 0x334   :  { %3263 = vmatpush3.bf16.xpose.msra.mxu0 %v3260_v17  ;;  %3283 = vmatpush3.bf16.msra.mxu1 %v3280_v21 }
 0x335   :  { %3265 = vmatprep.subr.bf16.mxu0 %v3264_v24  ;;  %3285 = vmatprep.subr.bf16.mxu1 %v4542_v41 }
 0x33c   :  { %3267 = vmatpush3.bf16.xpose.msra.mxu0 %v3264_v24 }
 0x33d   :  { %3301 = vmatprep.subr.bf16.mxu0 %v3300_v56 }
 0x343   :  { %2916 = vmatmul.mubr.f32.vlgmr.msra.gmra.mrb[4].mxu0 %v436_v25  ;;  %v2569_v25 = vld [vmem:[%s5016_s8] ss:$0 sm:$0xff] }
 0x344   :  { %3303 = vmatpush3.bf16.msra.mxu0 %v3300_v56  ;;  %v935_v56 = vld [vmem:[%s5019_s11 + $0x50] sm:$0xff] }
 0x345   :  { %3305 = vmatprep.subr.bf16.mxu0 %v3304_v59  ;;  %v3342_v57 = vpack.c.bf16 %v935_v56, %v933_v50 }
 0x348   :  { %3307 = vmatpush3.bf16.msra.mxu0 %v3304_v59 }
 0x349   :  { %3309 = vmatprep.subr.bf16.mxu0 %v3308_v62 }
 0x34c   :  { %3311 = vmatpush3.bf16.msra.mxu0 %v3308_v62 }
 0x34d   :  { %3313 = vmatprep.subr.bf16.mxu0 %v3312_v1 }
 0x350   :  { %3315 = vmatpush3.bf16.msra.mxu0 %v3312_v1 }
 0x351   :  { %3317 = vmatprep.subr.bf16.mxu0 %v3316_v4 }
 0x354   :  { %3319 = vmatpush3.bf16.msra.mxu0 %v3316_v4  ;;  %v3344_v4 = vpack.c.bf16 %v940_v3, %v938_v2  ;;  %v1156_v2 = vld [vmem:[#allocation14 + $0x10] sm:$0xff]  ;;  %v1157_v3 = vld [vmem:[#allocation14 + $0x18] sm:$0xff] }
 0x355   :  { %3321 = vmatprep.subr.bf16.mxu0 %v3320_v9 }
 0x358   :  { %3323 = vmatpush3.bf16.msra.mxu0 %v3320_v9  ;;  %v942_v9 = vld [vmem:[%s5019_s11 + $0x88] sm:$0xff] }
 0x359   :  { %3325 = vmatprep.subr.bf16.mxu0 %v3324_v11 }
 0x35c   :  { %3327 = vmatpush3.bf16.msra.mxu0 %v3324_v11  ;;  %v3348_v11 = vpack.c.bf16 %v944_v10, %v942_v9  ;;  %v1158_v9 = vld [vmem:[#allocation14 + $0x20] sm:$0xff]  ;;  %v1159_v10 = vld [vmem:[#allocation14 + $0x28] sm:$0xff] }
 0x35d   :  { %3329 = vmatprep.subr.bf16.mxu0 %v3328_v14 }
 0x360   :  { %3331 = vmatpush3.bf16.msra.mxu0 %v3328_v14  ;;  %v946_v14 = vld [vmem:[%s5019_s11 + $0xa8] sm:$0xff] }
 0x416   :  { %v2917_v26 = vpop.f32.mrb[4].mxu0 }
 0x417   :  { %v607_v28 = vmul.f32 0.17677669, %v2917_v26  ;;  %v597_v30 = vpop.f32.mrb[5].mxu0 }
 0x418   :  { %v606_v32 = vmul.f32 0.17677669, %v597_v30 }
 0x419   :  { %v609_v35 = vadd.f32 %v607_v28, %v254_v27 }
 0x41a   :  { %v608_v36 = vadd.f32 %v606_v32, %v253_v31 }
 0x41b   :  { %v614_v29 = vsel %vm610_vm0, %v609_v35, -inf }
 0x41c   :  { %615 = vmax.xlane.f32.xlu1 %v614_v29  ;;  %v611_v33 = vsel %vm610_vm0, %v608_v36, -inf  ;;  %v925_v29 = vld [vmem:[%s5019_s11] sm:$0xff] }
 0x41d   :  { %612 = vmax.xlane.f32.xlu0 %v611_v33 }
 0x4a9   :  { %v616_v42 = vpop.xlane.xlu1 %615 }
 0x4aa   :  { %v618_v44 = vsub.f32 %v609_v35, %v616_v42  ;;  %v613_v46 = vpop.xlane.xlu0 %612  ;;  %v926_v35 = vld [vmem:[%s5019_s11 + $0x8] sm:$0xff]  ;;  %v932_v42 = vld [vmem:[%s5019_s11 + $0x38] sm:$0xff] }
 0x4ab   :  { %v617_v47 = vsub.f32 %v608_v36, %v613_v46  ;;  %v928_v36 = vld [vmem:[%s5019_s11 + $0x18] sm:$0xff] }
 0x4ac   :  { %v621_v51 = vmul.f32 1.442695, %v618_v44  ;;  %v3332_v33 = vpack.c.bf16 %v928_v36, %v926_v35 }
 0x4ad   :  { %v619_v52 = vmul.f32 1.442695, %v617_v47  ;;  %v929_v47 = vld [vmem:[%s5019_s11 + $0x20] sm:$0xff] }
 0x4af   :  { %3697 = vpow2.f32 %v619_v52  ;;  %v934_v52 = vld [vmem:[%s5019_s11 + $0x48] sm:$0xff] }
 0x4b0   :  { %3699 = vpow2.f32 %v621_v51  ;;  %v931_v51 = vld [vmem:[%s5019_s11 + $0x30] sm:$0xff] }
 0x4b9   :  { %v3698_v53 = vpop.eup %3697 }
 0x4ba   :  { %v3700_v55 = vpop.eup %3699  ;;  %2934 = vmatprep.mubr.msk.f32.mxu1 %vm610_vm0, %v3698_v53 }
 0x4bb   :  { %2935 = vmatmul.mubr.msk.f32.vlgmr.msra.gmra.mrb[2].mxu1 %vm610_vm0, %v3700_v55 }
 0x4bc   :  { %3287 = vmatpush3.bf16.msra.mxu1 %v4542_v41  ;;  %2953 = vmatprep.mubr.msk.f32.mxu1 %vm610_vm0, %v3698_v53  ;;  %v936_v53 = vld [vmem:[%s5019_s11 + $0x58] sm:$0xff] }
 0x4bd   :  { %3289 = vmatprep.subr.bf16.mxu1 %v4547_v54  ;;  %v3340_v49 = vpack.c.bf16 %v936_v53, %v934_v52  ;;  %v2571_v53 = vld [vmem:[#allocation11] ss:$0 sm:$0xff] }
 0x4c0   :  { %3291 = vmatpush3.bf16.msra.mxu1 %v4547_v54 }
 0x4c1   :  { %3293 = vmatprep.subr.bf16.mxu1 %v4556_v45 }
 0x4c4   :  { %3295 = vmatpush3.bf16.msra.mxu1 %v4556_v45 }
 0x4c5   :  { %3297 = vmatprep.subr.bf16.mxu1 %v4560_v48 }
 0x4c8   :  { %3299 = vmatpush3.bf16.msra.mxu1 %v4560_v48 }
 0x4c9   :  { %3333 = vmatprep.subr.bf16.mxu1 %v3332_v33 }
 0x4cb   :  { %2954 = vmatmul.mubr.msk.f32.vlgmr.msra.gmra.mrb[4].mxu1 %vm610_vm0, %v3700_v55  ;;  %v3338_v55 = vpack.c.bf16 %v931_v51, %v929_v47  ;;  %v2570_v47 = vld [vmem:[#allocation10] ss:$0 sm:$0xff] }
 0x4cc   :  { %1033 = vmatprep.mubr.f32.mxu1 %v4098_v5 }
 0x58e   :  { %v2936_v15 = vpop.f32.mrb[2].mxu1 }
 0x58f   :  { %v695_v16 = vpop.f32.mrb[3].mxu1 }
 0x59e   :  { %v2955_v17 = vpop.f32.mrb[4].mxu1 }
 0x59f   :  { %v780_v18 = vmax.f32 %v2955_v17, 1e-30  ;;  %v770_v19 = vpop.f32.mrb[5].mxu1  ;;  %v945_v17 = vld [vmem:[%s5019_s11 + $0xa0] sm:$0xff] }
 0x5a0   :  { %v779_v20 = vmax.f32 %v770_v19, 1e-30 }
 0x5a1   :  { %3701 = vrcp.f32 %v780_v18  ;;  %v947_v18 = vld [vmem:[%s5019_s11 + $0xb0] sm:$0xff] }
 0x5a2   :  { %3703 = vrcp.f32 %v779_v20  ;;  %v950_v20 = vld [vmem:[%s5019_s11 + $0xc8] sm:$0xff] }
 0x5ab   :  { %v3702_v21 = vpop.eup %3701 }
 0x5ac   :  { %v3704_v22 = vpop.eup %3703  ;;  %v784_v23 = vmul.f32 %v3702_v21, %v2936_v15  ;;  %v3350_v15 = vpack.c.bf16 %v943_v13, %v941_v12  ;;  %v952_v21 = vld [vmem:[%s5019_s11 + $0xd8] sm:$0xff]  ;;  %v1176_v12 = vld [vmem:[#allocation14 + $0xb0] sm:$0xff]  ;;  %v1177_v13 = vld [vmem:[#allocation14 + $0xb8] sm:$0xff] }
 0x5ad   :  { %v782_v24 = vmul.f32 %v3704_v22, %v695_v16  ;;  %v948_v16 = vld [vmem:[%s5019_s11 + $0xb8] sm:$0xff]  ;;  %v3354_v22 = vpack.c.bf16 %v947_v18, %v945_v17 }
 0x5ae   :  { %v3352_v19 = vpack.c.bf16 %v948_v16, %v946_v14  ;;  %v3376_v14 = vpack.c.bf16 %v1177_v13, %v1176_v12  ;;  %v1161_v16 = vld [vmem:[#allocation14 + $0x38] sm:$0xff]  ;;  %v1178_v18 = vld [vmem:[#allocation14 + $0xc0] sm:$0xff] }
 0x5af   :  { %2988 = vmatprep.mubr.f32.mxu0 %v782_v24  ;;  %v949_v24 = vld [vmem:[%s5019_s11 + $0xc0] sm:$0xff] }
 0x5b0   :  { %2989 = vmatmul.mubr.f32.vlgmr.msra.gmra.mrb[6].mxu0 %v784_v23  ;;  %v3356_v23 = vpack.c.bf16 %v952_v21, %v950_v20  ;;  %v1162_v21 = vld [vmem:[#allocation14 + $0x40] sm:$0xff] }
 0x683   :  { %v2990_v26 = vpop.f32.mrb[6].mxu0 }
 0x684   :  { %v880_v27 = vadd.f32 %v2990_v26, %v2569_v25  ;;  %v874_v28 = vpop.f32.mrb[7].mxu0  ;;  %v954_v26 = vld [vmem:[%s5019_s11 + $0xe8] sm:$0xff] }
 0x685   :  { %v875_v30 = vadd.f32 %v2569_v25, %v874_v28  ;;  %v951_v25 = vld [vmem:[%s5019_s11 + $0xd0] sm:$0xff] }
 0x686   :  { %v884_v31 = vadd.f32 %v880_v27, %v4463_v37  ;;  %v927_v37 = vld [vmem:[%s5019_s11 + $0x10] sm:$0xff]  ;;  %v956_v27 = vld [vmem:[%s5019_s11 + $0xf8] sm:$0xff]  ;;  %v3358_v28 = vpack.c.bf16 %v951_v25, %v949_v24  ;;  %v1180_v24 = vld [vmem:[#allocation14 + $0xd0] sm:$0xff] }
 0x687   :  { %v883_v32 = vadd.f32 %v875_v30, %v4457_v34  ;;  %v930_v34 = vld [vmem:[%s5019_s11 + $0x28] sm:$0xff]  ;;  %v3334_v44 = vpack.c.bf16 %v927_v37, %v925_v29  ;;  %v3360_v30 = vpack.c.bf16 %v956_v27, %v954_v26 }
 0x688   :  { %889 = vadd.xlane.f32.xlu1 %v884_v31  ;;  %v3336_v46 = vpack.c.bf16 %v932_v42, %v930_v34  ;;  %v1181_v25 = vld [vmem:[#allocation14 + $0xd8] sm:$0xff]  ;;  %v1164_v27 = vld [vmem:[#allocation14 + $0x50] sm:$0xff] }
 0x689   :  { %887 = vadd.xlane.f32.xlu0 %v883_v32  ;;  %3335 = vmatpush1.bf16.msra.mxu1 %v3334_v44  ;;  %v3384_v26 = vpack.c.bf16 %v1181_v25, %v1180_v24 }
 0x68a   :  { %3337 = vmatprep.subr.bf16.mxu1 %v3336_v46 }
 0x68d   :  { %3339 = vmatpush1.bf16.msra.mxu1 %v3338_v55 }
 0x68e   :  { %3341 = vmatprep.subr.bf16.mxu1 %v3340_v49 }
 0x691   :  { %3343 = vmatpush1.bf16.msra.mxu1 %v3342_v57  ;;  %v1170_v57 = vld [vmem:[#allocation14 + $0x80] sm:$0xff] }
 0x692   :  { %3345 = vmatprep.subr.bf16.mxu1 %v3344_v4  ;;  %v3370_v4 = vpack.c.bf16 %v1157_v3, %v1156_v2 }
 0x695   :  { %3347 = vmatpush1.bf16.msra.mxu1 %v3346_v8  ;;  %v3372_v8 = vpack.c.bf16 %v1175_v7, %v1174_v6 }
 0x696   :  { %3349 = vmatprep.subr.bf16.mxu1 %v3348_v11  ;;  %v3374_v11 = vpack.c.bf16 %v1159_v10, %v1158_v9 }
 0x699   :  { %3351 = vmatpush1.bf16.msra.mxu1 %v3350_v15  ;;  %v1160_v15 = vld [vmem:[#allocation14 + $0x30] sm:$0xff] }
 0x69a   :  { %3353 = vmatprep.subr.bf16.mxu1 %v3352_v19  ;;  %v3378_v17 = vpack.c.bf16 %v1161_v16, %v1160_v15  ;;  %v1179_v19 = vld [vmem:[#allocation14 + $0xc8] sm:$0xff] }
 0x69b   :  { %v3380_v20 = vpack.c.bf16 %v1179_v19, %v1178_v18 }
 0x69d   :  { %3355 = vmatpush1.bf16.msra.mxu1 %v3354_v22  ;;  %v1163_v22 = vld [vmem:[#allocation14 + $0x48] sm:$0xff] }
 0x69e   :  { %3357 = vmatprep.subr.bf16.mxu1 %v3356_v23  ;;  %v3382_v23 = vpack.c.bf16 %v1163_v22, %v1162_v21 }
 0x6a1   :  { %3359 = vmatpush1.bf16.msra.mxu1 %v3358_v28  ;;  %v1165_v28 = vld [vmem:[#allocation14 + $0x58] sm:$0xff] }
 0x6a2   :  { %3361 = vmatprep.subr.bf16.mxu1 %v3360_v30  ;;  %v3386_v30 = vpack.c.bf16 %v1165_v28, %v1164_v27 }
 0x715   :  { %v890_v58 = vpop.xlane.xlu1 %889 }
 0x716   :  { %v892_v59 = vmul.f32 0.0078125, %v890_v58  ;;  %v888_v60 = vpop.xlane.xlu0 %887  ;;  %v1171_v58 = vld [vmem:[#allocation14 + $0x88] sm:$0xff] }
 0x717   :  { %v891_v61 = vmul.f32 0.0078125, %v888_v60  ;;  %v1154_v60 = vld [vmem:[#allocation14] sm:$0xff] }
 0x718   :  { %v894_v62 = vsub.f32 %v884_v31, %v892_v59  ;;  %v953_v31 = vld [vmem:[%s5019_s11 + $0xe0] sm:$0xff]  ;;  %v3364_v59 = vpack.c.bf16 %v1171_v58, %v1170_v57 }
 0x719   :  { %v893_v63 = vsub.f32 %v883_v32, %v891_v61  ;;  %v955_v32 = vld [vmem:[%s5019_s11 + $0xf0] sm:$0xff]  ;;  %v1155_v61 = vld [vmem:[#allocation14 + $0x8] sm:$0xff] }
 0x71a   :  { %v896_v0 = vmul.f32 %v894_v62, %v894_v62  ;;  %v3362_v35 = vpack.c.bf16 %v955_v32, %v953_v31  ;;  %3365 = vmatprep.subr.bf16.mxu0 %v3364_v59  ;;  %v1182_v31 = vld [vmem:[#allocation14 + $0xe0] sm:$0xff]  ;;  %v1183_v32 = vld [vmem:[#allocation14 + $0xe8] sm:$0xff] }
 0x71b   :  { %v895_v1 = vmul.f32 %v893_v63, %v893_v63 }
 0x71c   :  { %899 = vadd.xlane.f32.xlu1 %v896_v0  ;;  %3363 = vmatpush1.bf16.msra.mxu1 %v3362_v35  ;;  %v1173_v0 = vld [vmem:[#allocation14 + $0x98] sm:$0xff]  ;;  %v3388_v35 = vpack.c.bf16 %v1183_v32, %v1182_v31 }
 0x71d   :  { %897 = vadd.xlane.f32.xlu0 %v895_v1 }
 0x7a9   :  { %v900_v36 = vpop.xlane.xlu1 %899 }
 0x7aa   :  { %v902_v29 = vmul.f32 0.0078125, %v900_v36  ;;  %v898_v33 = vpop.xlane.xlu0 %897  ;;  %v1166_v36 = vld [vmem:[#allocation14 + $0x60] sm:$0xff] }
 0x7ab   :  { %v901_v37 = vmul.f32 0.0078125, %v898_v33 }
 0x7ac   :  { %v904_v34 = vadd.f32 1e-12, %v902_v29  ;;  %v1167_v29 = vld [vmem:[#allocation14 + $0x68] sm:$0xff] }
 0x7ad   :  { %v903_v42 = vadd.f32 1e-12, %v901_v37  ;;  %v3390_v33 = vpack.c.bf16 %v1167_v29, %v1166_v36  ;;  %v1184_v37 = vld [vmem:[#allocation14 + $0xf0] sm:$0xff] }
 0x7ae   :  { %3705 = vrsqrt.f32 %v904_v34  ;;  %v1185_v34 = vld [vmem:[#allocation14 + $0xf8] sm:$0xff] }
 0x7af   :  { %3707 = vrsqrt.f32 %v903_v42  ;;  %v1168_v42 = vld [vmem:[#allocation14 + $0x70] sm:$0xff] }
 0x7b8   :  { %v3706_v44 = vpop.eup %3705 }
 0x7b9   :  { %v3708_v46 = vpop.eup %3707  ;;  %v908_v52 = vmul.f32 %v3706_v44, %v894_v62  ;;  %v3366_v62 = vpack.c.bf16 %v1155_v61, %v1154_v60  ;;  %v3392_v44 = vpack.c.bf16 %v1185_v34, %v1184_v37 }
 0x7ba   :  { %v907_v51 = vmul.f32 %v3708_v46, %v893_v63  ;;  %v1172_v63 = vld [vmem:[#allocation14 + $0x90] sm:$0xff]  ;;  %v1169_v46 = vld [vmem:[#allocation14 + $0x78] sm:$0xff] }
 0x7bb   :  { %v916_v50 = vmul.f32 %v2570_v47, %v908_v52  ;;  %3367 = vmatpush3.bf16.msra.mxu0 %v3366_v62  ;;  %v3368_v1 = vpack.c.bf16 %v1173_v0, %v1172_v63 }
 0x7bc   :  { %v915_v55 = vmul.f32 %v2570_v47, %v907_v51  ;;  %v3394_v47 = vpack.c.bf16 %v1169_v46, %v1168_v42  ;;  %v957_v51 = vld [vmem:[#allocation13] sm:$0x3] }
 0x7bd   :  { %v4672_v56 = vadd.f32 %v2571_v53, %v916_v50  ;;  %3369 = vmatprep.subr.bf16.mxu0 %v3368_v1  ;;  %v962_v52 = vrot.slane %v957_v51, %v4470_v39 }
 0x7be   :  { %v4668_v49 = vadd.f32 %v2571_v53, %v915_v55  ;;  %v966_v53 = vrot.slane %v957_v51, %v4473_v40 }
 0x7bf   :  { %3371 = vmatpush3.bf16.msra.mxu0 %v3370_v4 }
 0x7c0   :  { %1034 = vmatmul.mubr.f32.vlgmr.msra.gmra.mrb[6].mxu1 %v4668_v49  ;;  %3373 = vmatprep.subr.bf16.mxu0 %v3372_v8 }
 0x7c1   :  { %1039 = vmatprep.mubr.f32.mxu1 %v4098_v5 }
 0x7c3   :  { %3375 = vmatpush3.bf16.msra.mxu0 %v3374_v11 }
 0x7c4   :  { %1040 = vmatmul.mubr.f32.gmra.mrb[8].mxu1 %v4672_v56  ;;  %3377 = vmatprep.subr.bf16.mxu0 %v3376_v14 }
 0x7c5   :  { %1441 = vmatprep.mubr.f32.mxu1 %v4098_v5 }
 0x7c7   :  { %3379 = vmatpush3.bf16.msra.mxu0 %v3378_v17 }
 0x7c8   :  { %3381 = vmatprep.subr.bf16.mxu0 %v3380_v20 }
 0x7cb   :  { %3383 = vmatpush3.bf16.msra.mxu0 %v3382_v23 }
 0x7cc   :  { %3385 = vmatprep.subr.bf16.mxu0 %v3384_v26 }
 0x7cf   :  { %3387 = vmatpush3.bf16.msra.mxu0 %v3386_v30 }
 0x7d0   :  { %3389 = vmatprep.subr.bf16.mxu0 %v3388_v35 }
 0x7d3   :  { %3391 = vmatpush3.bf16.msra.mxu0 %v3390_v33 }
 0x7d4   :  { %3393 = vmatprep.subr.bf16.mxu0 %v3392_v44 }
 0x7d7   :  { %3395 = vmatpush3.bf16.msra.mxu0 %v3394_v47 }
 0x893   :  { %v1035_v55 = vpop.f32.mrb[6].mxu1 }
 0x894   :  { %v4678_v50 = vadd.f32 %v1035_v55, %v962_v52  ;;  %v1037_v57 = vpop.f32.mrb[7].mxu1 }
 0x895   :  { %v4680_v58 = vadd.f32 %v1037_v57, %v966_v53 }
 0x896   :  { %v4683_v59 = vmul.f32 0.70710677, %v4678_v50 }
 0x897   :  { %v4686_v60 = vmul.f32 0.70710677, %v4680_v58  ;;  %v1041_v61 = vpop.f32.mrb[8].mxu1 }
 0x898   :  { %v1062_v62 = vand.u32 2147483647, %v4683_v59  ;;  %v4689_v63 = vadd.f32 %v1041_v61, %v962_v52  ;;  %v1043_v0 = vpop.f32.mrb[9].mxu1  ;;  %vm1054_vm1 = vcmp.lt.f32.partialorder %v4683_v59, 0.0 }
 0x899   :  { %v1063_v1 = vand.u32 2147483647, %v4686_v60  ;;  %v4692_v2 = vadd.f32 %v1043_v0, %v966_v53  ;;  %vm1055_vm2 = vcmp.lt.f32.partialorder %v4686_v60, 0.0 }
 0x89a   :  { %v1066_v3 = vmul.f32 0.3275911, %v1062_v62  ;;  %v4695_v6 = vmul.f32 0.70710677, %v4689_v63  ;;  %v1118_v15 = vsub.f32 0.0, %v1062_v62 }
 0x89b   :  { %v1067_v4 = vmul.f32 0.3275911, %v1063_v1  ;;  %v4698_v8 = vmul.f32 0.70710677, %v4692_v2  ;;  %v1119_v17 = vsub.f32 0.0, %v1063_v1 }
 0x89c   :  { %v1070_v7 = vadd.f32 1.0, %v1066_v3  ;;  %v1064_v10 = vand.u32 2147483647, %v4695_v6  ;;  %v1122_v19 = vmul.f32 %v1118_v15, %v1062_v62  ;;  %vm1056_vm3 = vcmp.lt.f32.partialorder %v4695_v6, 0.0 }
 0x89d   :  { %v1071_v9 = vadd.f32 1.0, %v1067_v4  ;;  %v1065_v12 = vand.u32 2147483647, %v4698_v8  ;;  %v1123_v22 = vmul.f32 %v1119_v17, %v1063_v1  ;;  %vm1057_vm4 = vcmp.lt.f32.partialorder %v4698_v8, 0.0 }
 0x89e   :  { %3709 = vrcp.f32 %v1070_v7  ;;  %v1068_v11 = vmul.f32 0.3275911, %v1064_v10  ;;  %v1120_v23 = vsub.f32 0.0, %v1064_v10  ;;  %v1126_v26 = vmul.f32 1.442695, %v1122_v19 }
 0x89f   :  { %3711 = vrcp.f32 %v1071_v9  ;;  %v1069_v14 = vmul.f32 0.3275911, %v1065_v12  ;;  %v1121_v27 = vsub.f32 0.0, %v1065_v12  ;;  %v1128_v32 = vmul.f32 1.442695, %v1123_v22 }
 0x8a0   :  { %v1072_v13 = vadd.f32 1.0, %v1068_v11  ;;  %v1124_v35 = vmul.f32 %v1120_v23, %v1064_v10 }
 0x8a1   :  { %v1073_v16 = vadd.f32 1.0, %v1069_v14  ;;  %v1125_v34 = vmul.f32 %v1121_v27, %v1065_v12  ;;  %v4099_v27 = vmov 1.0  }
 0x8a2   :  { %3713 = vrcp.f32 %v1072_v13  ;;  %v1130_v47 = vmul.f32 1.442695, %v1124_v35 }
 0x8a3   :  { %3715 = vrcp.f32 %v1073_v16  ;;  %v1132_v61 = vmul.f32 1.442695, %v1125_v34 }
 0x8a4   :  { %3717 = vpow2.f32 %v1126_v26 }
 0x8a5   :  { %3719 = vpow2.f32 %v1128_v32 }
 0x8a6   :  { %3721 = vpow2.f32 %v1130_v47  ;;  %v1046_v47 = vmul.f32 0.5, %v4678_v50  ;;  %v1048_v50 = vmul.f32 0.5, %v4689_v63  ;;  %v1312_v63 = vld [vmem:[#allocation5 + $0x188] sm:$0xff] }
 0x8a7   :  { %3723 = vpow2.f32 %v1132_v61 }
 0x8a8   :  { %v3710_v18 = vpop.eup %3709 }
 0x8a9   :  { %v3712_v20 = vpop.eup %3711  ;;  %v1082_v21 = vmul.f32 1.0614054, %v3710_v18 }
 0x8aa   :  { %v1083_v24 = vmul.f32 1.0614054, %v3712_v20 }
 0x8ab   :  { %v1086_v25 = vadd.f32 -1.4531521, %v1082_v21 }
 0x8ac   :  { %v1087_v28 = vadd.f32 -1.4531521, %v1083_v24  ;;  %v3714_v30 = vpop.eup %3713 }
 0x8ad   :  { %v1090_v31 = vmul.f32 %v3710_v18, %v1086_v25  ;;  %v1084_v29 = vmul.f32 1.0614054, %v3714_v30  ;;  %v3716_v37 = vpop.eup %3715 }
 0x8ae   :  { %v1091_v36 = vmul.f32 %v3712_v20, %v1087_v28  ;;  %v1085_v51 = vmul.f32 1.0614054, %v3716_v37  ;;  %v3718_v15 = vpop.eup %3717  ;;  %v1058_v28 = vsel %vm1054_vm1, -1.0, %v4099_v27 }
 0x8af   :  { %v1094_v33 = vadd.f32 1.4214138, %v1090_v31  ;;  %v1088_v44 = vadd.f32 -1.4531521, %v1084_v29  ;;  %v3720_v19 = vpop.eup %3719 }
 0x8b0   :  { %v1095_v42 = vadd.f32 1.4214138, %v1091_v36  ;;  %v1089_v57 = vadd.f32 -1.4531521, %v1085_v51  ;;  %v3722_v32 = vpop.eup %3721 }
 0x8b1   :  { %v1098_v46 = vmul.f32 %v3710_v18, %v1094_v33  ;;  %v1092_v53 = vmul.f32 %v3714_v30, %v1088_v44  ;;  %v3724_v34 = vpop.eup %3723 }
 0x8b2   :  { %v1099_v52 = vmul.f32 %v3712_v20, %v1095_v42  ;;  %v1093_v3 = vmul.f32 %v3716_v37, %v1089_v57  ;;  %v1047_v42 = vmul.f32 0.5, %v4680_v58  ;;  %v1061_v57 = vsel %vm1057_vm4, -1.0, %v4099_v27 }
 0x8b3   :  { %v1102_v55 = vadd.f32 -0.28449672, %v1098_v46  ;;  %v1096_v0 = vadd.f32 1.4214138, %v1092_v53  ;;  %v1049_v58 = vmul.f32 0.5, %v4692_v2 }
 0x8b4   :  { %v1103_v62 = vadd.f32 -0.28449672, %v1099_v52  ;;  %v1097_v10 = vadd.f32 1.4214138, %v1093_v3  ;;  %v2572_v3 = vld [vmem:[#allocation16] ss:$0 sm:$0xff] }
 0x8b5   :  { %v1106_v1 = vmul.f32 %v3710_v18, %v1102_v55  ;;  %v1100_v7 = vmul.f32 %v3714_v30, %v1096_v0 }
 0x8b6   :  { %v1107_v4 = vmul.f32 %v3712_v20, %v1103_v62  ;;  %v1101_v14 = vmul.f32 %v3716_v37, %v1097_v10 }
 0x8b7   :  { %v1110_v9 = vadd.f32 0.2548296, %v1106_v1  ;;  %v1104_v12 = vadd.f32 -0.28449672, %v1100_v7 }
 0x8b8   :  { %v1111_v11 = vadd.f32 0.2548296, %v1107_v4  ;;  %v1105_v22 = vadd.f32 -0.28449672, %v1101_v14 }
 0x8b9   :  { %v1114_v13 = vmul.f32 %v3710_v18, %v1110_v9  ;;  %v1108_v17 = vmul.f32 %v3714_v30, %v1104_v12 }
 0x8ba   :  { %v1115_v16 = vmul.f32 %v3712_v20, %v1111_v11  ;;  %v1109_v26 = vmul.f32 %v3716_v37, %v1105_v22  ;;  %v1059_v20 = vsel %vm1055_vm2, -1.0, %v4099_v27  ;;  %v1321_v22 = vld [vmem:[#allocation5 + $0x1d0] sm:$0xff] }
 0x8bb   :  { %v1134_v21 = vmul.f32 %v3718_v15, %v1114_v13  ;;  %v1112_v24 = vadd.f32 0.2548296, %v1108_v17  ;;  %v1315_v15 = vld [vmem:[#allocation5 + $0x1a0] sm:$0xff] }
 0x8bc   :  { %v1135_v23 = vmul.f32 %v3720_v19, %v1115_v16  ;;  %v1113_v36 = vadd.f32 0.2548296, %v1109_v26  ;;  %v1311_v16 = vld [vmem:[#allocation5 + $0x180] sm:$0xff]  ;;  %v3396_v17 = vpack.c.bf16 %v1315_v15, %v1312_v63  ;;  %v1314_v19 = vld [vmem:[#allocation5 + $0x198] sm:$0xff]  ;;  %v1316_v26 = vld [vmem:[#allocation5 + $0x1a8] sm:$0xff] }
 0x8bd   :  { %v1138_v25 = vsub.f32 1.0, %v1134_v21  ;;  %v1116_v18 = vmul.f32 %v3714_v30, %v1112_v24  ;;  %v1060_v30 = vsel %vm1056_vm3, -1.0, %v4099_v27  ;;  %v1318_v21 = vld [vmem:[#allocation5 + $0x1b8] sm:$0xff]  ;;  %v1340_v63 = vld [vmem:[#allocation5 + $0x268] sm:$0xff]  ;;  %v1341_v15 = vld [vmem:[#allocation5 + $0x270] sm:$0xff] }
 0x8be   :  { %v1139_v31 = vsub.f32 1.0, %v1135_v23  ;;  %v1117_v60 = vmul.f32 %v3716_v37, %v1113_v36  ;;  %v3398_v23 = vpack.c.bf16 %v1314_v19, %v1311_v16  ;;  %v3400_v24 = vpack.c.bf16 %v1321_v22, %v1318_v21  ;;  %3397 = vmatprep.subr.bf16.mxu1 %v3396_v17  ;;  %v1344_v16 = vld [vmem:[#allocation5 + $0x288] sm:$0xff]  ;;  %v1351_v22 = vld [vmem:[#allocation5 + $0x2c0] sm:$0xff] }
 0x8bf   :  { %v1142_v35 = vmul.f32 %v1138_v25, %v1058_v28  ;;  %v1136_v29 = vmul.f32 %v3722_v32, %v1116_v18  ;;  %v1313_v25 = vld [vmem:[#allocation5 + $0x190] sm:$0xff]  ;;  %v1324_v18 = vld [vmem:[#allocation5 + $0x1e8] sm:$0xff]  ;;  %v1327_v32 = vld [vmem:[#allocation5 + $0x200] sm:$0xff]  ;;  %v3418_v19 = vpack.c.bf16 %v1344_v16, %v1341_v15 }
 0x8c0   :  { %v1143_v59 = vmul.f32 %v1139_v31, %v1059_v20  ;;  %v1137_v51 = vmul.f32 %v3724_v34, %v1117_v60  ;;  %v3428_v28 = vpack.c.bf16 %v1316_v26, %v1313_v25  ;;  %v1320_v31 = vld [vmem:[#allocation5 + $0x1c8] sm:$0xff]  ;;  %3399 = vmatpush1.bf16.msra.mxu1 %v3398_v23  ;;  %v1322_v20 = vld [vmem:[#allocation5 + $0x1d8] sm:$0xff]  ;;  %v3404_v36 = vpack.c.bf16 %v1327_v32, %v1324_v18  ;;  %v1343_v23 = vld [vmem:[#allocation5 + $0x280] sm:$0xff] }
 0x8c1   :  { %v1146_v33 = vadd.f32 1.0, %v1142_v35  ;;  %v1140_v46 = vsub.f32 1.0, %v1136_v29  ;;  %v1319_v35 = vld [vmem:[#allocation5 + $0x1c0] sm:$0xff]  ;;  %3401 = vmatprep.subr.bf16.mxu1 %v3400_v24  ;;  %v1348_v21 = vld [vmem:[#allocation5 + $0x2a8] sm:$0xff]  ;;  %v1346_v25 = vld [vmem:[#allocation5 + $0x298] sm:$0xff] }
 0x8c2   :  { %v1147_v44 = vadd.f32 1.0, %v1143_v59  ;;  %v1141_v6 = vsub.f32 1.0, %v1137_v51  ;;  %3429 = vmatprep.subr.bf16.mxu0 %v3428_v28  ;;  %v3432_v59 = vpack.c.bf16 %v1322_v20, %v1319_v35  ;;  %v1323_v29 = vld [vmem:[#allocation5 + $0x1e0] sm:$0xff]  ;;  %v3420_v24 = vpack.c.bf16 %v1351_v22, %v1348_v21  ;;  %v1354_v18 = vld [vmem:[#allocation5 + $0x2d8] sm:$0xff]  ;;  %v1357_v32 = vld [vmem:[#allocation5 + $0x2f0] sm:$0xff] }
 0x8c3   :  { %v1144_v53 = vmul.f32 %v1140_v46, %v1060_v30  ;;  %v1150_v55 = vmul.f32 %v1146_v33, %v1046_v47  ;;  %v1326_v33 = vld [vmem:[#allocation5 + $0x1f8] sm:$0xff]  ;;  %v1347_v26 = vld [vmem:[#allocation5 + $0x2a0] sm:$0xff]  ;;  %v3424_v35 = vpack.c.bf16 %v1357_v32, %v1354_v18  ;;  %v1352_v20 = vld [vmem:[#allocation5 + $0x2c8] sm:$0xff] }
 0x8c4   :  { %v1151_v52 = vmul.f32 %v1147_v44, %v1047_v42  ;;  %v1145_v37 = vmul.f32 %v1141_v6, %v1061_v57  ;;  %v3406_v60 = vpack.c.bf16 %v1326_v33, %v1323_v29  ;;  %v1325_v6 = vld [vmem:[#allocation5 + $0x1f0] sm:$0xff] }
 0x8c5   :  { %v1148_v61 = vadd.f32 1.0, %v1144_v53  ;;  %v1330_v53 = vld [vmem:[#allocation5 + $0x218] sm:$0xff] }
 0x8c6   :  { %1257 = vmatprep.mubr.f32.mxu0 %v1151_v52  ;;  %v1149_v62 = vadd.f32 1.0, %v1145_v37  ;;  %v1328_v37 = vld [vmem:[#allocation5 + $0x208] sm:$0xff]  ;;  %v3768_v15 = vld [vmem:[%s5055_s7 + $0x18] sm:$0xff] }
 0x8c7   :  { %1258 = vmatmul.mubr.f32.vlgmr.msra.gmra.mrb[8].mxu0 %v1150_v55  ;;  %v1152_v1 = vmul.f32 %v1148_v61, %v1048_v50  ;;  %v1333_v55 = vld [vmem:[#allocation5 + $0x230] sm:$0xff] }
 0x8c8   :  { %v1153_v0 = vmul.f32 %v1149_v62, %v1049_v58  ;;  %3431 = vmatpush3.bf16.msra.mxu0 %v3428_v28  ;;  %v3408_v57 = vpack.c.bf16 %v1333_v55, %v1330_v53  ;;  %v1329_v61 = vld [vmem:[#allocation5 + $0x210] sm:$0xff]  ;;  %v1332_v58 = vld [vmem:[#allocation5 + $0x228] sm:$0xff]  ;;  %v3436_v62 = vpack.c.bf16 %v1328_v37, %v1325_v6  ;;  %v3448_v28 = vpack.c.bf16 %v1346_v25, %v1343_v23 }
 0x8c9   :  { %3433 = vmatprep.subr.bf16.mxu0 %v3432_v59  ;;  %v3410_v50 = vpack.c.bf16 %v1332_v58, %v1329_v61  ;;  %v2574_v61 = vld [vmem:[#allocation19] ss:$0 sm:$0xff] }
 0x8ca   :  { %1262 = vmatprep.mubr.f32.mxu0 %v1153_v0  ;;  %v1336_v0 = vld [vmem:[#allocation5 + $0x248] sm:$0xff] }
 0x8cb   :  { %1263 = vmatmul.mubr.f32.gmra.mrb[10].mxu0 %v1152_v1  ;;  %v1339_v1 = vld [vmem:[#allocation5 + $0x260] sm:$0xff] }
 0x8cc   :  { %3435 = vmatpush3.bf16.msra.mxu0 %v3432_v59  ;;  %v1356_v59 = vld [vmem:[#allocation5 + $0x2e8] sm:$0xff] }
 0x8cd   :  { %3437 = vmatprep.subr.bf16.mxu0 %v3436_v62 }
 0x8d0   :  { %3439 = vmatpush3.bf16.msra.mxu0 %v3436_v62 }
 0x99a   :  { %v2718_v8 = vpop.f32.mrb[8].mxu0 }
 0x99b   :  { %v2719_v4 = vpop.f32.mrb[9].mxu0 }
 0x99c   :  { %v2720_v7 = vadd.f32 %v2719_v4, %v2718_v8  ;;  %v1331_v8 = vld [vmem:[#allocation5 + $0x220] sm:$0xff]  ;;  %v1334_v4 = vld [vmem:[#allocation5 + $0x238] sm:$0xff] }
 0x99e   :  { %v1260_v9 = vadd.f32 %v2720_v7, %v2572_v3  ;;  %v2721_v11 = vpop.f32.mrb[10].mxu0  ;;  %v1335_v7 = vld [vmem:[#allocation5 + $0x240] sm:$0xff] }
 0x99f   :  { %v2722_v12 = vpop.f32.mrb[11].mxu0 }
 0x9a0   :  { %v1268_v10 = vadd.f32 %v1260_v9, %v4668_v49  ;;  %v2723_v13 = vadd.f32 %v2722_v12, %v2721_v11  ;;  %v1317_v49 = vld [vmem:[#allocation5 + $0x1b0] sm:$0xff]  ;;  %v1338_v9 = vld [vmem:[#allocation5 + $0x258] sm:$0xff] }
 0x9a1   :  { %v3414_v11 = vpack.c.bf16 %v1338_v9, %v1335_v7  ;;  %v1342_v12 = vld [vmem:[#allocation5 + $0x278] sm:$0xff] }
 0x9a2   :  { %1272 = vadd.xlane.f32.xlu0 %v1268_v10  ;;  %v1265_v14 = vadd.f32 %v2723_v13, %v2572_v3  ;;  %v3412_v3 = vpack.c.bf16 %v1339_v1, %v1336_v0  ;;  %v1345_v13 = vld [vmem:[#allocation5 + $0x290] sm:$0xff] }
 0x9a4   :  { %v1269_v2 = vadd.f32 %v1265_v14, %v4672_v56  ;;  %v3402_v56 = vpack.c.bf16 %v1320_v31, %v1317_v49  ;;  %v1337_v14 = vld [vmem:[#allocation5 + $0x250] sm:$0xff]  ;;  %v1350_v49 = vld [vmem:[#allocation5 + $0x2b8] sm:$0xff] }
 0x9a5   :  { %v3444_v17 = vpack.c.bf16 %v1340_v63, %v1337_v14  ;;  %v3422_v31 = vpack.c.bf16 %v1350_v49, %v1347_v26  ;;  %v3769_v26 = vld [vmem:[%s5055_s7 + $0x20] sm:$0xff] }
 0x9a6   :  { %1274 = vadd.xlane.f32.xlu1 %v1269_v2  ;;  %3403 = vmatpush1.bf16.msra.mxu1 %v3402_v56  ;;  %v1349_v56 = vld [vmem:[#allocation5 + $0x2b0] sm:$0xff] }
 0x9a7   :  { %3405 = vmatprep.subr.bf16.mxu1 %v3404_v36  ;;  %v1353_v36 = vld [vmem:[#allocation5 + $0x2d0] sm:$0xff]  ;;  %v3452_v29 = vpack.c.bf16 %v1352_v20, %v1349_v56 }
 0x9a8   :  { %v3426_v33 = vpack.c.bf16 %v1356_v59, %v1353_v36  ;;  %v3771_v56 = vld [vmem:[%s5055_s7 + $0x30] sm:$0xff]  ;;  %v3772_v20 = vld [vmem:[%s5055_s7 + $0x38] sm:$0xff] }
 0x9aa   :  { %3407 = vmatpush1.bf16.msra.mxu1 %v3406_v60  ;;  %v1355_v60 = vld [vmem:[#allocation5 + $0x2e0] sm:$0xff] }
 0x9ab   :  { %3409 = vmatprep.subr.bf16.mxu1 %v3408_v57  ;;  %v2573_v57 = vld [vmem:[#allocation17] ss:$0 sm:$0xff] }
 0x9ae   :  { %3411 = vmatpush1.bf16.msra.mxu1 %v3410_v50 }
 0x9af   :  { %3413 = vmatprep.subr.bf16.mxu1 %v3412_v3 }
 0x9b2   :  { %3415 = vmatpush1.bf16.msra.mxu1 %v3414_v11 }
 0xa2f   :  { %v1273_v34 = vpop.xlane.xlu0 %1272 }
 0xa30   :  { %v1276_v42 = vmul.f32 0.0078125, %v1273_v34  ;;  %v1358_v34 = vld [vmem:[#allocation5 + $0x2f8] sm:$0xff] }
 0xa32   :  { %v4716_v44 = vsub.f32 %v1268_v10, %v1276_v42  ;;  %v3440_v10 = vpack.c.bf16 %v1334_v4, %v1331_v8  ;;  %v3456_v42 = vpack.c.bf16 %v1358_v34, %v1355_v60 }
 0xa33   :  { %v1275_v47 = vpop.xlane.xlu1 %1274 }
 0xa34   :  { %v1280_v46 = vmul.f32 %v4716_v44, %v4716_v44  ;;  %v1277_v30 = vmul.f32 0.0078125, %v1275_v47  ;;  %3441 = vmatprep.subr.bf16.mxu0 %v3440_v10 }
 0xa35   :  { %3443 = vmatpush3.bf16.msra.mxu0 %v3440_v10 }
 0xa36   :  { %1282 = vadd.xlane.f32.xlu0 %v1280_v46  ;;  %v4720_v51 = vsub.f32 %v1269_v2, %v1277_v30  ;;  %v3416_v2 = vpack.c.bf16 %v1345_v13, %v1342_v12  ;;  %3445 = vmatprep.subr.bf16.mxu0 %v3444_v17  ;;  %v3766_v13 = vld [vmem:[%s5055_s7 + $0x8] sm:$0xff] }
 0xa38   :  { %v1281_v52 = vmul.f32 %v4720_v51, %v4720_v51  ;;  %3417 = vmatprep.subr.bf16.mxu1 %v3416_v2  ;;  %v3767_v2 = vld [vmem:[%s5055_s7 + $0x10] sm:$0xff] }
 0xa39   :  { %3419 = vmatpush1.bf16.msra.mxu1 %v3418_v19  ;;  %3447 = vmatpush3.bf16.msra.mxu0 %v3444_v17 }
 0xa3a   :  { %1284 = vadd.xlane.f32.xlu1 %v1281_v52  ;;  %3421 = vmatprep.subr.bf16.mxu1 %v3420_v24 }
 0xa3b   :  { %3449 = vmatprep.subr.bf16.mxu0 %v3448_v28 }
 0xa3d   :  { %3423 = vmatpush1.bf16.msra.mxu1 %v3422_v31  ;;  %3451 = vmatpush3.bf16.msra.mxu0 %v3448_v28  ;;  %v3770_v28 = vld [vmem:[%s5055_s7 + $0x28] sm:$0xff] }
 0xa3e   :  { %3425 = vmatprep.subr.bf16.mxu1 %v3424_v35  ;;  %3453 = vmatprep.subr.bf16.mxu0 %v3452_v29 }
 0xa41   :  { %3427 = vmatpush1.bf16.msra.mxu1 %v3426_v33  ;;  %3455 = vmatpush3.bf16.msra.mxu0 %v3452_v29 }
 0xa42   :  { %3457 = vmatprep.subr.bf16.mxu0 %v3456_v42 }
 0xa45   :  { %3459 = vmatpush3.bf16.msra.mxu0 %v3456_v42 }
 0xac3   :  { %v1283_v46 = vpop.xlane.xlu0 %1282 }
 0xac4   :  { %v1286_v47 = vmul.f32 0.0078125, %v1283_v46 }
 0xac6   :  { %v1288_v30 = vadd.f32 1e-12, %v1286_v47 }
 0xac7   :  { %v1285_v52 = vpop.xlane.xlu1 %1284 }
 0xac8   :  { %3725 = vrsqrt.f32 %v1288_v30  ;;  %v1287_v53 = vmul.f32 0.0078125, %v1285_v52 }
 0xaca   :  { %v1289_v55 = vadd.f32 1e-12, %v1287_v53 }
 0xacc   :  { %3727 = vrsqrt.f32 %v1289_v55 }
 0xad2   :  { %v3726_v6 = vpop.eup %3725 }
 0xad3   :  { %v1292_v37 = vmul.f32 %v3726_v6, %v4716_v44  ;;  %v1360_v44 = vld [vmem:[#allocation7 + $0x3] sm:$0x7] }
 0xad4   :  { %v1365_v3 = vrot.slane %v1360_v44, %v4470_v39  ;;  %v1369_v4 = vrot.slane %v1360_v44, %v4473_v40  ;;  %v1373_v32 = vrot.slane %v1360_v44, %v358_v43  ;;  %v3774_v44 = vld [vmem:[%s5056_s6] sm:$0xff] }
 0xad5   :  { %v1300_v58 = vmul.f32 %v2573_v57, %v1292_v37 }
 0xad6   :  { %v3728_v50 = vpop.eup %3727 }
 0xad7   :  { %v4725_v62 = vadd.f32 %v2574_v61, %v1300_v58  ;;  %v1293_v0 = vmul.f32 %v3728_v50, %v4720_v51  ;;  %v3765_v51 = vld [vmem:[%s5055_s7] sm:$0xff]  ;;  %s5057_s7 = sld [smem:[#allocation38_spill]] }
 0xad9   :  { %1442 = vmatmul.mubr.f32.vlgmr.msra.gmra.mrb[10].mxu1 %v4725_v62  ;;  %3023 = vmatprep.mubr.f32.mxu0 %v4725_v62  ;;  %v1301_v1 = vmul.f32 %v2573_v57, %v1293_v0  ;;  %v3773_v0 = vld [vmem:[%s5056_s6 + $0x8] sm:$0xff] }
 0xada   :  { %1447 = vmatprep.mubr.f32.mxu1 %v4098_v5 }
 0xadb   :  { %v4731_v8 = vadd.f32 %v2574_v61, %v1301_v1 }
 0xadd   :  { %1448 = vmatmul.mubr.f32.gmra.mrb[12].mxu1 %v4731_v8  ;;  %3024 = vmatmul.mubr.f32.vlgmr.msra.gmra.mrb[12].mxu0 %v4731_v8 }
 0xbac   :  { %v1443_v7 = vpop.f32.mrb[10].mxu1 }
 0xbad   :  { %v1444_v9 = vadd.f32 %v1443_v7, %v1365_v3  ;;  %v1445_v10 = vpop.f32.mrb[11].mxu1 }
 0xbae   :  { %v1446_v11 = vadd.f32 %v1445_v10, %v1369_v4 }
 0xbaf   :  { %3042 = vmatprep.mubr.f32.mxu1 %v1444_v9 }
 0xbb0   :  { %v1529_v12 = vmul.f32 %v3765_v51, %v1446_v11  ;;  %v1530_v14 = vmul.f32 %v3766_v13, %v1446_v11  ;;  %v1531_v63 = vmul.f32 %v3767_v2, %v1446_v11  ;;  %v1532_v16 = vmul.f32 %v3768_v15, %v1446_v11  ;;  %v1449_v19 = vpop.f32.mrb[12].mxu1  ;;  %v3025_v21 = vpop.f32.mrb[12].mxu0 }
 0xbb1   :  { %v1451_v22 = vpop.f32.mrb[13].mxu1  ;;  %v1520_v23 = vpop.f32.mrb[13].mxu0  ;;  %v1526_v38 = vadd.f32 %v3025_v21, %v1373_v32  ;;  %v1450_v46 = vadd.f32 %v1449_v19, %v1365_v3  ;;  %v1803_v21 = vld [vmem:[#allocation8 + $0xa0] sm:$0xff] }
 0xbb2   :  { %v3460_v17 = vpack.c.bf16 %v1530_v14, %v1529_v12  ;;  %v3464_v24 = vpack.c.bf16 %v1532_v16, %v1531_v63  ;;  %v1452_v25 = vadd.f32 %v1451_v22, %v1369_v4  ;;  %v1521_v59 = vadd.f32 %v1520_v23, %v1373_v32  ;;  %v1799_v63 = vld [vmem:[#allocation8 + $0x80] sm:$0xff]  ;;  %v1805_v22 = vld [vmem:[#allocation8 + $0xb0] sm:$0xff]  ;;  %v1806_v23 = vld [vmem:[#allocation8 + $0xb8] sm:$0xff] }
 0xbb3   :  { %v1541_v30 = vmul.f32 %v3769_v26, %v1526_v38  ;;  %v1542_v52 = vmul.f32 %v3770_v28, %v1526_v38  ;;  %v1543_v55 = vmul.f32 %v3771_v56, %v1526_v38  ;;  %v1544_v6 = vmul.f32 %v3772_v20, %v1526_v38  ;;  %v1812_v32 = vld [vmem:[#allocation8 + $0xe8] sm:$0xff] }
 0xbb4   :  { %3461 = vmatprep.subr.bf16.mxu1 %v3460_v17  ;;  %v1533_v49 = vmul.f32 %v3769_v26, %v1452_v25  ;;  %v1534_v31 = vmul.f32 %v3770_v28, %v1452_v25  ;;  %v1535_v35 = vmul.f32 %v3771_v56, %v1452_v25  ;;  %v1536_v36 = vmul.f32 %v3772_v20, %v1452_v25  ;;  %v1808_v25 = vld [vmem:[#allocation8 + $0xc8] sm:$0xff]  ;;  %v1810_v28 = vld [vmem:[#allocation8 + $0xd8] sm:$0xff] }
 0xbb5   :  { %3463 = vmatpush3.bf16.xpose.msra.mxu1 %v3460_v17  ;;  %v1537_v33 = vmul.f32 %v3765_v51, %v1521_v59  ;;  %v1538_v60 = vmul.f32 %v3766_v13, %v1521_v59  ;;  %v1539_v43 = vmul.f32 %v3767_v2, %v1521_v59  ;;  %v1540_v42 = vmul.f32 %v3768_v15, %v1521_v59  ;;  %v1801_v15 = vld [vmem:[#allocation8 + $0x90] sm:$0xff]  ;;  %v1802_v17 = vld [vmem:[#allocation8 + $0x98] sm:$0xff] }
 0xbb6   :  { %3465 = vmatprep.subr.bf16.mxu1 %v3464_v24  ;;  %v3468_v18 = vpack.c.bf16 %v1534_v31, %v1533_v49  ;;  %v3472_v29 = vpack.c.bf16 %v1536_v36, %v1535_v35  ;;  %v3484_v53 = vpack.c.bf16 %v1542_v52, %v1541_v30  ;;  %v3488_v57 = vpack.c.bf16 %v1544_v6, %v1543_v55  ;;  %v1809_v49 = vld [vmem:[#allocation8 + $0xd0] sm:$0xff]  ;;  %v1811_v31 = vld [vmem:[#allocation8 + $0xe0] sm:$0xff]  ;;  %v1814_v20 = vld [vmem:[#allocation8 + $0xf8] sm:$0xff] }
 0xbb7   :  { %v3476_v34 = vpack.c.bf16 %v1538_v60, %v1537_v33  ;;  %v3480_v47 = vpack.c.bf16 %v1540_v42, %v1539_v43  ;;  %v3512_v19 = vpack.c.bf16 %v1802_v17, %v1801_v15  ;;  %v3532_v56 = vpack.c.bf16 %v1812_v32, %v1811_v31  ;;  %v1813_v35 = vld [vmem:[#allocation8 + $0xf0] sm:$0xff]  ;;  %v2580_v30 = vld [vmem:[%s5016_s8 + $0x1] ss:$0 sm:$0xff]  ;;  %v2601_v31 = vld [vmem:[%s5019_s11 + $0x190] sm:$0xff] }
 0xbb8   :  { %v3536_v36 = vpack.c.bf16 %v1814_v20, %v1813_v35  ;;  %v2606_v32 = vld [vmem:[%s5019_s11 + $0x1b8] sm:$0xff]  ;;  %v2603_v20 = vld [vmem:[%s5019_s11 + $0x1a0] sm:$0xff] }
 0xbbd   :  { %3467 = vmatpush3.bf16.xpose.msra.mxu1 %v3464_v24  ;;  %v1807_v24 = vld [vmem:[#allocation8 + $0xc0] sm:$0xff] }
 0xbbe   :  { %3469 = vmatprep.subr.bf16.mxu1 %v3468_v18  ;;  %v3524_v26 = vpack.c.bf16 %v1808_v25, %v1807_v24  ;;  %v2600_v25 = vld [vmem:[%s5019_s11 + $0x188] sm:$0xff] }
 0xbc5   :  { %3471 = vmatpush3.bf16.xpose.msra.mxu1 %v3468_v18  ;;  %v3528_v18 = vpack.c.bf16 %v1810_v28, %v1809_v49  ;;  %v2599_v49 = vld [vmem:[%s5019_s11 + $0x180] sm:$0xff] }
 0xbc6   :  { %3473 = vmatprep.subr.bf16.mxu1 %v3472_v29 }
 0xbcd   :  { %3475 = vmatpush3.bf16.xpose.msra.mxu1 %v3472_v29 }
 0xbce   :  { %3477 = vmatprep.subr.bf16.mxu1 %v3476_v34 }
 0xbd4   :  { %3043 = vmatmul.mubr.f32.vlgmr.msra.gmra.mrb[14].mxu1 %v1450_v46 }
 0xbd5   :  { %3479 = vmatpush3.bf16.msra.mxu1 %v3476_v34 }
 0xbd6   :  { %3481 = vmatprep.subr.bf16.mxu1 %v3480_v47 }
 0xbd9   :  { %3483 = vmatpush3.bf16.msra.mxu1 %v3480_v47 }
 0xbda   :  { %3485 = vmatprep.subr.bf16.mxu1 %v3484_v53 }
 0xbdd   :  { %3487 = vmatpush3.bf16.msra.mxu1 %v3484_v53 }
 0xbde   :  { %3489 = vmatprep.subr.bf16.mxu1 %v3488_v57 }
 0xbe1   :  { %3491 = vmatpush3.bf16.msra.mxu1 %v3488_v57 }
 0xbe2   :  { %3493 = vmatprep.subr.bf16.mxu1 %v4542_v41 }
 0xca7   :  { %v3044_v37 = vpop.f32.mrb[14].mxu1 }
 0xca8   :  { %v1621_v61 = vmul.f32 0.17677669, %v3044_v37  ;;  %v1611_v58 = vpop.f32.mrb[15].mxu1 }
 0xca9   :  { %v1620_v50 = vmul.f32 0.17677669, %v1611_v58  ;;  %v2586_v58 = vld [vmem:[%s5019_s11 + $0x118] sm:$0xff] }
 0xcaa   :  { %v1623_v1 = vadd.f32 %v3773_v0, %v1621_v61  ;;  %v2584_v61 = vld [vmem:[%s5019_s11 + $0x108] sm:$0xff] }
 0xcab   :  { %v1622_v3 = vadd.f32 %v3774_v44, %v1620_v50  ;;  %v2583_v50 = vld [vmem:[%s5019_s11 + $0x100] sm:$0xff]  ;;  %v3540_v0 = vpack.c.bf16 %v2586_v58, %v2584_v61 }
 0xcac   :  { %v1627_v4 = vsel %vm610_vm0, %v1623_v1, -inf }
 0xcad   :  { %1628 = vmax.xlane.f32.xlu1 %v1627_v4  ;;  %v1624_v7 = vsel %vm610_vm0, %v1622_v3, -inf  ;;  %v2587_v4 = vld [vmem:[%s5019_s11 + $0x120] sm:$0xff] }
 0xcae   :  { %1625 = vmax.xlane.f32.xlu0 %v1624_v7  ;;  %v2589_v7 = vld [vmem:[%s5019_s11 + $0x130] sm:$0xff] }
 0xd3a   :  { %v1629_v9 = vpop.xlane.xlu1 %1628 }
 0xd3b   :  { %v1631_v10 = vsub.f32 %v1623_v1, %v1629_v9  ;;  %v1626_v11 = vpop.xlane.xlu0 %1625  ;;  %v2590_v1 = vld [vmem:[%s5019_s11 + $0x138] sm:$0xff]  ;;  %v2592_v9 = vld [vmem:[%s5019_s11 + $0x148] sm:$0xff] }
 0xd3c   :  { %v1630_v51 = vsub.f32 %v1622_v3, %v1626_v11  ;;  %v3546_v11 = vpack.c.bf16 %v2589_v7, %v2587_v4 }
 0xd3d   :  { %v1634_v12 = vmul.f32 1.442695, %v1631_v10  ;;  %v2594_v10 = vld [vmem:[%s5019_s11 + $0x158] sm:$0xff] }
 0xd3e   :  { %v1632_v13 = vmul.f32 1.442695, %v1630_v51  ;;  %v3548_v51 = vpack.c.bf16 %v2594_v10, %v2592_v9  ;;  %v2190_v10 = vld [vmem:[#allocation14 + $0x180] sm:$0xff] }
 0xd40   :  { %3729 = vpow2.f32 %v1632_v13  ;;  %v2593_v13 = vld [vmem:[%s5019_s11 + $0x150] sm:$0xff] }
 0xd41   :  { %3731 = vpow2.f32 %v1634_v12  ;;  %v2591_v12 = vld [vmem:[%s5019_s11 + $0x140] sm:$0xff] }
 0xd4a   :  { %v3730_v14 = vpop.eup %3729 }
 0xd4b   :  { %v3732_v2 = vpop.eup %3731  ;;  %3061 = vmatprep.mubr.msk.f32.mxu1 %vm610_vm0, %v3730_v14 }
 0xd4c   :  { %3062 = vmatmul.mubr.msk.f32.vlgmr.msra.gmra.mrb[16].mxu1 %vm610_vm0, %v3732_v2 }
 0xd4d   :  { %3495 = vmatpush3.bf16.msra.mxu1 %v4542_v41  ;;  %3080 = vmatprep.mubr.msk.f32.mxu1 %vm610_vm0, %v3730_v14  ;;  %v1800_v41 = vld [vmem:[#allocation8 + $0x88] sm:$0xff]  ;;  %v3550_v14 = vpack.c.bf16 %v2593_v13, %v2591_v12  ;;  %v2175_v13 = vld [vmem:[#allocation14 + $0x108] sm:$0xff] }
 0xd4e   :  { %3497 = vmatprep.subr.bf16.mxu1 %v4547_v54  ;;  %v3508_v16 = vpack.c.bf16 %v1800_v41, %v1799_v63  ;;  %v2174_v12 = vld [vmem:[#allocation14 + $0x100] sm:$0xff] }
 0xd50   :  { %3509 = vmatprep.subr.bf16.mxu0 %v3508_v16 }
 0xd51   :  { %3499 = vmatpush3.bf16.msra.mxu1 %v4547_v54  ;;  %v1804_v54 = vld [vmem:[#allocation8 + $0xa8] sm:$0xff]  ;;  %3511 = vmatpush3.bf16.msra.mxu0 %v3508_v16 }
 0xd52   :  { %3501 = vmatprep.subr.bf16.mxu1 %v4556_v45  ;;  %3513 = vmatprep.subr.bf16.mxu0 %v3512_v19 }
 0xd55   :  { %3503 = vmatpush3.bf16.msra.mxu1 %v4556_v45  ;;  %v3516_v45 = vpack.c.bf16 %v1804_v54, %v1803_v21  ;;  %3515 = vmatpush3.bf16.msra.mxu0 %v3512_v19  ;;  %v2596_v54 = vld [vmem:[%s5019_s11 + $0x168] sm:$0xff] }
 0xd56   :  { %3505 = vmatprep.subr.bf16.mxu1 %v4560_v48 }
 0xd57   :  { %3517 = vmatprep.subr.bf16.mxu0 %v3516_v45 }
 0xd59   :  { %3507 = vmatpush3.bf16.msra.mxu1 %v4560_v48  ;;  %v3520_v48 = vpack.c.bf16 %v1806_v23, %v1805_v22  ;;  %3519 = vmatpush3.bf16.msra.mxu0 %v3516_v45  ;;  %v2598_v45 = vld [vmem:[%s5019_s11 + $0x178] sm:$0xff]  ;;  %v2595_v23 = vld [vmem:[%s5019_s11 + $0x160] sm:$0xff] }
 0xd5a   :  { %3541 = vmatprep.subr.bf16.mxu1 %v3540_v0  ;;  %v3552_v22 = vpack.c.bf16 %v2598_v45, %v2596_v54  ;;  %v2178_v54 = vld [vmem:[#allocation14 + $0x120] sm:$0xff]  ;;  %v2179_v45 = vld [vmem:[#allocation14 + $0x128] sm:$0xff] }
 0xd5b   :  { %3521 = vmatprep.subr.bf16.mxu0 %v3520_v48 }
 0xd5c   :  { %3081 = vmatmul.mubr.msk.f32.vlgmr.msra.gmra.mrb[18].mxu1 %vm610_vm0, %v3732_v2 }
 0xd5d   :  { %2052 = vmatprep.mubr.f32.mxu1 %v4098_v5  ;;  %3523 = vmatpush3.bf16.msra.mxu0 %v3520_v48  ;;  %v2597_v48 = vld [vmem:[%s5019_s11 + $0x170] sm:$0xff] }
 0xd5e   :  { %3525 = vmatprep.subr.bf16.mxu0 %v3524_v26  ;;  %v3554_v24 = vpack.c.bf16 %v2597_v48, %v2595_v23  ;;  %v2196_v23 = vld [vmem:[#allocation14 + $0x1b0] sm:$0xff]  ;;  %v2197_v48 = vld [vmem:[#allocation14 + $0x1b8] sm:$0xff] }
 0xd61   :  { %3527 = vmatpush3.bf16.msra.mxu0 %v3524_v26  ;;  %v2602_v26 = vld [vmem:[%s5019_s11 + $0x198] sm:$0xff] }
 0xd62   :  { %3529 = vmatprep.subr.bf16.mxu0 %v3528_v18  ;;  %v3556_v28 = vpack.c.bf16 %v2602_v26, %v2600_v25  ;;  %v2180_v25 = vld [vmem:[#allocation14 + $0x130] sm:$0xff]  ;;  %v2181_v26 = vld [vmem:[#allocation14 + $0x138] sm:$0xff] }
 0xd65   :  { %3531 = vmatpush3.bf16.msra.mxu0 %v3528_v18  ;;  %v2604_v18 = vld [vmem:[%s5019_s11 + $0x1a8] sm:$0xff] }
 0xd66   :  { %3533 = vmatprep.subr.bf16.mxu0 %v3532_v56  ;;  %v3560_v35 = vpack.c.bf16 %v2606_v32, %v2604_v18  ;;  %v2182_v32 = vld [vmem:[#allocation14 + $0x140] sm:$0xff] }
 0xd69   :  { %3535 = vmatpush3.bf16.msra.mxu0 %v3532_v56  ;;  %v3558_v56 = vpack.c.bf16 %v2601_v31, %v2599_v49  ;;  %v3586_v49 = vpack.c.bf16 %v2181_v26, %v2180_v25  ;;  %v2199_v31 = vld [vmem:[#allocation14 + $0x1c8] sm:$0xff] }
 0xd6a   :  { %3537 = vmatprep.subr.bf16.mxu0 %v3536_v36 }
 0xd6d   :  { %3539 = vmatpush3.bf16.msra.mxu0 %v3536_v36  ;;  %v2605_v36 = vld [vmem:[%s5019_s11 + $0x1b0] sm:$0xff] }
 0xe1f   :  { %v3063_v59 = vpop.f32.mrb[16].mxu1 }
 0xe20   :  { %v1708_v29 = vpop.f32.mrb[17].mxu1 }
 0xe2f   :  { %v3082_v33 = vpop.f32.mrb[18].mxu1 }
 0xe30   :  { %v1793_v60 = vmax.f32 %v3082_v33, 1e-30  ;;  %v1783_v34 = vpop.f32.mrb[19].mxu1  ;;  %v3562_v33 = vpack.c.bf16 %v2605_v36, %v2603_v20  ;;  %v2200_v20 = vld [vmem:[#allocation14 + $0x1d0] sm:$0xff]  ;;  %v2201_v36 = vld [vmem:[#allocation14 + $0x1d8] sm:$0xff] }
 0xe31   :  { %v1792_v38 = vmax.f32 %v1783_v34, 1e-30  ;;  %v2607_v34 = vld [vmem:[%s5019_s11 + $0x1c0] sm:$0xff] }
 0xe32   :  { %3733 = vrcp.f32 %v1793_v60 }
 0xe33   :  { %3735 = vrcp.f32 %v1792_v38  ;;  %v2609_v38 = vld [vmem:[%s5019_s11 + $0x1d0] sm:$0xff] }
 0xe3c   :  { %v3734_v43 = vpop.eup %3733 }
 0xe3d   :  { %v3736_v42 = vpop.eup %3735  ;;  %v1797_v46 = vmul.f32 %v3734_v43, %v3063_v59  ;;  %v2608_v59 = vld [vmem:[%s5019_s11 + $0x1c8] sm:$0xff] }
 0xe3e   :  { %v1795_v47 = vmul.f32 %v3736_v42, %v1708_v29  ;;  %v2610_v29 = vld [vmem:[%s5019_s11 + $0x1d8] sm:$0xff]  ;;  %v2612_v43 = vld [vmem:[%s5019_s11 + $0x1e8] sm:$0xff] }
 0xe3f   :  { %v3564_v60 = vpack.c.bf16 %v2610_v29, %v2608_v59  ;;  %v2614_v42 = vld [vmem:[%s5019_s11 + $0x1f8] sm:$0xff]  ;;  %v3592_v59 = vpack.c.bf16 %v2201_v36, %v2200_v20  ;;  %v2184_v29 = vld [vmem:[#allocation14 + $0x150] sm:$0xff] }
 0xe40   :  { %3115 = vmatprep.mubr.f32.mxu0 %v1795_v47  ;;  %v3568_v47 = vpack.c.bf16 %v2614_v42, %v2612_v43  ;;  %v2186_v42 = vld [vmem:[#allocation14 + $0x160] sm:$0xff] }
 0xe41   :  { %3116 = vmatmul.mubr.f32.vlgmr.msra.gmra.mrb[14].mxu0 %v1797_v46  ;;  %v3566_v46 = vpack.c.bf16 %v2609_v38, %v2607_v34  ;;  %v2202_v34 = vld [vmem:[#allocation14 + $0x1e0] sm:$0xff]  ;;  %v2203_v38 = vld [vmem:[#allocation14 + $0x1e8] sm:$0xff] }
 0xe42   :  { %v3596_v43 = vpack.c.bf16 %v2203_v38, %v2202_v34 }
 0xf14   :  { %v3117_v52 = vpop.f32.mrb[14].mxu0 }
 0xf15   :  { %v1895_v53 = vadd.f32 %v3117_v52, %v2580_v30  ;;  %v1889_v55 = vpop.f32.mrb[15].mxu0  ;;  %v2613_v52 = vld [vmem:[%s5019_s11 + $0x1f0] sm:$0xff] }
 0xf16   :  { %v1890_v6 = vadd.f32 %v2580_v30, %v1889_v55  ;;  %v2611_v30 = vld [vmem:[%s5019_s11 + $0x1e0] sm:$0xff] }
 0xf17   :  { %v1899_v57 = vadd.f32 %v1895_v53, %v4731_v8  ;;  %v2585_v8 = vld [vmem:[%s5019_s11 + $0x110] sm:$0xff]  ;;  %v3570_v53 = vpack.c.bf16 %v2613_v52, %v2611_v30  ;;  %v2204_v30 = vld [vmem:[#allocation14 + $0x1f0] sm:$0xff] }
 0xf18   :  { %v1898_v37 = vadd.f32 %v1890_v6, %v4725_v62  ;;  %v2588_v62 = vld [vmem:[%s5019_s11 + $0x128] sm:$0xff]  ;;  %v3542_v44 = vpack.c.bf16 %v2585_v8, %v2583_v50 }
 0xf19   :  { %1906 = vadd.xlane.f32.xlu1 %v1899_v57  ;;  %v3544_v3 = vpack.c.bf16 %v2590_v1, %v2588_v62  ;;  %v2581_v8 = vld [vmem:[#allocation10 + $0x1] ss:$0 sm:$0xff] }
 0xf1a   :  { %1904 = vadd.xlane.f32.xlu0 %v1898_v37  ;;  %3543 = vmatpush1.bf16.msra.mxu1 %v3542_v44  ;;  %v2582_v44 = vld [vmem:[#allocation11 + $0x1] ss:$0 sm:$0xff] }
 0xf1b   :  { %3545 = vmatprep.subr.bf16.mxu1 %v3544_v3  ;;  %v2205_v52 = vld [vmem:[#allocation14 + $0x1f8] sm:$0xff] }
 0xf1e   :  { %3547 = vmatpush1.bf16.msra.mxu1 %v3546_v11  ;;  %v2191_v11 = vld [vmem:[#allocation14 + $0x188] sm:$0xff] }
 0xf1f   :  { %3549 = vmatprep.subr.bf16.mxu1 %v3548_v51  ;;  %v3572_v51 = vpack.c.bf16 %v2191_v11, %v2190_v10 }
 0xf21   :  { %3573 = vmatprep.subr.bf16.mxu0 %v3572_v51 }
 0xf22   :  { %3551 = vmatpush1.bf16.msra.mxu1 %v3550_v14  ;;  %v3574_v14 = vpack.c.bf16 %v2175_v13, %v2174_v12 }
 0xf23   :  { %3553 = vmatprep.subr.bf16.mxu1 %v3552_v22  ;;  %v3582_v22 = vpack.c.bf16 %v2179_v45, %v2178_v54 }
 0xf24   :  { %3575 = vmatpush3.bf16.msra.mxu0 %v3574_v14 }
 0xf26   :  { %3555 = vmatpush1.bf16.msra.mxu1 %v3554_v24  ;;  %v3584_v24 = vpack.c.bf16 %v2197_v48, %v2196_v23 }
 0xf27   :  { %3557 = vmatprep.subr.bf16.mxu1 %v3556_v28  ;;  %v2198_v28 = vld [vmem:[#allocation14 + $0x1c0] sm:$0xff] }
 0xf28   :  { %v3588_v18 = vpack.c.bf16 %v2199_v31, %v2198_v28 }
 0xf2a   :  { %3559 = vmatpush1.bf16.msra.mxu1 %v3558_v56  ;;  %v2183_v56 = vld [vmem:[#allocation14 + $0x148] sm:$0xff] }
 0xf2b   :  { %3561 = vmatprep.subr.bf16.mxu1 %v3560_v35  ;;  %v3590_v35 = vpack.c.bf16 %v2183_v56, %v2182_v32 }
 0xf2e   :  { %3563 = vmatpush1.bf16.msra.mxu1 %v3562_v33  ;;  %v2185_v33 = vld [vmem:[#allocation14 + $0x158] sm:$0xff] }
 0xf2f   :  { %3565 = vmatprep.subr.bf16.mxu1 %v3564_v60  ;;  %v3594_v60 = vpack.c.bf16 %v2185_v33, %v2184_v29 }
 0xf32   :  { %3567 = vmatpush1.bf16.msra.mxu1 %v3566_v46  ;;  %v2187_v46 = vld [vmem:[#allocation14 + $0x168] sm:$0xff] }
 0xf33   :  { %3569 = vmatprep.subr.bf16.mxu1 %v3568_v47  ;;  %v3598_v47 = vpack.c.bf16 %v2187_v46, %v2186_v42 }
 0xf36   :  { %3571 = vmatpush1.bf16.msra.mxu1 %v3570_v53  ;;  %v2188_v53 = vld [vmem:[#allocation14 + $0x170] sm:$0xff] }
 0xfa6   :  { %v1907_v2 = vpop.xlane.xlu1 %1906 }
 0xfa7   :  { %v1909_v63 = vmul.f32 0.0078125, %v1907_v2  ;;  %v1905_v41 = vpop.xlane.xlu0 %1904  ;;  %v2192_v2 = vld [vmem:[#allocation14 + $0x190] sm:$0xff] }
 0xfa8   :  { %v1908_v15 = vmul.f32 0.0078125, %v1905_v41 }
 0xfa9   :  { %v1911_v16 = vsub.f32 %v1899_v57, %v1909_v63  ;;  %v2193_v63 = vld [vmem:[#allocation14 + $0x198] sm:$0xff] }
 0xfaa   :  { %v1910_v17 = vsub.f32 %v1898_v37, %v1908_v15  ;;  %v3576_v41 = vpack.c.bf16 %v2193_v63, %v2192_v2  ;;  %v2176_v15 = vld [vmem:[#allocation14 + $0x110] sm:$0xff] }
 0xfab   :  { %v1913_v19 = vmul.f32 %v1911_v16, %v1911_v16 }
 0xfac   :  { %v1912_v21 = vmul.f32 %v1910_v17, %v1910_v17  ;;  %3577 = vmatprep.subr.bf16.mxu0 %v3576_v41 }
 0xfad   :  { %1916 = vadd.xlane.f32.xlu1 %v1913_v19  ;;  %v2195_v19 = vld [vmem:[#allocation14 + $0x1a8] sm:$0xff] }
 0xfae   :  { %1914 = vadd.xlane.f32.xlu0 %v1912_v21 }
0x103a   :  { %v1917_v55 = vpop.xlane.xlu1 %1916 }
0x103b   :  { %v1919_v6 = vmul.f32 0.0078125, %v1917_v55  ;;  %v1915_v57 = vpop.xlane.xlu0 %1914  ;;  %v3600_v55 = vpack.c.bf16 %v2205_v52, %v2204_v30 }
0x103c   :  { %v1918_v37 = vmul.f32 0.0078125, %v1915_v57 }
0x103d   :  { %v1921_v61 = vadd.f32 1e-12, %v1919_v6  ;;  %v2189_v6 = vld [vmem:[#allocation14 + $0x178] sm:$0xff] }
0x103e   :  { %v1920_v58 = vadd.f32 1e-12, %v1918_v37  ;;  %v3602_v57 = vpack.c.bf16 %v2189_v6, %v2188_v53  ;;  %v1976_v37 = vld [vmem:[#allocation13 + $0x2] sm:$0x3] }
0x103f   :  { %3737 = vrsqrt.f32 %v1921_v61  ;;  %v1981_v61 = vrot.slane %v1976_v37, %v4470_v39 }
0x1040   :  { %3739 = vrsqrt.f32 %v1920_v58  ;;  %v1985_v58 = vrot.slane %v1976_v37, %v4473_v40 }
0x1049   :  { %v3738_v50 = vpop.eup %3737 }
0x104a   :  { %v3740_v0 = vpop.eup %3739  ;;  %v1925_v1 = vmul.f32 %v3738_v50, %v1911_v16  ;;  %v2177_v16 = vld [vmem:[#allocation14 + $0x118] sm:$0xff] }
0x104b   :  { %v1924_v62 = vmul.f32 %v3740_v0, %v1910_v17  ;;  %v3578_v17 = vpack.c.bf16 %v2177_v16, %v2176_v15 }
0x104c   :  { %v1933_v7 = vmul.f32 %v2581_v8, %v1925_v1 }
0x104d   :  { %v1932_v3 = vmul.f32 %v2581_v8, %v1924_v62  ;;  %3579 = vmatpush3.bf16.msra.mxu0 %v3578_v17 }
0x104e   :  { %v4889_v9 = vadd.f32 %v2582_v44, %v1933_v7 }
0x104f   :  { %v4885_v4 = vadd.f32 %v2582_v44, %v1932_v3 }
0x1051   :  { %2053 = vmatmul.mubr.f32.vlgmr.msra.gmra.mrb[20].mxu1 %v4885_v4 }
0x1052   :  { %2058 = vmatprep.mubr.f32.mxu1 %v4098_v5  ;;  %v2194_v5 = vld [vmem:[#allocation14 + $0x1a0] sm:$0xff] }
0x1053   :  { %v3580_v21 = vpack.c.bf16 %v2195_v19, %v2194_v5 }
0x1055   :  { %2059 = vmatmul.mubr.f32.gmra.mrb[22].mxu1 %v4889_v9  ;;  %3581 = vmatprep.subr.bf16.mxu0 %v3580_v21 }
0x1056   :  { %3583 = vmatpush3.bf16.msra.mxu0 %v3582_v22 }
0x1057   :  { %3585 = vmatprep.subr.bf16.mxu0 %v3584_v24 }
0x105a   :  { %3587 = vmatpush3.bf16.msra.mxu0 %v3586_v49 }
0x105b   :  { %3589 = vmatprep.subr.bf16.mxu0 %v3588_v18 }
0x105e   :  { %3591 = vmatpush3.bf16.msra.mxu0 %v3590_v35 }
0x105f   :  { %3593 = vmatprep.subr.bf16.mxu0 %v3592_v59 }
0x1062   :  { %3595 = vmatpush3.bf16.msra.mxu0 %v3594_v60 }
0x1063   :  { %3597 = vmatprep.subr.bf16.mxu0 %v3596_v43 }
0x1066   :  { %3599 = vmatpush3.bf16.msra.mxu0 %v3598_v47 }
0x1067   :  { %3601 = vmatprep.subr.bf16.mxu0 %v3600_v55 }
0x106a   :  { %3603 = vmatpush3.bf16.msra.mxu0 %v3602_v57 }
0x1124   :  { %v2054_v50 = vpop.f32.mrb[20].mxu1 }
0x1125   :  { %v4894_v0 = vadd.f32 %v2054_v50, %v1981_v61  ;;  %v2056_v8 = vpop.f32.mrb[21].mxu1 }
0x1126   :  { %v4896_v62 = vadd.f32 %v2056_v8, %v1985_v58 }
0x1127   :  { %v4899_v1 = vmul.f32 0.70710677, %v4894_v0 }
0x1128   :  { %v4902_v44 = vmul.f32 0.70710677, %v4896_v62  ;;  %v2060_v3 = vpop.f32.mrb[22].mxu1 }
0x1129   :  { %v2081_v7 = vand.u32 2147483647, %v4899_v1  ;;  %v4905_v10 = vadd.f32 %v2060_v3, %v1981_v61  ;;  %v2062_v39 = vpop.f32.mrb[23].mxu1  ;;  %vm2073_vm5 = vcmp.lt.f32.partialorder %v4899_v1, 0.0 }
0x112a   :  { %v2082_v40 = vand.u32 2147483647, %v4902_v44  ;;  %v4908_v11 = vadd.f32 %v2062_v39, %v1985_v58  ;;  %vm2074_vm6 = vcmp.lt.f32.partialorder %v4902_v44, 0.0 }
0x112b   :  { %v2085_v51 = vmul.f32 0.3275911, %v2081_v7  ;;  %v4911_v13 = vmul.f32 0.70710677, %v4905_v10  ;;  %v2137_v19 = vsub.f32 0.0, %v2081_v7 }
0x112c   :  { %v2086_v12 = vmul.f32 0.3275911, %v2082_v40  ;;  %v4914_v2 = vmul.f32 0.70710677, %v4908_v11  ;;  %v2138_v54 = vsub.f32 0.0, %v2082_v40 }
0x112d   :  { %v2089_v14 = vadd.f32 1.0, %v2085_v51  ;;  %v2083_v41 = vand.u32 2147483647, %v4911_v13  ;;  %v2141_v22 = vmul.f32 %v2137_v19, %v2081_v7  ;;  %vm2075_vm7 = vcmp.lt.f32.partialorder %v4911_v13, 0.0 }
0x112e   :  { %v2090_v63 = vadd.f32 1.0, %v2086_v12  ;;  %v2084_v16 = vand.u32 2147483647, %v4914_v2  ;;  %v2142_v24 = vmul.f32 %v2138_v54, %v2082_v40  ;;  %v2077_v54 = vsel %vm2073_vm5, -1.0, %v4099_v27 }
0x112f   :  { %3741 = vrcp.f32 %v2089_v14  ;;  %v2087_v15 = vmul.f32 0.3275911, %v2083_v41  ;;  %v2139_v25 = vsub.f32 0.0, %v2083_v41  ;;  %v2145_v28 = vmul.f32 1.442695, %v2141_v22 }
0x1130   :  { %3743 = vrcp.f32 %v2090_v63  ;;  %v2088_v5 = vmul.f32 0.3275911, %v2084_v16  ;;  %v2140_v31 = vsub.f32 0.0, %v2084_v16  ;;  %v2147_v35 = vmul.f32 1.442695, %v2142_v24 }
0x1131   :  { %v2091_v17 = vadd.f32 1.0, %v2087_v15  ;;  %v2143_v20 = vmul.f32 %v2139_v25, %v2083_v41  ;;  %vm2076_vm8 = vcmp.lt.f32.partialorder %v4914_v2, 0.0 }
0x1132   :  { %v2092_v21 = vadd.f32 1.0, %v2088_v5  ;;  %v2144_v60 = vmul.f32 %v2140_v31, %v2084_v16  ;;  %v2066_v31 = vmul.f32 0.5, %v4896_v62  ;;  %v2068_v62 = vmul.f32 0.5, %v4908_v11 }
0x1133   :  { %3745 = vrcp.f32 %v2091_v17  ;;  %v2149_v42 = vmul.f32 1.442695, %v2143_v20 }
0x1134   :  { %3747 = vrcp.f32 %v2092_v21  ;;  %v2151_v55 = vmul.f32 1.442695, %v2144_v60  ;;  %v2080_v60 = vsel %vm2076_vm8, -1.0, %v4099_v27 }
0x1135   :  { %3749 = vpow2.f32 %v2145_v28 }
0x1136   :  { %3751 = vpow2.f32 %v2147_v35  ;;  %v2065_v35 = vmul.f32 0.5, %v4894_v0  ;;  %v2067_v0 = vmul.f32 0.5, %v4905_v10  ;;  %v2333_v10 = vld [vmem:[#allocation20] sm:$0xff] }
0x1137   :  { %3753 = vpow2.f32 %v2149_v42 }
0x1138   :  { %3755 = vpow2.f32 %v2151_v55 }
0x1139   :  { %v3742_v45 = vpop.eup %3741 }
0x113a   :  { %v3744_v23 = vpop.eup %3743  ;;  %v2101_v48 = vmul.f32 1.0614054, %v3742_v45 }
0x113b   :  { %v2102_v26 = vmul.f32 1.0614054, %v3744_v23 }
0x113c   :  { %v2105_v49 = vadd.f32 -1.4531521, %v2101_v48 }
0x113d   :  { %v2106_v18 = vadd.f32 -1.4531521, %v2102_v26  ;;  %v3746_v32 = vpop.eup %3745 }
0x113e   :  { %v2109_v56 = vmul.f32 %v3742_v45, %v2105_v49  ;;  %v2103_v59 = vmul.f32 1.0614054, %v3746_v32  ;;  %v3748_v33 = vpop.eup %3747 }
0x113f   :  { %v2110_v36 = vmul.f32 %v3744_v23, %v2106_v18  ;;  %v2104_v46 = vmul.f32 1.0614054, %v3748_v33  ;;  %v3750_v12 = vpop.eup %3749 }
0x1140   :  { %v2113_v29 = vadd.f32 1.4214138, %v2109_v56  ;;  %v2107_v38 = vadd.f32 -1.4531521, %v2103_v59  ;;  %v3752_v41 = vpop.eup %3751 }
0x1141   :  { %v2114_v34 = vadd.f32 1.4214138, %v2110_v36  ;;  %v2108_v53 = vadd.f32 -1.4531521, %v2104_v46  ;;  %v2615_v46 = vld [vmem:[#allocation16 + $0x1] ss:$0 sm:$0xff] }
0x1142   :  { %v2117_v43 = vmul.f32 %v3742_v45, %v2113_v29  ;;  %v2111_v30 = vmul.f32 %v3746_v32, %v2107_v38 }
0x1143   :  { %v2118_v47 = vmul.f32 %v3744_v23, %v2114_v34  ;;  %v2112_v61 = vmul.f32 %v3748_v33, %v2108_v53 }
0x1144   :  { %v2121_v52 = vadd.f32 -0.28449672, %v2117_v43  ;;  %v2115_v57 = vadd.f32 1.4214138, %v2111_v30 }
0x1145   :  { %v2122_v6 = vadd.f32 -0.28449672, %v2118_v47  ;;  %v2116_v3 = vadd.f32 1.4214138, %v2112_v61  ;;  %v2335_v61 = vld [vmem:[#allocation20 + $0x10] sm:$0xff] }
0x1146   :  { %v2125_v37 = vmul.f32 %v3742_v45, %v2121_v52  ;;  %v2119_v50 = vmul.f32 %v3746_v32, %v2115_v57 }
0x1147   :  { %v2126_v58 = vmul.f32 %v3744_v23, %v2122_v6  ;;  %v2120_v51 = vmul.f32 %v3748_v33, %v2116_v3 }
0x1148   :  { %v2129_v8 = vadd.f32 0.2548296, %v2125_v37  ;;  %v2123_v39 = vadd.f32 -0.28449672, %v2119_v50  ;;  %v2334_v37 = vld [vmem:[#allocation20 + $0x8] sm:$0xff]  ;;  %v2336_v50 = vld [vmem:[#allocation20 + $0x18] sm:$0xff] }
0x1149   :  { %v2130_v7 = vadd.f32 0.2548296, %v2126_v58  ;;  %v2124_v16 = vadd.f32 -0.28449672, %v2120_v51  ;;  %v3604_v58 = vpack.c.bf16 %v2334_v37, %v2333_v10  ;;  %v2444_v10 = vld [vmem:[%s5027_s19 + $0x58] sm:$0xff] }
0x114a   :  { %v2133_v40 = vmul.f32 %v3742_v45, %v2129_v8  ;;  %v2127_v63 = vmul.f32 %v3746_v32, %v2123_v39  ;;  %v3754_v45 = vpop.eup %3753  ;;  %v3608_v8 = vpack.c.bf16 %v2336_v50, %v2335_v61  ;;  %v2445_v61 = vld [vmem:[%s5027_s19 + $0x60] sm:$0xff] }
0x114b   :  { %v2134_v14 = vmul.f32 %v3744_v23, %v2130_v7  ;;  %v2128_v21 = vmul.f32 %v3748_v33, %v2124_v16  ;;  %v2078_v23 = vsel %vm2074_vm6, -1.0, %v4099_v27  ;;  %v3756_v44 = vpop.eup %3755  ;;  %3605 = vmatprep.subr.bf16.mxu1 %v3604_v58  ;;  %v2340_v16 = vld [vmem:[#allocation20 + $0x38] sm:$0xff] }
0x114c   :  { %v2153_v15 = vmul.f32 %v3750_v12, %v2133_v40  ;;  %v2131_v5 = vadd.f32 0.2548296, %v2127_v63  ;;  %3607 = vmatpush3.bf16.msra.mxu1 %v3604_v58  ;;  %v2338_v63 = vld [vmem:[#allocation20 + $0x28] sm:$0xff]  ;;  %v2446_v58 = vld [vmem:[%s5027_s19 + $0x68] sm:$0xff] }
0x114d   :  { %v2154_v17 = vmul.f32 %v3752_v41, %v2134_v14  ;;  %v2132_v25 = vadd.f32 0.2548296, %v2128_v21  ;;  %3609 = vmatprep.subr.bf16.mxu1 %v3608_v8  ;;  %v2337_v14 = vld [vmem:[#allocation20 + $0x20] sm:$0xff]  ;;  %v3660_v50 = vpack.c.bf16 %v2446_v58, %v2445_v61 }
0x114e   :  { %v2157_v19 = vsub.f32 1.0, %v2153_v15  ;;  %v2135_v48 = vmul.f32 %v3746_v32, %v2131_v5  ;;  %v2079_v32 = vsel %vm2075_vm7, -1.0, %v4099_v27  ;;  %v3612_v41 = vpack.c.bf16 %v2338_v63, %v2337_v14  ;;  %v2339_v15 = vld [vmem:[#allocation20 + $0x30] sm:$0xff]  ;;  %v2341_v5 = vld [vmem:[#allocation20 + $0x40] sm:$0xff]  ;;  %v2619_v63 = vld [vmem:[#allocation2] ss:$0 sm:$0xff] }
0x114f   :  { %v2158_v22 = vsub.f32 1.0, %v2154_v17  ;;  %v2136_v28 = vmul.f32 %v3748_v33, %v2132_v25  ;;  %v3616_v17 = vpack.c.bf16 %v2340_v16, %v2339_v15  ;;  %v2347_v25 = vld [vmem:[#allocation20 + $0x70] sm:$0xff] }
0x1150   :  { %v2161_v24 = vmul.f32 %v2157_v19, %v2077_v54  ;;  %v2155_v26 = vmul.f32 %v3754_v45, %v2135_v48  ;;  %3611 = vmatpush3.bf16.msra.mxu1 %v3608_v8  ;;  %v2342_v19 = vld [vmem:[#allocation20 + $0x48] sm:$0xff]  ;;  %v2343_v54 = vld [vmem:[#allocation20 + $0x50] sm:$0xff]  ;;  %v2345_v48 = vld [vmem:[#allocation20 + $0x60] sm:$0xff] }
0x1151   :  { %v2162_v1 = vmul.f32 %v2158_v22, %v2078_v23  ;;  %v2156_v20 = vmul.f32 %v3756_v44, %v2136_v28  ;;  %3613 = vmatprep.subr.bf16.mxu1 %v3612_v41  ;;  %v3620_v21 = vpack.c.bf16 %v2342_v19, %v2341_v5  ;;  %v2344_v22 = vld [vmem:[#allocation20 + $0x58] sm:$0xff] }
0x1152   :  { %v2165_v49 = vadd.f32 1.0, %v2161_v24  ;;  %v2159_v56 = vsub.f32 1.0, %v2155_v26  ;;  %v3624_v45 = vpack.c.bf16 %v2344_v22, %v2343_v54  ;;  %v2346_v24 = vld [vmem:[#allocation20 + $0x68] sm:$0xff]  ;;  %v2434_v28 = vld [vmem:[%s5027_s19 + $0x8] sm:$0xff]  ;;  %v2435_v44 = vld [vmem:[%s5027_s19 + $0x10] sm:$0xff] }
0x1153   :  { %v2166_v18 = vadd.f32 1.0, %v2162_v1  ;;  %v2160_v13 = vsub.f32 1.0, %v2156_v20  ;;  %v3628_v23 = vpack.c.bf16 %v2346_v24, %v2345_v48  ;;  %v2348_v1 = vld [vmem:[#allocation20 + $0x78] sm:$0xff] }
0x1154   :  { %v2163_v59 = vmul.f32 %v2159_v56, %v2079_v32  ;;  %v2169_v29 = vmul.f32 %v2165_v49, %v2065_v35  ;;  %3615 = vmatpush3.bf16.msra.mxu1 %v3612_v41  ;;  %v3632_v26 = vpack.c.bf16 %v2348_v1, %v2347_v25  ;;  %v2433_v49 = vld [vmem:[%s5027_s19] sm:$0xff]  ;;  %v2438_v32 = vld [vmem:[%s5027_s19 + $0x28] sm:$0xff]  ;;  %v2447_v8 = vld [vmem:[%s5027_s19 + $0x70] sm:$0xff] }
0x1155   :  { %v2170_v36 = vmul.f32 %v2166_v18, %v2066_v31  ;;  %v2164_v33 = vmul.f32 %v2160_v13, %v2080_v60  ;;  %3617 = vmatprep.subr.bf16.mxu1 %v3616_v17  ;;  %v3636_v31 = vpack.c.bf16 %v2434_v28, %v2433_v49  ;;  %v2436_v18 = vld [vmem:[%s5027_s19 + $0x18] sm:$0xff]  ;;  %v2437_v35 = vld [vmem:[%s5027_s19 + $0x20] sm:$0xff] }
0x1156   :  { %v2167_v34 = vadd.f32 1.0, %v2163_v59  ;;  %v3640_v56 = vpack.c.bf16 %v2436_v18, %v2435_v44  ;;  %v3644_v20 = vpack.c.bf16 %v2438_v32, %v2437_v35  ;;  %v2440_v59 = vld [vmem:[%s5027_s19 + $0x38] sm:$0xff] }
0x1157   :  { %2278 = vmatprep.mubr.f32.mxu0 %v2170_v36  ;;  %v2168_v38 = vadd.f32 1.0, %v2164_v33  ;;  %3637 = vmatprep.subr.bf16.mxu0 %v3636_v31  ;;  %v2439_v36 = vld [vmem:[%s5027_s19 + $0x30] sm:$0xff] }
0x1158   :  { %2279 = vmatmul.mubr.f32.vlgmr.msra.gmra.mrb[16].mxu0 %v2169_v29  ;;  %v2171_v42 = vmul.f32 %v2167_v34, %v2067_v0  ;;  %3619 = vmatpush3.bf16.msra.mxu1 %v3616_v17  ;;  %v3648_v29 = vpack.c.bf16 %v2440_v59, %v2439_v36 }
0x1159   :  { %v2172_v43 = vmul.f32 %v2168_v38, %v2068_v62  ;;  %3621 = vmatprep.subr.bf16.mxu1 %v3620_v21  ;;  %3639 = vmatpush3.bf16.msra.mxu0 %v3636_v31 }
0x115a   :  { %3641 = vmatprep.subr.bf16.mxu0 %v3640_v56 }
0x115b   :  { %2283 = vmatprep.mubr.f32.mxu0 %v2172_v43  ;;  %v2616_v43 = vld [vmem:[#allocation17 + $0x1] ss:$0 sm:$0xff] }
0x115c   :  { %2284 = vmatmul.mubr.f32.gmra.mrb[18].mxu0 %v2171_v42  ;;  %3623 = vmatpush3.bf16.msra.mxu1 %v3620_v21 }
0x115d   :  { %3625 = vmatprep.subr.bf16.mxu1 %v3624_v45  ;;  %3643 = vmatpush3.bf16.msra.mxu0 %v3640_v56 }
0x115e   :  { %3645 = vmatprep.subr.bf16.mxu0 %v3644_v20 }
0x1160   :  { %3627 = vmatpush3.bf16.msra.mxu1 %v3624_v45 }
0x1161   :  { %3629 = vmatprep.subr.bf16.mxu1 %v3628_v23  ;;  %3647 = vmatpush3.bf16.msra.mxu0 %v3644_v20 }
0x1162   :  { %3649 = vmatprep.subr.bf16.mxu0 %v3648_v29 }
0x1164   :  { %3631 = vmatpush3.bf16.msra.mxu1 %v3628_v23 }
0x1165   :  { %3633 = vmatprep.subr.bf16.mxu1 %v3632_v26  ;;  %3651 = vmatpush3.bf16.msra.mxu0 %v3648_v29 }
0x1168   :  { %3635 = vmatpush3.bf16.msra.mxu1 %v3632_v26 }
0x122b   :  { %v2822_v2 = vpop.f32.mrb[16].mxu0 }
0x122c   :  { %v2823_v47 = vpop.f32.mrb[17].mxu0 }
0x122d   :  { %v2824_v30 = vadd.f32 %v2823_v47, %v2822_v2  ;;  %v2617_v2 = vld [vmem:[#allocation19 + $0x1] ss:$0 sm:$0xff] }
0x122f   :  { %v2281_v52 = vadd.f32 %v2824_v30, %v2615_v46  ;;  %v2825_v53 = vpop.f32.mrb[18].mxu0 }
0x1230   :  { %v2826_v55 = vpop.f32.mrb[19].mxu0 }
0x1231   :  { %v2289_v27 = vadd.f32 %v2281_v52, %v4885_v4  ;;  %v2827_v6 = vadd.f32 %v2826_v55, %v2825_v53  ;;  %v2441_v55 = vld [vmem:[%s5027_s19 + $0x40] sm:$0xff] }
0x1233   :  { %2295 = vadd.xlane.f32.xlu0 %v2289_v27  ;;  %v2286_v57 = vadd.f32 %v2827_v6, %v2615_v46  ;;  %v2442_v6 = vld [vmem:[%s5027_s19 + $0x48] sm:$0xff] }
0x1235   :  { %v2290_v11 = vadd.f32 %v2286_v57, %v4889_v9  ;;  %v3652_v57 = vpack.c.bf16 %v2442_v6, %v2441_v55 }
0x1237   :  { %2297 = vadd.xlane.f32.xlu1 %v2290_v11  ;;  %3653 = vmatprep.subr.bf16.mxu0 %v3652_v57 }
0x1238   :  { %3655 = vmatpush3.bf16.msra.mxu0 %v3652_v57 }
0x12c0   :  { %v2296_v3 = vpop.xlane.xlu0 %2295 }
0x12c1   :  { %v2299_v4 = vmul.f32 0.0078125, %v2296_v3  ;;  %v2448_v3 = vld [vmem:[%s5027_s19 + $0x78] sm:$0xff] }
0x12c3   :  { %v4932_v7 = vsub.f32 %v2289_v27, %v2299_v4  ;;  %v3664_v4 = vpack.c.bf16 %v2448_v3, %v2447_v8 }
0x12c4   :  { %v2298_v40 = vpop.xlane.xlu1 %2297 }
0x12c5   :  { %v2303_v39 = vmul.f32 %v4932_v7, %v4932_v7  ;;  %v2300_v9 = vmul.f32 0.0078125, %v2298_v40 }
0x12c7   :  { %2305 = vadd.xlane.f32.xlu0 %v2303_v39  ;;  %v4936_v51 = vsub.f32 %v2290_v11, %v2300_v9  ;;  %v2443_v11 = vld [vmem:[%s5027_s19 + $0x50] sm:$0xff] }
0x12c8   :  { %v3656_v37 = vpack.c.bf16 %v2444_v10, %v2443_v11 }
0x12c9   :  { %v2304_v12 = vmul.f32 %v4936_v51, %v4936_v51 }
0x12ca   :  { %3657 = vmatprep.subr.bf16.mxu0 %v3656_v37 }
0x12cb   :  { %2307 = vadd.xlane.f32.xlu1 %v2304_v12  ;;  %3659 = vmatpush3.bf16.msra.mxu0 %v3656_v37 }
0x12cc   :  { %3661 = vmatprep.subr.bf16.mxu0 %v3660_v50 }
0x12cf   :  { %3663 = vmatpush3.bf16.msra.mxu0 %v3660_v50 }
0x12d0   :  { %3665 = vmatprep.subr.bf16.mxu0 %v3664_v4 }
0x12d3   :  { %3667 = vmatpush3.bf16.msra.mxu0 %v3664_v4 }
0x1354   :  { %v2306_v13 = vpop.xlane.xlu0 %2305 }
0x1355   :  { %v2309_v60 = vmul.f32 0.0078125, %v2306_v13 }
0x1357   :  { %v2311_v33 = vadd.f32 1e-12, %v2309_v60 }
0x1358   :  { %v2308_v34 = vpop.xlane.xlu1 %2307 }
0x1359   :  { %3757 = vrsqrt.f32 %v2311_v33  ;;  %v2310_v62 = vmul.f32 0.0078125, %v2308_v34 }
0x135b   :  { %v2312_v38 = vadd.f32 1e-12, %v2310_v62 }
0x135d   :  { %3759 = vrsqrt.f32 %v2312_v38 }
0x1363   :  { %v3758_v0 = vpop.eup %3757 }
0x1364   :  { %v2315_v42 = vmul.f32 %v3758_v0, %v4932_v7  ;;  %v2618_v7 = vld [vmem:[#allocation22] ss:$0 sm:$0xff] }
0x1366   :  { %v2323_v46 = vmul.f32 %v2616_v43, %v2315_v42 }
0x1367   :  { %v3760_v30 = vpop.eup %3759 }
0x1368   :  { %v2331_v47 = vadd.f32 %v2617_v2, %v2323_v46  ;;  %v2316_v52 = vmul.f32 %v3760_v30, %v4936_v51 }
0x136a   :  { %3150 = vmatprep.mubr.f32.mxu1 %v2331_v47  ;;  %2537 = vst [vmem:[%s5029_s21] sm:$0xff] %v2331_v47  ;;  %v2324_v27 = vmul.f32 %v2616_v43, %v2316_v52 }
0x136c   :  { %v2332_v53 = vadd.f32 %v2617_v2, %v2324_v27 }
0x136e   :  { %2538 = vst [vmem:[%s5029_s21 + $0x8] sm:$0xff] %v2332_v53  ;;  %3151 = vmatmul.mubr.f32.vlgmr.msra.gmra.mrb[24].mxu1 %v2332_v53 }
0x1441   :  { %v3152_v39 = vpop.f32.mrb[24].mxu1 }
0x1442   :  { %v2428_v40 = vadd.f32 %v3152_v39, %v2618_v7  ;;  %v2422_v9 = vpop.f32.mrb[25].mxu1 }
0x1443   :  { %v2423_v51 = vadd.f32 %v2618_v7, %v2422_v9 }
0x1444   :  { %3761 = vtanh.f32 %v2428_v40 }
0x1445   :  { %3763 = vtanh.f32 %v2423_v51 }
0x144e   :  { %v3762_v12 = vpop.eup %3761 }
0x144f   :  { %v3764_v14 = vpop.eup %3763  ;;  %2540 = vst [vmem:[%s5030_s22 + $0x8] sm:$0xff] %v3762_v12 }
0x1450   :  { %2539 = vst [vmem:[%s5030_s22] sm:$0xff] %v3764_v14  ;;  %3185 = vmatprep.mubr.f32.mxu0 %v3764_v14 }
0x1451   :  { %3186 = vmatmul.mubr.f32.vlgmr.msra.gmra.mrb[20].mxu0 %v3762_v12 }
0x1524   :  { %v3187_v41 = vpop.f32.mrb[20].mxu0 }
0x1525   :  { %v2528_v15 = vadd.f32 %v3187_v41, %v2619_v63  ;;  %v2522_v16 = vpop.f32.mrb[21].mxu0 }
0x1526   :  { %v2523_v17 = vadd.f32 %v2619_v63, %v2522_v16 }
0x1527   :  { %vm2532_vm9 = vcmp.ge.f32.partialorder %v2528_v15, 0.0  ;;  %v2534_v5 = vmul.f32 0.01, %v2528_v15 }
0x1528   :  { %vm2531_vm11 = vcmp.ge.f32.partialorder %v2523_v17, 0.0  ;;  %v2533_v19 = vmul.f32 0.01, %v2523_v17 }
0x1529   :  { %v2536_v21 = vsel %vm2532_vm9, %v2528_v15, %v2534_v5 }
0x152a   :  { %2543 = vst.msk [vmem:[%s5057_s7 + $0x8] sm:$0xff] %vm2541_vm10, %v2536_v21  ;;  %v2535_v54 = vsel %vm2531_vm11, %v2523_v17, %v2533_v19 }
0x152b   :  { %2542 = vst.msk [vmem:[%s5057_s7] sm:$0xff] %vm2541_vm10, %v2535_v54 }
0x152c   :  { %2556 = vsyncpa [#allocation4], 1 }
0x152d   :  { %2557 = vsyncpa [#allocation6], 1 }
0x152e   :  { %2558 = vsyncpa [#allocation9], 1 }
0x152f   :  { %2559 = vsyncpa [#allocation12], 1 }
0x1530   :  { %2560 = vsyncpa [#allocation15], 1 }
0x1531   :  { %2561 = vsyncpa [#allocation18], 1 }
0x1532   :  { %2562 = vsyncpa [#allocation21], 1 }

</bundles_post_ra>
